<compile_context>
chip_gen: v7x
topology: tpu7x:2x2x1
jax: 0.10.0
libtpu: 0.0.40
codegen_flags: <defaults>
</compile_context>

<pallas_src>
import jax
import jax.numpy as jnp
from jax.experimental import pallas as pl
from jax.experimental.pallas import tpu as pltpu

EPS = 1e-5
# Explicit scoped-VMEM budget: above v5e's 16 MiB default, well below v7x's
# 64 MiB physical; actual per-tile footprint is only a few MiB.
VMEM_LIMIT_BYTES = 32 * 1024 * 1024
ACC_SUBLANES = 8  # per-batch accumulators padded to 8 sublanes for (8,128) tiling


# ----------------------------- kernels --------------------------------------


def _accumulate_stats(c, z, sum_ref, ssq_ref):
    """Accumulate per-channel sum / sum-of-squares of z across the chunk axis."""
    @pl.when(c == 0)
    def _():
        sum_ref[...] = jnp.zeros_like(sum_ref)
        ssq_ref[...] = jnp.zeros_like(ssq_ref)

    sum_ref[...] += jnp.sum(z, axis=0, keepdims=True)[None]
    ssq_ref[...] += jnp.sum(z * z, axis=0, keepdims=True)[None]


def conv1_stats_kernel(x_ref, w_ref, b_ref, z_ref, sum_ref, ssq_ref):
    # conv1 (Conv1d kernel_size=1 == per-row matmul); K=k is tiny, keep f32.
    c = pl.program_id(1)
    z = jnp.dot(x_ref[...], w_ref[...], preferred_element_type=jnp.float32) + b_ref[...]
    z_ref[...] = z
    _accumulate_stats(c, z, sum_ref, ssq_ref)


def bn_conv_stats_kernel(zin_ref, s_ref, t_ref, w_ref, b_ref,
                         zout_ref, sum_ref, ssq_ref):
    # folded BN (global stats) + ReLU, then next conv as bf16 matmul w/ f32 acc.
    c = pl.program_id(1)
    h = jnp.maximum(zin_ref[...] * s_ref[...] + t_ref[...], 0.0)
    z = jnp.dot(h.astype(w_ref.dtype), w_ref[...],
                preferred_element_type=jnp.float32) + b_ref[...]
    zout_ref[...] = z
    _accumulate_stats(c, z, sum_ref, ssq_ref)


def bn_conv_pool_kernel(zin_ref, s_ref, t_ref, w_ref, b_ref,
                        zmax_ref, zmin_ref, sum_ref, ssq_ref):
    # bn2+relu -> conv3 (bf16 matmul) -> running per-batch max/min + bn3 stats.
    c = pl.program_id(1)
    h = jnp.maximum(zin_ref[...] * s_ref[...] + t_ref[...], 0.0)
    z = jnp.dot(h.astype(w_ref.dtype), w_ref[...],
                preferred_element_type=jnp.float32) + b_ref[...]

    @pl.when(c == 0)
    def _():
        zmax_ref[...] = jnp.full_like(zmax_ref, -jnp.inf)
        zmin_ref[...] = jnp.full_like(zmin_ref, jnp.inf)

    zmax_ref[...] = jnp.maximum(zmax_ref[...], jnp.max(z, axis=0, keepdims=True)[None])
    zmin_ref[...] = jnp.minimum(zmin_ref[...], jnp.min(z, axis=0, keepdims=True)[None])
    _accumulate_stats(c, z, sum_ref, ssq_ref)


def _bn_relu_rows(z, gamma, beta):
    # Training-mode BatchNorm1d over rows: one-pass stats, folded affine, ReLU.
    inv_n = 1.0 / z.shape[0]
    mean = jnp.sum(z, axis=0, keepdims=True) * inv_n
    var = jnp.maximum(jnp.sum(z * z, axis=0, keepdims=True) * inv_n - mean * mean, 0.0)
    s = gamma * jax.lax.rsqrt(var + EPS)
    t = beta - mean * s
    return jnp.maximum(z * s + t, 0.0)


def head_kernel(zmax_ref, zmin_ref, s3_ref, t3_ref,
                wf1_ref, bf1_ref, g4_ref, be4_ref,
                wf2_ref, bf2_ref, g5_ref, be5_ref,
                wf3_ref, bf3_ref, eye_ref, out_ref):
    f32 = jnp.float32
    s3 = s3_ref[...]
    t3 = t3_ref[...]
    # maxpool(relu(bn3(z3))) recovered exactly from running max/min of raw z3:
    # relu(s*z+t) is monotone in z with the sign of s, per channel.
    pooled = jnp.maximum(
        jnp.where(s3 >= 0.0, zmax_ref[...] * s3, zmin_ref[...] * s3) + t3, 0.0)

    h = jnp.dot(pooled.astype(wf1_ref.dtype), wf1_ref[...],
                preferred_element_type=f32) + bf1_ref[...]
    h = _bn_relu_rows(h, g4_ref[...], be4_ref[...])                # (bs, 512)
    h = jnp.dot(h.astype(wf2_ref.dtype), wf2_ref[...],
                preferred_element_type=f32) + bf2_ref[...]
    h = _bn_relu_rows(h, g5_ref[...], be5_ref[...])                # (bs, 256)
    z = jnp.dot(h, wf3_ref[...], preferred_element_type=f32) + bf3_ref[...]
    out_ref[...] = z + eye_ref[...]                                # (bs, k*k)


# ----------------------------- wrapper ---------------------------------------


def _fold_bn(sum_acc, ssq_acc, count, gamma, beta):
    # Reduce per-batch partial sums (replicated over 8 sublanes) -> global
    # biased mean/var -> single per-channel affine: bn(z) == z * s + t.
    total = jnp.sum(sum_acc[:, 0, :], axis=0, keepdims=True)
    total_sq = jnp.sum(ssq_acc[:, 0, :], axis=0, keepdims=True)
    mean = total / count
    var = jnp.maximum(total_sq / count - mean * mean, 0.0)
    s = gamma * jax.lax.rsqrt(var + EPS)
    t = beta - mean * s
    return s, t


def _points_tile(n_pts, target=512):
    # Largest multiple of 8 dividing n_pts and <= target: keeps the per-tile
    # conv3 activation around <= 2 MiB f32 so double-buffered tiles fit v7x's
    # 64 MiB VMEM while amortizing per-step grid overhead.
    t = min(n_pts, target)
    t -= t % 8
    while t >= 8 and n_pts % t != 0:
        t -= 8
    return t if t >= 8 else n_pts


def init_params(key, k=3):
    """Deterministic synthetic parameters matching the PyTorch module shapes."""
    layer_dims = [(k, 64), (64, 128), (128, 1024),        # conv1..3 (kernel=1)
                  (1024, 512), (512, 256), (256, k * k)]  # fc1..3
    has_bn = [True, True, True, True, True, False]

    params = []
    for (cin, cout), bn in zip(layer_dims, has_bn):
        key, kw, kb, kg, kbe = jax.random.split(key, 5)
        w = (jax.random.normal(kw, (cin, cout), jnp.float32)
             * (1.0 / jnp.sqrt(jnp.float32(cin))))
        b = 0.01 * jax.random.normal(kb, (1, cout), jnp.float32)
        params += [w, b]
        if bn:
            gamma = 1.0 + 0.1 * jax.random.normal(kg, (1, cout), jnp.float32)
            beta = 0.01 * jax.random.normal(kbe, (1, cout), jnp.float32)
            params += [gamma, beta]
    return params


def tnet_forward(x_ncl, params, k=3, points_tile=512):
    (w1, b1, g1, be1,
     w2, b2, g2, be2,
     w3, b3, g3, be3,
     wf1, bf1, g4, be4,
     wf2, bf2, g5, be5,
     wf3, bf3) = params

    bs, kk, n = x_ncl.shape
    assert kk == k
    # TODO(synk): mask ragged point-count tails; for now require sublane-aligned n.
    assert n % 8 == 0, "n_points must be a multiple of 8"

    rows = bs * n
    tp = _points_tile(n, points_tile)
    nchunks = n // tp
    grid = (bs, nchunks)

    # NCL -> channels-last rows (channels on the 128-lane axis).
    x_rows = jnp.transpose(x_ncl, (0, 2, 1)).reshape(rows, k)

    # bf16 inputs for the MXU-dominant matmuls; f32 accumulation in-kernel.
    w2b = w2.astype(jnp.bfloat16)
    w3b = w3.astype(jnp.bfloat16)
    wf1b = wf1.astype(jnp.bfloat16)
    wf2b = wf2.astype(jnp.bfloat16)

    row_idx = lambda b, c: (b * nchunks + c, 0)   # row tile of flattened (bs*n, C)
    rep_idx = lambda b, c: (0, 0)                 # weights / (1, C) vectors
    acc_idx = lambda b, c: (b, 0, 0)              # per-batch accumulator block

    stream_params = pltpu.CompilerParams(
        dimension_semantics=("parallel", "arbitrary"),
        vmem_limit_bytes=VMEM_LIMIT_BYTES,
    )

    def acc_shape(c_dim):
        return jax.ShapeDtypeStruct((bs, ACC_SUBLANES, c_dim), jnp.float32)

    def acc_spec(c_dim):
        return pl.BlockSpec((1, ACC_SUBLANES, c_dim), acc_idx)

    # ---- pass 1: conv1 + global bn1 statistics ------------------------------
    z1, sum1, ssq1 = pl.pallas_call(
        conv1_stats_kernel,
        grid=grid,
        in_specs=[
            pl.BlockSpec((tp, k), row_idx),
            pl.BlockSpec((k, 64), rep_idx),
            pl.BlockSpec((1, 64), rep_idx),
        ],
        out_specs=[
            pl.BlockSpec((tp, 64), row_idx),
            acc_spec(64),
            acc_spec(64),
        ],
        out_shape=[
            jax.ShapeDtypeStruct((rows, 64), jnp.float32),
            acc_shape(64),
            acc_shape(64),
        ],
        compiler_params=stream_params,
    )(x_rows, w1, b1)
    s1, t1 = _fold_bn(sum1, ssq1, rows, g1, be1)

    # ---- pass 2: bn1+relu -> conv2 + global bn2 statistics ------------------
    z2, sum2, ssq2 = pl.pallas_call(
        bn_conv_stats_kernel,
        grid=grid,
        in_specs=[
            pl.BlockSpec((tp, 64), row_idx),
            pl.BlockSpec((1, 64), rep_idx),
            pl.BlockSpec((1, 64), rep_idx),
            pl.BlockSpec((64, 128), rep_idx),
            pl.BlockSpec((1, 128), rep_idx),
        ],
        out_specs=[
            pl.BlockSpec((tp, 128), row_idx),
            acc_spec(128),
            acc_spec(128),
        ],
        out_shape=[
            jax.ShapeDtypeStruct((rows, 128), jnp.float32),
            acc_shape(128),
            acc_shape(128),
        ],
        compiler_params=stream_params,
    )(z1, s1, t1, w2b, b2)
    s2, t2 = _fold_bn(sum2, ssq2, rows, g2, be2)

    # ---- pass 3: bn2+relu -> conv3, running per-batch max/min + bn3 stats ---
    zmax, zmin, sum3, ssq3 = pl.pallas_call(
        bn_conv_pool_kernel,
        grid=grid,
        in_specs=[
            pl.BlockSpec((tp, 128), row_idx),
            pl.BlockSpec((1, 128), rep_idx),
            pl.BlockSpec((1, 128), rep_idx),
            pl.BlockSpec((128, 1024), rep_idx),
            pl.BlockSpec((1, 1024), rep_idx),
        ],
        out_specs=[acc_spec(1024)] * 4,
        out_shape=[acc_shape(1024)] * 4,
        compiler_params=stream_params,
    )(z2, s2, t2, w3b, b3)
    s3, t3 = _fold_bn(sum3, ssq3, rows, g3, be3)

    # ---- FC head (everything is (bs, <=1024): one small grid-less kernel) ---
    eye_flat = jnp.eye(k, dtype=jnp.float32).reshape(1, k * k)
    vmem = pl.BlockSpec(memory_space=pltpu.MemorySpace.VMEM)
    out = pl.pallas_call(
        head_kernel,
        out_shape=jax.ShapeDtypeStruct((bs, k * k), jnp.float32),
        in_specs=[vmem] * 15,
        out_specs=vmem,
        compiler_params=pltpu.CompilerParams(vmem_limit_bytes=VMEM_LIMIT_BYTES),
    )(zmax[:, 0, :], zmin[:, 0, :], s3, t3,
      wf1b, bf1, g4, be4, wf2b, bf2, g5, be5, wf3, bf3, eye_flat)

    return out.reshape(bs, k, k)


if __name__ == "__main__":
    k = 3
    bs = 2
    n_points = 16

    key = jax.random.PRNGKey(0)
    key, kx = jax.random.split(key)
    x = jax.random.normal(kx, (bs, k, n_points), jnp.float32)  # NCL, like PyTorch

    params = init_params(key, k=k)

    out = jax.jit(lambda xx: tnet_forward(xx, params, k=k))(x)
    out = jax.block_until_ready(out)
    assert out.shape == (bs, k, k)
    assert bool(jnp.all(jnp.isfinite(out)))
    print("KERNEL_OK")
</pallas_src>

<mosaic_0001>
module attributes {stable_mosaic.version = 11 : i64} {
  func.func @conv1_stats_kernel(%arg0: i32, %arg1: i32, %arg2: memref<16x3xf32, #tpu.memory_space<vmem>>, %arg3: memref<3x64xf32, #tpu.memory_space<vmem>>, %arg4: memref<1x64xf32, #tpu.memory_space<vmem>>, %arg5: memref<16x64xf32, #tpu.memory_space<vmem>>, %arg6: memref<1x8x64xf32, #tpu.memory_space<vmem>>, %arg7: memref<1x8x64xf32, #tpu.memory_space<vmem>>) attributes {dimension_semantics = [#tpu.dimension_semantics<parallel>, #tpu.dimension_semantics<arbitrary>], iteration_bounds = array<i64: 2, 1>, scalar_prefetch = 0 : i64, scratch_operands = 0 : i64, tpu.core_type = #tpu.core_type<tc>, window_params = [{transform_indices = @transform_0, window_bounds = array<i64: 16, 3>}, {pipeline_mode = #tpu.pipeline_mode<synchronous>, transform_indices = @transform_1, window_bounds = array<i64: 3, 64>}, {pipeline_mode = #tpu.pipeline_mode<synchronous>, transform_indices = @transform_2, window_bounds = array<i64: 1, 64>}, {transform_indices = @transform_3, window_bounds = array<i64: 16, 64>}, {transform_indices = @transform_4, window_bounds = array<i64: 1, 8, 64>}, {transform_indices = @transform_5, window_bounds = array<i64: 1, 8, 64>}]} {
    %c0 = arith.constant 0 : index
    %c0_0 = arith.constant 0 : index
    %0 = vector.load %arg2[%c0, %c0_0] : memref<16x3xf32, #tpu.memory_space<vmem>>, vector<16x3xf32>
    %c0_1 = arith.constant 0 : index
    %c0_2 = arith.constant 0 : index
    %1 = vector.load %arg3[%c0_1, %c0_2] : memref<3x64xf32, #tpu.memory_space<vmem>>, vector<3x64xf32>
    %cst = arith.constant dense<0.000000e+00> : vector<16x64xf32>
    %2 = tpu.matmul %0, %1, %cst {dimension_numbers = #tpu.dot_dimension_numbers<[1], [0], [0], [1], [0, 0, 1, 1], [], []>} : vector<16x3xf32>, vector<3x64xf32>, vector<16x64xf32> -> vector<16x64xf32>
    %c0_3 = arith.constant 0 : index
    %c0_4 = arith.constant 0 : index
    %3 = vector.load %arg4[%c0_3, %c0_4] : memref<1x64xf32, #tpu.memory_space<vmem>>, vector<1x64xf32>
    %4 = vector.broadcast %3 : vector<1x64xf32> to vector<16x64xf32>
    %5 = arith.addf %2, %4 : vector<16x64xf32>
    %c0_5 = arith.constant 0 : index
    %c0_6 = arith.constant 0 : index
    %6 = vector.load %arg5[%c0_5, %c0_6] : memref<16x64xf32, #tpu.memory_space<vmem>>, vector<16x64xf32>
    tpu.vector_store %arg5[%c0_5, %c0_6], %5 {strides = array<i32>} : memref<16x64xf32, #tpu.memory_space<vmem>>, vector<16x64xf32>,
    %c0_i32 = arith.constant 0 : i32
    %7 = arith.cmpi eq, %arg1, %c0_i32 : i32
    %8 = arith.extui %7 : i1 to i32
    %c0_i32_7 = arith.constant 0 : i32
    %9 = arith.cmpi ne, %8, %c0_i32_7 : i32
    scf.if %9 {
      %cst_22 = arith.constant 0.000000e+00 : f32
      %25 = vector.broadcast %cst_22 : f32 to vector<1x8x64xf32>
      %c0_23 = arith.constant 0 : index
      %c0_24 = arith.constant 0 : index
      %c0_25 = arith.constant 0 : index
      %26 = vector.load %arg6[%c0_23, %c0_24, %c0_25] : memref<1x8x64xf32, #tpu.memory_space<vmem>>, vector<1x8x64xf32>
      tpu.vector_store %arg6[%c0_23, %c0_24, %c0_25], %25 {strides = array<i32>} : memref<1x8x64xf32, #tpu.memory_space<vmem>>, vector<1x8x64xf32>,
      %cst_26 = arith.constant 0.000000e+00 : f32
      %27 = vector.broadcast %cst_26 : f32 to vector<1x8x64xf32>
      %c0_27 = arith.constant 0 : index
      %c0_28 = arith.constant 0 : index
      %c0_29 = arith.constant 0 : index
      %28 = vector.load %arg7[%c0_27, %c0_28, %c0_29] : memref<1x8x64xf32, #tpu.memory_space<vmem>>, vector<1x8x64xf32>
      tpu.vector_store %arg7[%c0_27, %c0_28, %c0_29], %27 {strides = array<i32>} : memref<1x8x64xf32, #tpu.memory_space<vmem>>, vector<1x8x64xf32>,
    } else {
    }
    %c0_8 = arith.constant 0 : index
    %c0_9 = arith.constant 0 : index
    %c0_10 = arith.constant 0 : index
    %10 = vector.load %arg6[%c0_8, %c0_9, %c0_10] : memref<1x8x64xf32, #tpu.memory_space<vmem>>, vector<1x8x64xf32>
    %cst_11 = arith.constant dense<0.000000e+00> : vector<64xf32>
    %11 = vector.multi_reduction <add>, %5, %cst_11 [0] : vector<16x64xf32> to vector<64xf32>
    %12 = vector.shape_cast %11 : vector<64xf32> to vector<1x64xf32>
    %13 = vector.shape_cast %12 : vector<1x64xf32> to vector<1x1x64xf32>
    %14 = vector.broadcast %13 : vector<1x1x64xf32> to vector<1x8x64xf32>
    %15 = arith.addf %10, %14 : vector<1x8x64xf32>
    %c0_12 = arith.constant 0 : index
    %c0_13 = arith.constant 0 : index
    %c0_14 = arith.constant 0 : index
    %16 = vector.load %arg6[%c0_12, %c0_13, %c0_14] : memref<1x8x64xf32, #tpu.memory_space<vmem>>, vector<1x8x64xf32>
    tpu.vector_store %arg6[%c0_12, %c0_13, %c0_14], %15 {strides = array<i32>} : memref<1x8x64xf32, #tpu.memory_space<vmem>>, vector<1x8x64xf32>,
    %c0_15 = arith.constant 0 : index
    %c0_16 = arith.constant 0 : index
    %c0_17 = arith.constant 0 : index
    %17 = vector.load %arg7[%c0_15, %c0_16, %c0_17] : memref<1x8x64xf32, #tpu.memory_space<vmem>>, vector<1x8x64xf32>
    %18 = arith.mulf %5, %5 : vector<16x64xf32>
    %cst_18 = arith.constant dense<0.000000e+00> : vector<64xf32>
    %19 = vector.multi_reduction <add>, %18, %cst_18 [0] : vector<16x64xf32> to vector<64xf32>
    %20 = vector.shape_cast %19 : vector<64xf32> to vector<1x64xf32>
    %21 = vector.shape_cast %20 : vector<1x64xf32> to vector<1x1x64xf32>
    %22 = vector.broadcast %21 : vector<1x1x64xf32> to vector<1x8x64xf32>
    %23 = arith.addf %17, %22 : vector<1x8x64xf32>
    %c0_19 = arith.constant 0 : index
    %c0_20 = arith.constant 0 : index
    %c0_21 = arith.constant 0 : index
    %24 = vector.load %arg7[%c0_19, %c0_20, %c0_21] : memref<1x8x64xf32, #tpu.memory_space<vmem>>, vector<1x8x64xf32>
    tpu.vector_store %arg7[%c0_19, %c0_20, %c0_21], %23 {strides = array<i32>} : memref<1x8x64xf32, #tpu.memory_space<vmem>>, vector<1x8x64xf32>,
    return
  }
  func.func @transform_0(%arg0: i32, %arg1: i32) -> (i32, i32) {
    %c1_i32 = arith.constant 1 : i32
    %0 = arith.muli %arg0, %c1_i32 : i32
    %1 = arith.addi %0, %arg1 : i32
    %c0_i32 = arith.constant 0 : i32
    %c0_i32_0 = arith.constant 0 : i32
    return %1, %c0_i32 : i32, i32
  }
  func.func @transform_1(%arg0: i32, %arg1: i32) -> (i32, i32) {
    %c0_i32 = arith.constant 0 : i32
    %c0_i32_0 = arith.constant 0 : i32
    %c0_i32_1 = arith.constant 0 : i32
    return %c0_i32, %c0_i32_0 : i32, i32
  }
  func.func @transform_2(%arg0: i32, %arg1: i32) -> (i32, i32) {
    %c0_i32 = arith.constant 0 : i32
    %c0_i32_0 = arith.constant 0 : i32
    %c0_i32_1 = arith.constant 0 : i32
    return %c0_i32, %c0_i32_0 : i32, i32
  }
  func.func @transform_3(%arg0: i32, %arg1: i32) -> (i32, i32) {
    %c1_i32 = arith.constant 1 : i32
    %0 = arith.muli %arg0, %c1_i32 : i32
    %1 = arith.addi %0, %arg1 : i32
    %c0_i32 = arith.constant 0 : i32
    %c0_i32_0 = arith.constant 0 : i32
    return %1, %c0_i32 : i32, i32
  }
  func.func @transform_4(%arg0: i32, %arg1: i32) -> (i32, i32, i32) {
    %c0_i32 = arith.constant 0 : i32
    %c0_i32_0 = arith.constant 0 : i32
    %c0_i32_1 = arith.constant 0 : i32
    return %arg0, %c0_i32, %c0_i32_0 : i32, i32, i32
  }
  func.func @transform_5(%arg0: i32, %arg1: i32) -> (i32, i32, i32) {
    %c0_i32 = arith.constant 0 : i32
    %c0_i32_0 = arith.constant 0 : i32
    %c0_i32_1 = arith.constant 0 : i32
    return %arg0, %c0_i32, %c0_i32_0 : i32, i32, i32
  }
}

module attributes {stable_mosaic.version = 11 : i64} {
  func.func @bn_conv_stats_kernel(%arg0: i32, %arg1: i32, %arg2: memref<16x64xf32, #tpu.memory_space<vmem>>, %arg3: memref<1x64xf32, #tpu.memory_space<vmem>>, %arg4: memref<1x64xf32, #tpu.memory_space<vmem>>, %arg5: memref<64x128xbf16, #tpu.memory_space<vmem>>, %arg6: memref<1x128xf32, #tpu.memory_space<vmem>>, %arg7: memref<16x128xf32, #tpu.memory_space<vmem>>, %arg8: memref<1x8x128xf32, #tpu.memory_space<vmem>>, %arg9: memref<1x8x128xf32, #tpu.memory_space<vmem>>) attributes {dimension_semantics = [#tpu.dimension_semantics<parallel>, #tpu.dimension_semantics<arbitrary>], iteration_bounds = array<i64: 2, 1>, scalar_prefetch = 0 : i64, scratch_operands = 0 : i64, tpu.core_type = #tpu.core_type<tc>, window_params = [{transform_indices = @transform_0, window_bounds = array<i64: 16, 64>}, {pipeline_mode = #tpu.pipeline_mode<synchronous>, transform_indices = @transform_1, window_bounds = array<i64: 1, 64>}, {pipeline_mode = #tpu.pipeline_mode<synchronous>, transform_indices = @transform_2, window_bounds = array<i64: 1, 64>}, {pipeline_mode = #tpu.pipeline_mode<synchronous>, transform_indices = @transform_3, window_bounds = array<i64: 64, 128>}, {pipeline_mode = #tpu.pipeline_mode<synchronous>, transform_indices = @transform_4, window_bounds = array<i64: 1, 128>}, {transform_indices = @transform_5, window_bounds = array<i64: 16, 128>}, {transform_indices = @transform_6, window_bounds = array<i64: 1, 8, 128>}, {transform_indices = @transform_7, window_bounds = array<i64: 1, 8, 128>}]} {
    %c0 = arith.constant 0 : index
    %c0_0 = arith.constant 0 : index
    %0 = vector.load %arg2[%c0, %c0_0] : memref<16x64xf32, #tpu.memory_space<vmem>>, vector<16x64xf32>
    %c0_1 = arith.constant 0 : index
    %c0_2 = arith.constant 0 : index
    %1 = vector.load %arg3[%c0_1, %c0_2] : memref<1x64xf32, #tpu.memory_space<vmem>>, vector<1x64xf32>
    %2 = vector.broadcast %1 : vector<1x64xf32> to vector<16x64xf32>
    %3 = arith.mulf %0, %2 : vector<16x64xf32>
    %c0_3 = arith.constant 0 : index
    %c0_4 = arith.constant 0 : index
    %4 = vector.load %arg4[%c0_3, %c0_4] : memref<1x64xf32, #tpu.memory_space<vmem>>, vector<1x64xf32>
    %5 = vector.broadcast %4 : vector<1x64xf32> to vector<16x64xf32>
    %6 = arith.addf %3, %5 : vector<16x64xf32>
    %cst = arith.constant 0.000000e+00 : f32
    %7 = vector.broadcast %cst : f32 to vector<16x64xf32>
    %8 = arith.maximumf %6, %7 : vector<16x64xf32>
    %9 = arith.truncf %8 : vector<16x64xf32> to vector<16x64xbf16>
    %c0_5 = arith.constant 0 : index
    %c0_6 = arith.constant 0 : index
    %10 = vector.load %arg5[%c0_5, %c0_6] : memref<64x128xbf16, #tpu.memory_space<vmem>>, vector<64x128xbf16>
    %cst_7 = arith.constant dense<0.000000e+00> : vector<16x128xf32>
    %11 = tpu.matmul %9, %10, %cst_7 {dimension_numbers = #tpu.dot_dimension_numbers<[1], [0], [0], [1], [0, 0, 1, 1], [], []>} : vector<16x64xbf16>, vector<64x128xbf16>, vector<16x128xf32> -> vector<16x128xf32>
    %c0_8 = arith.constant 0 : index
    %c0_9 = arith.constant 0 : index
    %12 = vector.load %arg6[%c0_8, %c0_9] : memref<1x128xf32, #tpu.memory_space<vmem>>, vector<1x128xf32>
    %13 = vector.broadcast %12 : vector<1x128xf32> to vector<16x128xf32>
    %14 = arith.addf %11, %13 : vector<16x128xf32>
    %c0_10 = arith.constant 0 : index
    %c0_11 = arith.constant 0 : index
    %15 = vector.load %arg7[%c0_10, %c0_11] : memref<16x128xf32, #tpu.memory_space<vmem>>, vector<16x128xf32>
    tpu.vector_store %arg7[%c0_10, %c0_11], %14 {strides = array<i32>} : memref<16x128xf32, #tpu.memory_space<vmem>>, vector<16x128xf32>,
    %c0_i32 = arith.constant 0 : i32
    %16 = arith.cmpi eq, %arg1, %c0_i32 : i32
    %17 = arith.extui %16 : i1 to i32
    %c0_i32_12 = arith.constant 0 : i32
    %18 = arith.cmpi ne, %17, %c0_i32_12 : i32
    scf.if %18 {
      %cst_27 = arith.constant 0.000000e+00 : f32
      %34 = vector.broadcast %cst_27 : f32 to vector<1x8x128xf32>
      %c0_28 = arith.constant 0 : index
      %c0_29 = arith.constant 0 : index
      %c0_30 = arith.constant 0 : index
      %35 = vector.load %arg8[%c0_28, %c0_29, %c0_30] : memref<1x8x128xf32, #tpu.memory_space<vmem>>, vector<1x8x128xf32>
      tpu.vector_store %arg8[%c0_28, %c0_29, %c0_30], %34 {strides = array<i32>} : memref<1x8x128xf32, #tpu.memory_space<vmem>>, vector<1x8x128xf32>,
      %cst_31 = arith.constant 0.000000e+00 : f32
      %36 = vector.broadcast %cst_31 : f32 to vector<1x8x128xf32>
      %c0_32 = arith.constant 0 : index
      %c0_33 = arith.constant 0 : index
      %c0_34 = arith.constant 0 : index
      %37 = vector.load %arg9[%c0_32, %c0_33, %c0_34] : memref<1x8x128xf32, #tpu.memory_space<vmem>>, vector<1x8x128xf32>
      tpu.vector_store %arg9[%c0_32, %c0_33, %c0_34], %36 {strides = array<i32>} : memref<1x8x128xf32, #tpu.memory_space<vmem>>, vector<1x8x128xf32>,
    } else {
    }
    %c0_13 = arith.constant 0 : index
    %c0_14 = arith.constant 0 : index
    %c0_15 = arith.constant 0 : index
    %19 = vector.load %arg8[%c0_13, %c0_14, %c0_15] : memref<1x8x128xf32, #tpu.memory_space<vmem>>, vector<1x8x128xf32>
    %cst_16 = arith.constant dense<0.000000e+00> : vector<128xf32>
    %20 = vector.multi_reduction <add>, %14, %cst_16 [0] : vector<16x128xf32> to vector<128xf32>
    %21 = vector.shape_cast %20 : vector<128xf32> to vector<1x128xf32>
    %22 = vector.shape_cast %21 : vector<1x128xf32> to vector<1x1x128xf32>
    %23 = vector.broadcast %22 : vector<1x1x128xf32> to vector<1x8x128xf32>
    %24 = arith.addf %19, %23 : vector<1x8x128xf32>
    %c0_17 = arith.constant 0 : index
    %c0_18 = arith.constant 0 : index
    %c0_19 = arith.constant 0 : index
    %25 = vector.load %arg8[%c0_17, %c0_18, %c0_19] : memref<1x8x128xf32, #tpu.memory_space<vmem>>, vector<1x8x128xf32>
    tpu.vector_store %arg8[%c0_17, %c0_18, %c0_19], %24 {strides = array<i32>} : memref<1x8x128xf32, #tpu.memory_space<vmem>>, vector<1x8x128xf32>,
    %c0_20 = arith.constant 0 : index
    %c0_21 = arith.constant 0 : index
    %c0_22 = arith.constant 0 : index
    %26 = vector.load %arg9[%c0_20, %c0_21, %c0_22] : memref<1x8x128xf32, #tpu.memory_space<vmem>>, vector<1x8x128xf32>
    %27 = arith.mulf %14, %14 : vector<16x128xf32>
    %cst_23 = arith.constant dense<0.000000e+00> : vector<128xf32>
    %28 = vector.multi_reduction <add>, %27, %cst_23 [0] : vector<16x128xf32> to vector<128xf32>
    %29 = vector.shape_cast %28 : vector<128xf32> to vector<1x128xf32>
    %30 = vector.shape_cast %29 : vector<1x128xf32> to vector<1x1x128xf32>
    %31 = vector.broadcast %30 : vector<1x1x128xf32> to vector<1x8x128xf32>
    %32 = arith.addf %26, %31 : vector<1x8x128xf32>
    %c0_24 = arith.constant 0 : index
    %c0_25 = arith.constant 0 : index
    %c0_26 = arith.constant 0 : index
    %33 = vector.load %arg9[%c0_24, %c0_25, %c0_26] : memref<1x8x128xf32, #tpu.memory_space<vmem>>, vector<1x8x128xf32>
    tpu.vector_store %arg9[%c0_24, %c0_25, %c0_26], %32 {strides = array<i32>} : memref<1x8x128xf32, #tpu.memory_space<vmem>>, vector<1x8x128xf32>,
    return
  }
  func.func @transform_0(%arg0: i32, %arg1: i32) -> (i32, i32) {
    %c1_i32 = arith.constant 1 : i32
    %0 = arith.muli %arg0, %c1_i32 : i32
    %1 = arith.addi %0, %arg1 : i32
    %c0_i32 = arith.constant 0 : i32
    %c0_i32_0 = arith.constant 0 : i32
    return %1, %c0_i32 : i32, i32
  }
  func.func @transform_1(%arg0: i32, %arg1: i32) -> (i32, i32) {
    %c0_i32 = arith.constant 0 : i32
    %c0_i32_0 = arith.constant 0 : i32
    %c0_i32_1 = arith.constant 0 : i32
    return %c0_i32, %c0_i32_0 : i32, i32
  }
  func.func @transform_2(%arg0: i32, %arg1: i32) -> (i32, i32) {
    %c0_i32 = arith.constant 0 : i32
    %c0_i32_0 = arith.constant 0 : i32
    %c0_i32_1 = arith.constant 0 : i32
    return %c0_i32, %c0_i32_0 : i32, i32
  }
  func.func @transform_3(%arg0: i32, %arg1: i32) -> (i32, i32) {
    %c0_i32 = arith.constant 0 : i32
    %c0_i32_0 = arith.constant 0 : i32
    %c0_i32_1 = arith.constant 0 : i32
    return %c0_i32, %c0_i32_0 : i32, i32
  }
  func.func @transform_4(%arg0: i32, %arg1: i32) -> (i32, i32) {
    %c0_i32 = arith.constant 0 : i32
    %c0_i32_0 = arith.constant 0 : i32
    %c0_i32_1 = arith.constant 0 : i32
    return %c0_i32, %c0_i32_0 : i32, i32
  }
  func.func @transform_5(%arg0: i32, %arg1: i32) -> (i32, i32) {
    %c1_i32 = arith.constant 1 : i32
    %0 = arith.muli %arg0, %c1_i32 : i32
    %1 = arith.addi %0, %arg1 : i32
    %c0_i32 = arith.constant 0 : i32
    %c0_i32_0 = arith.constant 0 : i32
    return %1, %c0_i32 : i32, i32
  }
  func.func @transform_6(%arg0: i32, %arg1: i32) -> (i32, i32, i32) {
    %c0_i32 = arith.constant 0 : i32
    %c0_i32_0 = arith.constant 0 : i32
    %c0_i32_1 = arith.constant 0 : i32
    return %arg0, %c0_i32, %c0_i32_0 : i32, i32, i32
  }
  func.func @transform_7(%arg0: i32, %arg1: i32) -> (i32, i32, i32) {
    %c0_i32 = arith.constant 0 : i32
    %c0_i32_0 = arith.constant 0 : i32
    %c0_i32_1 = arith.constant 0 : i32
    return %arg0, %c0_i32, %c0_i32_0 : i32, i32, i32
  }
}

module attributes {stable_mosaic.version = 11 : i64} {
  func.func @bn_conv_pool_kernel(%arg0: i32, %arg1: i32, %arg2: memref<16x128xf32, #tpu.memory_space<vmem>>, %arg3: memref<1x128xf32, #tpu.memory_space<vmem>>, %arg4: memref<1x128xf32, #tpu.memory_space<vmem>>, %arg5: memref<128x1024xbf16, #tpu.memory_space<vmem>>, %arg6: memref<1x1024xf32, #tpu.memory_space<vmem>>, %arg7: memref<1x8x1024xf32, #tpu.memory_space<vmem>>, %arg8: memref<1x8x1024xf32, #tpu.memory_space<vmem>>, %arg9: memref<1x8x1024xf32, #tpu.memory_space<vmem>>, %arg10: memref<1x8x1024xf32, #tpu.memory_space<vmem>>) attributes {dimension_semantics = [#tpu.dimension_semantics<parallel>, #tpu.dimension_semantics<arbitrary>], iteration_bounds = array<i64: 2, 1>, scalar_prefetch = 0 : i64, scratch_operands = 0 : i64, tpu.core_type = #tpu.core_type<tc>, window_params = [{transform_indices = @transform_0, window_bounds = array<i64: 16, 128>}, {pipeline_mode = #tpu.pipeline_mode<synchronous>, transform_indices = @transform_1, window_bounds = array<i64: 1, 128>}, {pipeline_mode = #tpu.pipeline_mode<synchronous>, transform_indices = @transform_2, window_bounds = array<i64: 1, 128>}, {pipeline_mode = #tpu.pipeline_mode<synchronous>, transform_indices = @transform_3, window_bounds = array<i64: 128, 1024>}, {pipeline_mode = #tpu.pipeline_mode<synchronous>, transform_indices = @transform_4, window_bounds = array<i64: 1, 1024>}, {transform_indices = @transform_5, window_bounds = array<i64: 1, 8, 1024>}, {transform_indices = @transform_6, window_bounds = array<i64: 1, 8, 1024>}, {transform_indices = @transform_7, window_bounds = array<i64: 1, 8, 1024>}, {transform_indices = @transform_8, window_bounds = array<i64: 1, 8, 1024>}]} {
    %c0 = arith.constant 0 : index
    %c0_0 = arith.constant 0 : index
    %0 = vector.load %arg2[%c0, %c0_0] : memref<16x128xf32, #tpu.memory_space<vmem>>, vector<16x128xf32>
    %c0_1 = arith.constant 0 : index
    %c0_2 = arith.constant 0 : index
    %1 = vector.load %arg3[%c0_1, %c0_2] : memref<1x128xf32, #tpu.memory_space<vmem>>, vector<1x128xf32>
    %2 = vector.broadcast %1 : vector<1x128xf32> to vector<16x128xf32>
    %3 = arith.mulf %0, %2 : vector<16x128xf32>
    %c0_3 = arith.constant 0 : index
    %c0_4 = arith.constant 0 : index
    %4 = vector.load %arg4[%c0_3, %c0_4] : memref<1x128xf32, #tpu.memory_space<vmem>>, vector<1x128xf32>
    %5 = vector.broadcast %4 : vector<1x128xf32> to vector<16x128xf32>
    %6 = arith.addf %3, %5 : vector<16x128xf32>
    %cst = arith.constant 0.000000e+00 : f32
    %7 = vector.broadcast %cst : f32 to vector<16x128xf32>
    %8 = arith.maximumf %6, %7 : vector<16x128xf32>
    %9 = arith.truncf %8 : vector<16x128xf32> to vector<16x128xbf16>
    %c0_5 = arith.constant 0 : index
    %c0_6 = arith.constant 0 : index
    %10 = vector.load %arg5[%c0_5, %c0_6] : memref<128x1024xbf16, #tpu.memory_space<vmem>>, vector<128x1024xbf16>
    %cst_7 = arith.constant dense<0.000000e+00> : vector<16x1024xf32>
    %11 = tpu.matmul %9, %10, %cst_7 {dimension_numbers = #tpu.dot_dimension_numbers<[1], [0], [0], [1], [0, 0, 1, 1], [], []>} : vector<16x128xbf16>, vector<128x1024xbf16>, vector<16x1024xf32> -> vector<16x1024xf32>
    %c0_8 = arith.constant 0 : index
    %c0_9 = arith.constant 0 : index
    %12 = vector.load %arg6[%c0_8, %c0_9] : memref<1x1024xf32, #tpu.memory_space<vmem>>, vector<1x1024xf32>
    %13 = vector.broadcast %12 : vector<1x1024xf32> to vector<16x1024xf32>
    %14 = arith.addf %11, %13 : vector<16x1024xf32>
    %c0_i32 = arith.constant 0 : i32
    %15 = arith.cmpi eq, %arg1, %c0_i32 : i32
    %16 = arith.extui %15 : i1 to i32
    %c0_i32_10 = arith.constant 0 : i32
    %17 = arith.cmpi ne, %16, %c0_i32_10 : i32
    scf.if %17 {
      %cst_41 = arith.constant 0xFF800000 : f32
      %50 = vector.broadcast %cst_41 : f32 to vector<1x8x1024xf32>
      %c0_42 = arith.constant 0 : index
      %c0_43 = arith.constant 0 : index
      %c0_44 = arith.constant 0 : index
      %51 = vector.load %arg7[%c0_42, %c0_43, %c0_44] : memref<1x8x1024xf32, #tpu.memory_space<vmem>>, vector<1x8x1024xf32>
      tpu.vector_store %arg7[%c0_42, %c0_43, %c0_44], %50 {strides = array<i32>} : memref<1x8x1024xf32, #tpu.memory_space<vmem>>, vector<1x8x1024xf32>,
      %cst_45 = arith.constant 0x7F800000 : f32
      %52 = vector.broadcast %cst_45 : f32 to vector<1x8x1024xf32>
      %c0_46 = arith.constant 0 : index
      %c0_47 = arith.constant 0 : index
      %c0_48 = arith.constant 0 : index
      %53 = vector.load %arg8[%c0_46, %c0_47, %c0_48] : memref<1x8x1024xf32, #tpu.memory_space<vmem>>, vector<1x8x1024xf32>
      tpu.vector_store %arg8[%c0_46, %c0_47, %c0_48], %52 {strides = array<i32>} : memref<1x8x1024xf32, #tpu.memory_space<vmem>>, vector<1x8x1024xf32>,
    } else {
    }
    %c0_11 = arith.constant 0 : index
    %c0_12 = arith.constant 0 : index
    %c0_13 = arith.constant 0 : index
    %18 = vector.load %arg7[%c0_11, %c0_12, %c0_13] : memref<1x8x1024xf32, #tpu.memory_space<vmem>>, vector<1x8x1024xf32>
    %cst_14 = arith.constant dense<0xFF800000> : vector<1024xf32>
    %19 = vector.multi_reduction <maximumf>, %14, %cst_14 [0] : vector<16x1024xf32> to vector<1024xf32>
    %20 = vector.shape_cast %19 : vector<1024xf32> to vector<1x1024xf32>
    %21 = vector.shape_cast %20 : vector<1x1024xf32> to vector<1x1x1024xf32>
    %22 = vector.broadcast %21 : vector<1x1x1024xf32> to vector<1x8x1024xf32>
    %23 = arith.maximumf %18, %22 : vector<1x8x1024xf32>
    %c0_15 = arith.constant 0 : index
    %c0_16 = arith.constant 0 : index
    %c0_17 = arith.constant 0 : index
    %24 = vector.load %arg7[%c0_15, %c0_16, %c0_17] : memref<1x8x1024xf32, #tpu.memory_space<vmem>>, vector<1x8x1024xf32>
    tpu.vector_store %arg7[%c0_15, %c0_16, %c0_17], %23 {strides = array<i32>} : memref<1x8x1024xf32, #tpu.memory_space<vmem>>, vector<1x8x1024xf32>,
    %c0_18 = arith.constant 0 : index
    %c0_19 = arith.constant 0 : index
    %c0_20 = arith.constant 0 : index
    %25 = vector.load %arg8[%c0_18, %c0_19, %c0_20] : memref<1x8x1024xf32, #tpu.memory_space<vmem>>, vector<1x8x1024xf32>
    %cst_21 = arith.constant dense<0x7F800000> : vector<1024xf32>
    %26 = vector.multi_reduction <minimumf>, %14, %cst_21 [0] : vector<16x1024xf32> to vector<1024xf32>
    %27 = vector.shape_cast %26 : vector<1024xf32> to vector<1x1024xf32>
    %28 = vector.shape_cast %27 : vector<1x1024xf32> to vector<1x1x1024xf32>
    %29 = vector.broadcast %28 : vector<1x1x1024xf32> to vector<1x8x1024xf32>
    %30 = arith.minimumf %25, %29 : vector<1x8x1024xf32>
    %c0_22 = arith.constant 0 : index
    %c0_23 = arith.constant 0 : index
    %c0_24 = arith.constant 0 : index
    %31 = vector.load %arg8[%c0_22, %c0_23, %c0_24] : memref<1x8x1024xf32, #tpu.memory_space<vmem>>, vector<1x8x1024xf32>
    tpu.vector_store %arg8[%c0_22, %c0_23, %c0_24], %30 {strides = array<i32>} : memref<1x8x1024xf32, #tpu.memory_space<vmem>>, vector<1x8x1024xf32>,
    %c0_i32_25 = arith.constant 0 : i32
    %32 = arith.cmpi eq, %arg1, %c0_i32_25 : i32
    %33 = arith.extui %32 : i1 to i32
    %c0_i32_26 = arith.constant 0 : i32
    %34 = arith.cmpi ne, %33, %c0_i32_26 : i32
    scf.if %34 {
      %cst_41 = arith.constant 0.000000e+00 : f32
      %50 = vector.broadcast %cst_41 : f32 to vector<1x8x1024xf32>
      %c0_42 = arith.constant 0 : index
      %c0_43 = arith.constant 0 : index
      %c0_44 = arith.constant 0 : index
      %51 = vector.load %arg9[%c0_42, %c0_43, %c0_44] : memref<1x8x1024xf32, #tpu.memory_space<vmem>>, vector<1x8x1024xf32>
      tpu.vector_store %arg9[%c0_42, %c0_43, %c0_44], %50 {strides = array<i32>} : memref<1x8x1024xf32, #tpu.memory_space<vmem>>, vector<1x8x1024xf32>,
      %cst_45 = arith.constant 0.000000e+00 : f32
      %52 = vector.broadcast %cst_45 : f32 to vector<1x8x1024xf32>
      %c0_46 = arith.constant 0 : index
      %c0_47 = arith.constant 0 : index
      %c0_48 = arith.constant 0 : index
      %53 = vector.load %arg10[%c0_46, %c0_47, %c0_48] : memref<1x8x1024xf32, #tpu.memory_space<vmem>>, vector<1x8x1024xf32>
      tpu.vector_store %arg10[%c0_46, %c0_47, %c0_48], %52 {strides = array<i32>} : memref<1x8x1024xf32, #tpu.memory_space<vmem>>, vector<1x8x1024xf32>,
    } else {
    }
    %c0_27 = arith.constant 0 : index
    %c0_28 = arith.constant 0 : index
    %c0_29 = arith.constant 0 : index
    %35 = vector.load %arg9[%c0_27, %c0_28, %c0_29] : memref<1x8x1024xf32, #tpu.memory_space<vmem>>, vector<1x8x1024xf32>
    %cst_30 = arith.constant dense<0.000000e+00> : vector<1024xf32>
    %36 = vector.multi_reduction <add>, %14, %cst_30 [0] : vector<16x1024xf32> to vector<1024xf32>
    %37 = vector.shape_cast %36 : vector<1024xf32> to vector<1x1024xf32>
    %38 = vector.shape_cast %37 : vector<1x1024xf32> to vector<1x1x1024xf32>
    %39 = vector.broadcast %38 : vector<1x1x1024xf32> to vector<1x8x1024xf32>
    %40 = arith.addf %35, %39 : vector<1x8x1024xf32>
    %c0_31 = arith.constant 0 : index
    %c0_32 = arith.constant 0 : index
    %c0_33 = arith.constant 0 : index
    %41 = vector.load %arg9[%c0_31, %c0_32, %c0_33] : memref<1x8x1024xf32, #tpu.memory_space<vmem>>, vector<1x8x1024xf32>
    tpu.vector_store %arg9[%c0_31, %c0_32, %c0_33], %40 {strides = array<i32>} : memref<1x8x1024xf32, #tpu.memory_space<vmem>>, vector<1x8x1024xf32>,
    %c0_34 = arith.constant 0 : index
    %c0_35 = arith.constant 0 : index
    %c0_36 = arith.constant 0 : index
    %42 = vector.load %arg10[%c0_34, %c0_35, %c0_36] : memref<1x8x1024xf32, #tpu.memory_space<vmem>>, vector<1x8x1024xf32>
    %43 = arith.mulf %14, %14 : vector<16x1024xf32>
    %cst_37 = arith.constant dense<0.000000e+00> : vector<1024xf32>
    %44 = vector.multi_reduction <add>, %43, %cst_37 [0] : vector<16x1024xf32> to vector<1024xf32>
    %45 = vector.shape_cast %44 : vector<1024xf32> to vector<1x1024xf32>
    %46 = vector.shape_cast %45 : vector<1x1024xf32> to vector<1x1x1024xf32>
    %47 = vector.broadcast %46 : vector<1x1x1024xf32> to vector<1x8x1024xf32>
    %48 = arith.addf %42, %47 : vector<1x8x1024xf32>
    %c0_38 = arith.constant 0 : index
    %c0_39 = arith.constant 0 : index
    %c0_40 = arith.constant 0 : index
    %49 = vector.load %arg10[%c0_38, %c0_39, %c0_40] : memref<1x8x1024xf32, #tpu.memory_space<vmem>>, vector<1x8x1024xf32>
    tpu.vector_store %arg10[%c0_38, %c0_39, %c0_40], %48 {strides = array<i32>} : memref<1x8x1024xf32, #tpu.memory_space<vmem>>, vector<1x8x1024xf32>,
    return
  }
  func.func @transform_0(%arg0: i32, %arg1: i32) -> (i32, i32) {
    %c1_i32 = arith.constant 1 : i32
    %0 = arith.muli %arg0, %c1_i32 : i32
    %1 = arith.addi %0, %arg1 : i32
    %c0_i32 = arith.constant 0 : i32
    %c0_i32_0 = arith.constant 0 : i32
    return %1, %c0_i32 : i32, i32
  }
  func.func @transform_1(%arg0: i32, %arg1: i32) -> (i32, i32) {
    %c0_i32 = arith.constant 0 : i32
    %c0_i32_0 = arith.constant 0 : i32
    %c0_i32_1 = arith.constant 0 : i32
    return %c0_i32, %c0_i32_0 : i32, i32
  }
  func.func @transform_2(%arg0: i32, %arg1: i32) -> (i32, i32) {
    %c0_i32 = arith.constant 0 : i32
    %c0_i32_0 = arith.constant 0 : i32
    %c0_i32_1 = arith.constant 0 : i32
    return %c0_i32, %c0_i32_0 : i32, i32
  }
  func.func @transform_3(%arg0: i32, %arg1: i32) -> (i32, i32) {
    %c0_i32 = arith.constant 0 : i32
    %c0_i32_0 = arith.constant 0 : i32
    %c0_i32_1 = arith.constant 0 : i32
    return %c0_i32, %c0_i32_0 : i32, i32
  }
  func.func @transform_4(%arg0: i32, %arg1: i32) -> (i32, i32) {
    %c0_i32 = arith.constant 0 : i32
    %c0_i32_0 = arith.constant 0 : i32
    %c0_i32_1 = arith.constant 0 : i32
    return %c0_i32, %c0_i32_0 : i32, i32
  }
  func.func @transform_5(%arg0: i32, %arg1: i32) -> (i32, i32, i32) {
    %c0_i32 = arith.constant 0 : i32
    %c0_i32_0 = arith.constant 0 : i32
    %c0_i32_1 = arith.constant 0 : i32
    return %arg0, %c0_i32, %c0_i32_0 : i32, i32, i32
  }
  func.func @transform_6(%arg0: i32, %arg1: i32) -> (i32, i32, i32) {
    %c0_i32 = arith.constant 0 : i32
    %c0_i32_0 = arith.constant 0 : i32
    %c0_i32_1 = arith.constant 0 : i32
    return %arg0, %c0_i32, %c0_i32_0 : i32, i32, i32
  }
  func.func @transform_7(%arg0: i32, %arg1: i32) -> (i32, i32, i32) {
    %c0_i32 = arith.constant 0 : i32
    %c0_i32_0 = arith.constant 0 : i32
    %c0_i32_1 = arith.constant 0 : i32
    return %arg0, %c0_i32, %c0_i32_0 : i32, i32, i32
  }
  func.func @transform_8(%arg0: i32, %arg1: i32) -> (i32, i32, i32) {
    %c0_i32 = arith.constant 0 : i32
    %c0_i32_0 = arith.constant 0 : i32
    %c0_i32_1 = arith.constant 0 : i32
    return %arg0, %c0_i32, %c0_i32_0 : i32, i32, i32
  }
}

module attributes {stable_mosaic.version = 11 : i64} {
  func.func @head_kernel(%arg0: memref<2x1024xf32, #tpu.memory_space<vmem>>, %arg1: memref<2x1024xf32, #tpu.memory_space<vmem>>, %arg2: memref<1x1024xf32, #tpu.memory_space<vmem>>, %arg3: memref<1x1024xf32, #tpu.memory_space<vmem>>, %arg4: memref<1024x512xbf16, #tpu.memory_space<vmem>>, %arg5: memref<1x512xf32, #tpu.memory_space<vmem>>, %arg6: memref<1x512xf32, #tpu.memory_space<vmem>>, %arg7: memref<1x512xf32, #tpu.memory_space<vmem>>, %arg8: memref<512x256xbf16, #tpu.memory_space<vmem>>, %arg9: memref<1x256xf32, #tpu.memory_space<vmem>>, %arg10: memref<1x256xf32, #tpu.memory_space<vmem>>, %arg11: memref<1x256xf32, #tpu.memory_space<vmem>>, %arg12: memref<256x9xf32, #tpu.memory_space<vmem>>, %arg13: memref<1x9xf32, #tpu.memory_space<vmem>>, %arg14: memref<1x9xf32, #tpu.memory_space<vmem>>, %arg15: memref<2x9xf32, #tpu.memory_space<vmem>>) attributes {dimension_semantics = [], scalar_prefetch = 0 : i64, scratch_operands = 0 : i64, tpu.core_type = #tpu.core_type<tc>} {
    %c0 = arith.constant 0 : index
    %c0_0 = arith.constant 0 : index
    %0 = vector.load %arg2[%c0, %c0_0] : memref<1x1024xf32, #tpu.memory_space<vmem>>, vector<1x1024xf32>
    %c0_1 = arith.constant 0 : index
    %c0_2 = arith.constant 0 : index
    %1 = vector.load %arg3[%c0_1, %c0_2] : memref<1x1024xf32, #tpu.memory_space<vmem>>, vector<1x1024xf32>
    %cst = arith.constant 0.000000e+00 : f32
    %2 = vector.broadcast %cst : f32 to vector<1x1024xf32>
    %3 = arith.cmpf oge, %0, %2 : vector<1x1024xf32>
    %c0_3 = arith.constant 0 : index
    %c0_4 = arith.constant 0 : index
    %4 = vector.load %arg0[%c0_3, %c0_4] : memref<2x1024xf32, #tpu.memory_space<vmem>>, vector<2x1024xf32>
    %5 = vector.broadcast %0 : vector<1x1024xf32> to vector<2x1024xf32>
    %6 = arith.mulf %4, %5 : vector<2x1024xf32>
    %c0_5 = arith.constant 0 : index
    %c0_6 = arith.constant 0 : index
    %7 = vector.load %arg1[%c0_5, %c0_6] : memref<2x1024xf32, #tpu.memory_space<vmem>>, vector<2x1024xf32>
    %8 = vector.broadcast %0 : vector<1x1024xf32> to vector<2x1024xf32>
    %9 = arith.mulf %7, %8 : vector<2x1024xf32>
    %10 = vector.shape_cast %3 : vector<1x1024xi1> to vector<1x1024xi1>
    %11 = vector.broadcast %10 : vector<1x1024xi1> to vector<2x1024xi1>
    %12 = arith.select %11, %6, %9 : vector<2x1024xi1>, vector<2x1024xf32>
    %13 = vector.broadcast %1 : vector<1x1024xf32> to vector<2x1024xf32>
    %14 = arith.addf %12, %13 : vector<2x1024xf32>
    %cst_7 = arith.constant 0.000000e+00 : f32
    %15 = vector.broadcast %cst_7 : f32 to vector<2x1024xf32>
    %16 = arith.maximumf %14, %15 : vector<2x1024xf32>
    %17 = arith.truncf %16 : vector<2x1024xf32> to vector<2x1024xbf16>
    %c0_8 = arith.constant 0 : index
    %c0_9 = arith.constant 0 : index
    %18 = vector.load %arg4[%c0_8, %c0_9] : memref<1024x512xbf16, #tpu.memory_space<vmem>>, vector<1024x512xbf16>
    %cst_10 = arith.constant dense<0.000000e+00> : vector<2x512xf32>
    %19 = tpu.matmul %17, %18, %cst_10 {dimension_numbers = #tpu.dot_dimension_numbers<[1], [0], [0], [1], [0, 0, 1, 1], [], []>} : vector<2x1024xbf16>, vector<1024x512xbf16>, vector<2x512xf32> -> vector<2x512xf32>
    %c0_11 = arith.constant 0 : index
    %c0_12 = arith.constant 0 : index
    %20 = vector.load %arg5[%c0_11, %c0_12] : memref<1x512xf32, #tpu.memory_space<vmem>>, vector<1x512xf32>
    %21 = vector.broadcast %20 : vector<1x512xf32> to vector<2x512xf32>
    %22 = arith.addf %19, %21 : vector<2x512xf32>
    %c0_13 = arith.constant 0 : index
    %c0_14 = arith.constant 0 : index
    %23 = vector.load %arg6[%c0_13, %c0_14] : memref<1x512xf32, #tpu.memory_space<vmem>>, vector<1x512xf32>
    %c0_15 = arith.constant 0 : index
    %c0_16 = arith.constant 0 : index
    %24 = vector.load %arg7[%c0_15, %c0_16] : memref<1x512xf32, #tpu.memory_space<vmem>>, vector<1x512xf32>
    %cst_17 = arith.constant dense<0.000000e+00> : vector<512xf32>
    %25 = vector.multi_reduction <add>, %22, %cst_17 [0] : vector<2x512xf32> to vector<512xf32>
    %26 = vector.shape_cast %25 : vector<512xf32> to vector<1x512xf32>
    %cst_18 = arith.constant 5.000000e-01 : f32
    %27 = vector.broadcast %cst_18 : f32 to vector<1x512xf32>
    %28 = arith.mulf %26, %27 : vector<1x512xf32>
    %29 = arith.mulf %22, %22 : vector<2x512xf32>
    %cst_19 = arith.constant dense<0.000000e+00> : vector<512xf32>
    %30 = vector.multi_reduction <add>, %29, %cst_19 [0] : vector<2x512xf32> to vector<512xf32>
    %31 = vector.shape_cast %30 : vector<512xf32> to vector<1x512xf32>
    %cst_20 = arith.constant 5.000000e-01 : f32
    %32 = vector.broadcast %cst_20 : f32 to vector<1x512xf32>
    %33 = arith.mulf %31, %32 : vector<1x512xf32>
    %34 = arith.mulf %28, %28 : vector<1x512xf32>
    %35 = arith.subf %33, %34 : vector<1x512xf32>
    %cst_21 = arith.constant 0.000000e+00 : f32
    %36 = vector.broadcast %cst_21 : f32 to vector<1x512xf32>
    %37 = arith.maximumf %35, %36 : vector<1x512xf32>
    %cst_22 = arith.constant 9.99999974E-6 : f32
    %38 = vector.broadcast %cst_22 : f32 to vector<1x512xf32>
    %39 = arith.addf %37, %38 : vector<1x512xf32>
    %40 = math.rsqrt %39 : vector<1x512xf32>
    %41 = arith.mulf %23, %40 : vector<1x512xf32>
    %42 = arith.mulf %28, %41 : vector<1x512xf32>
    %43 = arith.subf %24, %42 : vector<1x512xf32>
    %44 = vector.broadcast %41 : vector<1x512xf32> to vector<2x512xf32>
    %45 = arith.mulf %22, %44 : vector<2x512xf32>
    %46 = vector.broadcast %43 : vector<1x512xf32> to vector<2x512xf32>
    %47 = arith.addf %45, %46 : vector<2x512xf32>
    %cst_23 = arith.constant 0.000000e+00 : f32
    %48 = vector.broadcast %cst_23 : f32 to vector<2x512xf32>
    %49 = arith.maximumf %47, %48 : vector<2x512xf32>
    %50 = arith.truncf %49 : vector<2x512xf32> to vector<2x512xbf16>
    %c0_24 = arith.constant 0 : index
    %c0_25 = arith.constant 0 : index
    %51 = vector.load %arg8[%c0_24, %c0_25] : memref<512x256xbf16, #tpu.memory_space<vmem>>, vector<512x256xbf16>
    %cst_26 = arith.constant dense<0.000000e+00> : vector<2x256xf32>
    %52 = tpu.matmul %50, %51, %cst_26 {dimension_numbers = #tpu.dot_dimension_numbers<[1], [0], [0], [1], [0, 0, 1, 1], [], []>} : vector<2x512xbf16>, vector<512x256xbf16>, vector<2x256xf32> -> vector<2x256xf32>
    %c0_27 = arith.constant 0 : index
    %c0_28 = arith.constant 0 : index
    %53 = vector.load %arg9[%c0_27, %c0_28] : memref<1x256xf32, #tpu.memory_space<vmem>>, vector<1x256xf32>
    %54 = vector.broadcast %53 : vector<1x256xf32> to vector<2x256xf32>
    %55 = arith.addf %52, %54 : vector<2x256xf32>
    %c0_29 = arith.constant 0 : index
    %c0_30 = arith.constant 0 : index
    %56 = vector.load %arg10[%c0_29, %c0_30] : memref<1x256xf32, #tpu.memory_space<vmem>>, vector<1x256xf32>
    %c0_31 = arith.constant 0 : index
    %c0_32 = arith.constant 0 : index
    %57 = vector.load %arg11[%c0_31, %c0_32] : memref<1x256xf32, #tpu.memory_space<vmem>>, vector<1x256xf32>
    %cst_33 = arith.constant dense<0.000000e+00> : vector<256xf32>
    %58 = vector.multi_reduction <add>, %55, %cst_33 [0] : vector<2x256xf32> to vector<256xf32>
    %59 = vector.shape_cast %58 : vector<256xf32> to vector<1x256xf32>
    %cst_34 = arith.constant 5.000000e-01 : f32
    %60 = vector.broadcast %cst_34 : f32 to vector<1x256xf32>
    %61 = arith.mulf %59, %60 : vector<1x256xf32>
    %62 = arith.mulf %55, %55 : vector<2x256xf32>
    %cst_35 = arith.constant dense<0.000000e+00> : vector<256xf32>
    %63 = vector.multi_reduction <add>, %62, %cst_35 [0] : vector<2x256xf32> to vector<256xf32>
    %64 = vector.shape_cast %63 : vector<256xf32> to vector<1x256xf32>
    %cst_36 = arith.constant 5.000000e-01 : f32
    %65 = vector.broadcast %cst_36 : f32 to vector<1x256xf32>
    %66 = arith.mulf %64, %65 : vector<1x256xf32>
    %67 = arith.mulf %61, %61 : vector<1x256xf32>
    %68 = arith.subf %66, %67 : vector<1x256xf32>
    %cst_37 = arith.constant 0.000000e+00 : f32
    %69 = vector.broadcast %cst_37 : f32 to vector<1x256xf32>
    %70 = arith.maximumf %68, %69 : vector<1x256xf32>
    %cst_38 = arith.constant 9.99999974E-6 : f32
    %71 = vector.broadcast %cst_38 : f32 to vector<1x256xf32>
    %72 = arith.addf %70, %71 : vector<1x256xf32>
    %73 = math.rsqrt %72 : vector<1x256xf32>
    %74 = arith.mulf %56, %73 : vector<1x256xf32>
    %75 = arith.mulf %61, %74 : vector<1x256xf32>
    %76 = arith.subf %57, %75 : vector<1x256xf32>
    %77 = vector.broadcast %74 : vector<1x256xf32> to vector<2x256xf32>
    %78 = arith.mulf %55, %77 : vector<2x256xf32>
    %79 = vector.broadcast %76 : vector<1x256xf32> to vector<2x256xf32>
    %80 = arith.addf %78, %79 : vector<2x256xf32>
    %cst_39 = arith.constant 0.000000e+00 : f32
    %81 = vector.broadcast %cst_39 : f32 to vector<2x256xf32>
    %82 = arith.maximumf %80, %81 : vector<2x256xf32>
    %c0_40 = arith.constant 0 : index
    %c0_41 = arith.constant 0 : index
    %83 = vector.load %arg12[%c0_40, %c0_41] : memref<256x9xf32, #tpu.memory_space<vmem>>, vector<256x9xf32>
    %cst_42 = arith.constant dense<0.000000e+00> : vector<2x9xf32>
    %84 = tpu.matmul %82, %83, %cst_42 {dimension_numbers = #tpu.dot_dimension_numbers<[1], [0], [0], [1], [0, 0, 1, 1], [], []>} : vector<2x256xf32>, vector<256x9xf32>, vector<2x9xf32> -> vector<2x9xf32>
    %c0_43 = arith.constant 0 : index
    %c0_44 = arith.constant 0 : index
    %85 = vector.load %arg13[%c0_43, %c0_44] : memref<1x9xf32, #tpu.memory_space<vmem>>, vector<1x9xf32>
    %86 = vector.broadcast %85 : vector<1x9xf32> to vector<2x9xf32>
    %87 = arith.addf %84, %86 : vector<2x9xf32>
    %c0_45 = arith.constant 0 : index
    %c0_46 = arith.constant 0 : index
    %88 = vector.load %arg14[%c0_45, %c0_46] : memref<1x9xf32, #tpu.memory_space<vmem>>, vector<1x9xf32>
    %89 = vector.broadcast %88 : vector<1x9xf32> to vector<2x9xf32>
    %90 = arith.addf %87, %89 : vector<2x9xf32>
    %c0_47 = arith.constant 0 : index
    %c0_48 = arith.constant 0 : index
    %91 = vector.load %arg15[%c0_47, %c0_48] : memref<2x9xf32, #tpu.memory_space<vmem>>, vector<2x9xf32>
    tpu.vector_store %arg15[%c0_47, %c0_48], %90 {strides = array<i32>} : memref<2x9xf32, #tpu.memory_space<vmem>>, vector<2x9xf32>,
    return
  }
}

</mosaic_0001>

<bundles_post_ra>
// kernel: _lambda_.4
= control target key start
LH: loop header
LB: loop body
LE: loop exit
PB: predicated region body
PF: predicated region fallthrough
CT: control target
= control target key end

     0   :  { %s639_s18 = smov 0   ;;  %s641_s19 = smov 0   ;;  %s704_s0 = inlined_call_operand.vmem [shape: f32[32,3], index: 0, kind: input, shape index: {}]   ;;  %s705_s1 = inlined_call_operand.vmem [shape: f32[3,64], index: 1, kind: input, shape index: {}]   ;;  %s706_s2 = inlined_call_operand.vmem [shape: f32[1,64], index: 2, kind: input, shape index: {}]   ;;  %s707_s3 = inlined_call_operand.vmem [shape: f32[32,64], index: 3, kind: output, shape index: {0}]   ;;  %s708_s4 = inlined_call_operand.vmem [shape: f32[2,8,64], index: 4, kind: output, shape index: {1}]   ;;  %s709_s5 = inlined_call_operand.vmem [shape: f32[2,8,64], index: 5, kind: output, shape index: {2}]  }
   0x1   :  { %s643_s20 = smov 0  }
   0x2 LB: > { %s28_s21 = sadd.s32 1, %s602_s19  ;;  %p538_p0 = scmp.ge.s32.totalorder %s606_s20, 1  ;;  %s606_s20 = sphi %s643_s20, %s16_s20   ;;  %s602_s19 = sphi %s641_s19, %s711_s19   ;;  %s598_s18 = sphi %s639_s18, %s710_s18  }
   0x3   : > { %p30_p1 = scmp.ge.s32.totalorder %s28_s21, 2  ;;  %p211_p2 = scmp.lt.s32.totalorder %s606_s20, 3 }
   0x5   : > { %s713_s21 = smov (%p30_p1, %s28_s21), 0  ;;  %p212_p3 = pnand %p538_p0, %p211_p2 }
   0x6   : > { %v275_v0 = vld [vmem:[%s705_s1] sm:$0x7] (!%p212_p3)  ;;  %vm290_vm0 = vcmask (!%p212_p3), 1042432   ;;  %s539_s24 = sshll.u32 (!%p212_p3), %s598_s18, 1  ;;  %vm283_vm1 = vcmask (!%p212_p3), 23552   ;;  %p265_p5 = scmp.lt.s32.totalorder (!%p212_p3), %s598_s18, 1 }
   0x7   : > { %215 = sbr.rel (%p212_p3) target bundleno = 254 (0xfe), region = 32  ;;  %554 = vmatprep.subr.msk.mxu0 (!%p212_p3), %vm290_vm0, %v275_v0  ;;  %p251_p4 = scmp.lt.s32.totalorder (!%p212_p3), %s539_s24, 3  ;;  %vm369_vm2 = vcmask (!%p212_p3), 523264   ;;  %v608_v3 = vmov (!%p212_p3), 0.0   ;;  %v545_v4 = vld [vmem:[%s706_s2] ss:$0 sm:$0xff] (!%p212_p3) }
   0x8   : > { %555 = vmatpush3.msk.msra.mxu0 (!%p212_p3), %vm290_vm0, %v275_v0 }
   0xe   : > { %s715_s24 = smov (!%p251_p4, %s539_s24), 3  ;;  %s717_s18 = smov (!%p265_p5, %s598_s18), 1 }
   0xf   : > { %s540_s25 = sshll.u32 %s715_s24, 3  ;;  %s543_s29 = sshll.u32 %s717_s18, 3 }
  0x10   : > { %s254_s28 = scalar_lea.vmem %s704_s0, %s540_s25  ;;  %s666_s7 = scalar_lea.vmem %s708_s4, %s543_s29 }
  0x11   : > { %v273_v1 = vld [vmem:[%s254_s28] sm:$0xff]  ;;  %v274_v2 = vld [vmem:[%s254_s28 + $0x8] sm:$0xff]  ;;  %s671_s10 = scalar_lea.vmem %s709_s5, %s543_s29  ;;  %376 = vst.msk [vmem:[%s666_s7] sm:$0xff] %vm369_vm2, %v608_v3  ;;  %s262_s15 = scalar_lea.vmem %s707_s3, %s540_s25 }
  0x12   : > { %556 = vmatprep.mubr.msk.f32.mxu0 %vm283_vm1, %v273_v1  ;;  %377 = vst.msk [vmem:[%s671_s10] sm:$0xff] %vm369_vm2, %v608_v3 }
  0x13   : > { %557 = vmatmul.mubr.msk.f32.vlgmr.msra.gmra.mrb[0].mxu0 %vm283_vm1, %v274_v2 }
  0x18   : > { %v378_v26 = vld [vmem:[%s666_s7] sm:$0xff] }
  0x19   : > { %v390_v29 = vld [vmem:[%s671_s10] sm:$0xff] }
  0xe6   : > { %v558_v5 = vpop.f32.mrb[0].mxu0 }
  0xe7   : > { %v366_v6 = vadd.f32 %v558_v5, %v545_v4  ;;  %v360_v7 = vpop.f32.mrb[1].mxu0 }
  0xe8   : > { %v361_v8 = vadd.f32 %v545_v4, %v360_v7 }
  0xe9   : > { %v380_v9 = vsel %vm369_vm2, %v366_v6, 0.0  ;;  %v392_v10 = vmul.f32 %v366_v6, %v366_v6  ;;  %371 = vst.msk [vmem:[%s262_s15 + $0x8] sm:$0xff] %vm369_vm2, %v366_v6 }
  0xea   : > { %370 = vst.msk [vmem:[%s262_s15] sm:$0xff] %vm369_vm2, %v361_v8  ;;  %v379_v11 = vsel %vm369_vm2, %v361_v8, 0.0  ;;  %v391_v12 = vmul.f32 %v361_v8, %v361_v8 }
  0xeb   : > { %v394_v13 = vsel %vm369_vm2, %v392_v10, 0.0  ;;  %v381_v14 = vadd.f32 %v380_v9, %v379_v11 }
  0xec   : > { %v393_v15 = vsel %vm369_vm2, %v391_v12, 0.0 }
  0xed   : > { %v382_v16 = vrot.slane %v381_v14, 4  ;;  %v395_v17 = vadd.f32 %v394_v13, %v393_v15 }
  0xef   : > { %v383_v18 = vadd.f32 %v382_v16, %v381_v14  ;;  %v396_v19 = vrot.slane %v395_v17, 4 }
  0xf1   : > { %v384_v20 = vrot.slane %v383_v18, 2  ;;  %v397_v21 = vadd.f32 %v396_v19, %v395_v17 }
  0xf3   : > { %v385_v22 = vadd.f32 %v384_v20, %v383_v18  ;;  %v398_v23 = vrot.slane %v397_v21, 2 }
  0xf5   : > { %v386_v24 = vrot.slane %v385_v22, 1  ;;  %v399_v25 = vadd.f32 %v398_v23, %v397_v21 }
  0xf7   : > { %v387_v27 = vadd.f32 %v386_v24, %v385_v22  ;;  %v400_v28 = vrot.slane %v399_v25, 1 }
  0xf9   : > { %v388_v30 = vadd.f32 %v387_v27, %v378_v26  ;;  %v401_v31 = vadd.f32 %v400_v28, %v399_v25 }
  0xfb   : > { %389 = vst.msk [vmem:[%s666_s7] sm:$0xff] %vm369_vm2, %v388_v30  ;;  %v402_v32 = vadd.f32 %v401_v31, %v390_v29 }
  0xfd   : > { %403 = vst.msk [vmem:[%s671_s10] sm:$0xff] %vm369_vm2, %v402_v32 }
  0xfe PF: > { %s16_s20 = sadd.s32 1, %s606_s20   ;;  %s710_s18 = smov %s602_s19 }
  0xff   : > { %p13_p6 = scmp.ge.s32.totalorder %s16_s20, 4   ;;  %s711_s19 = smov %s713_s21 }
 0x101   :  { %15 = sbr.rel (!%p13_p6) target bundleno = 2 (0x2), region = 90 }

// kernel: _lambda_.5
= control target key start
LH: loop header
LB: loop body
LE: loop exit
PB: predicated region body
PF: predicated region fallthrough
CT: control target
= control target key end

     0   :  { %s729_s24 = smov 0   ;;  %s731_s25 = smov 0   ;;  %s794_s0 = inlined_call_operand.vmem [shape: f32[32,64], index: 0, kind: input, shape index: {}]   ;;  %s795_s1 = inlined_call_operand.vmem [shape: f32[1,64], index: 1, kind: input, shape index: {}]   ;;  %s796_s2 = inlined_call_operand.vmem [shape: f32[1,64], index: 2, kind: input, shape index: {}]   ;;  %s797_s3 = inlined_call_operand.vmem [shape: bf16[64,128], index: 3, kind: input, shape index: {}]   ;;  %s798_s4 = inlined_call_operand.vmem [shape: f32[1,128], index: 4, kind: input, shape index: {}]   ;;  %s799_s5 = inlined_call_operand.vmem [shape: f32[32,128], index: 5, kind: output, shape index: {0}]   ;;  %s800_s6 = inlined_call_operand.vmem [shape: f32[2,8,128], index: 6, kind: output, shape index: {1}]   ;;  %s801_s7 = inlined_call_operand.vmem [shape: f32[2,8,128], index: 7, kind: output, shape index: {2}]  }
   0x1   :  { %s733_s26 = smov 0  }
   0x2 LB: > { %s30_s27 = sadd.s32 1, %s681_s25  ;;  %p599_p0 = scmp.ge.s32.totalorder %s685_s26, 1  ;;  %s685_s26 = sphi %s733_s26, %s18_s26   ;;  %s681_s25 = sphi %s731_s25, %s803_s25   ;;  %s677_s24 = sphi %s729_s24, %s802_s24  }
   0x3   : > { %p32_p1 = scmp.ge.s32.totalorder %s30_s27, 2  ;;  %p261_p2 = scmp.lt.s32.totalorder %s685_s26, 3 }
   0x5   : > { %s805_s27 = smov (%p32_p1, %s30_s27), 0  ;;  %p262_p3 = pnand %p599_p0, %p261_p2 }
   0x6   : > { %v659_v0 = vld [vmem:[%s797_s3] sm:$0xff] (!%p262_p3)   ;;  %v687_v1 = vmov (!%p262_p3), 0.0   ;;  %v660_v2 = vld [vmem:[%s797_s3 + $0x8] sm:$0xff] (!%p262_p3)   ;;  %vm688_vm0 = vmmov (!%p262_p3), 0   ;;  %s600_s9 = sshll.u32 (!%p262_p3), %s677_s24, 1  ;;  %v661_v3 = vld [vmem:[%s797_s3 + $0x10] sm:$0xff] (!%p262_p3)  }
   0x7   : > { %265 = sbr.rel (%p262_p3) target bundleno = 259 (0x103), region = 40  ;;  %621 = vmatprep.subr.bf16.mxu0 (!%p262_p3), %v687_v1  ;;  %629 = vmatprep.mubr.msk.bf16.mxu0 (!%p262_p3), %vm688_vm0, %v687_v1  ;;  %p305_p4 = scmp.lt.s32.totalorder (!%p262_p3), %s600_s9, 3  ;;  %v606_v4 = vld [vmem:[%s795_s1] ss:$0 sm:$0xff] (!%p262_p3)  ;;  %v662_v8 = vld [vmem:[%s797_s3 + $0x18] sm:$0xff] (!%p262_p3)   ;;  %vm390_vm1 = vcmask (!%p262_p3), 523264  }
   0x8   : > { %622 = vmatpush3.bf16.msra.mxu0 (!%p262_p3), %v659_v0  ;;  %v607_v7 = vld [vmem:[%s796_s2] ss:$0 sm:$0xff] (!%p262_p3)  ;;  %p319_p5 = scmp.lt.s32.totalorder (!%p262_p3), %s677_s24, 1 }
   0x9   : > { %623 = vmatprep.subr.bf16.mxu0 (!%p262_p3), %v687_v1  ;;  %v608_v16 = vld [vmem:[%s798_s4] ss:$0 sm:$0xff] (!%p262_p3) }
   0xc   : > { %624 = vmatpush3.bf16.msra.mxu0 (!%p262_p3), %v660_v2 }
   0xd   : > { %625 = vmatprep.subr.bf16.mxu0 (!%p262_p3), %v687_v1 }
   0xe   : > { %s807_s9 = smov (!%p305_p4, %s600_s9), 3  ;;  %s809_s24 = smov (!%p319_p5, %s677_s24), 1 }
   0xf   : > { %s601_s12 = sshll.u32 %s807_s9, 3  ;;  %s604_s8 = sshll.u32 %s809_s24, 3 }
  0x10   : > { %s308_s17 = scalar_lea.vmem %s794_s0, %s601_s12  ;;  %626 = vmatpush3.bf16.msra.mxu0 %v661_v3  ;;  %s316_s30 = scalar_lea.vmem %s799_s5, %s601_s12 }
  0x11   : > { %v328_v5 = vld [vmem:[%s308_s17] sm:$0xff]  ;;  %v329_v6 = vld [vmem:[%s308_s17 + $0x8] sm:$0xff]  ;;  %627 = vmatprep.subr.bf16.mxu0 %v687_v1  ;;  %s322_s11 = scalar_lea.vmem %s800_s6, %s604_s8  ;;  %s326_s14 = scalar_lea.vmem %s801_s7, %s604_s8 }
  0x12   : > { %v337_v9 = vmul.f32 %v606_v4, %v328_v5  ;;  %v338_v10 = vmul.f32 %v606_v4, %v329_v6 }
  0x14   : > { %v346_v11 = vadd.f32 %v607_v7, %v337_v9  ;;  %v347_v12 = vadd.f32 %v607_v7, %v338_v10  ;;  %628 = vmatpush3.bf16.msra.mxu0 %v662_v8 }
  0x16   : > { %v348_v13 = vmax.f32 %v346_v11, 0.0  ;;  %v349_v14 = vmax.f32 %v347_v12, 0.0 }
  0x18   : > { %v350_v15 = vpack.c.bf16 %v349_v14, %v348_v13 }
  0x1a   : > { %630 = vmatmul.mubr.msk.bf16.vlgmr.msra.gmra.mrb[0].mxu0 %vm390_vm1, %v350_v15 }
  0xed   : > { %v428_v17 = vpop.f32.mrb[0].mxu0 }
  0xee   : > { %v429_v18 = vadd.f32 %v608_v16, %v428_v17  ;;  %v631_v19 = vpop.f32.mrb[1].mxu0 }
  0xef   : > { %v431_v20 = vpop.f32.mrb[2].mxu0 }
  0xf0   : > { %435 = vst [vmem:[%s316_s30] sm:$0xff] %v429_v18  ;;  %v432_v21 = vadd.f32 %v608_v16, %v431_v20  ;;  %v632_v22 = vpop.f32.mrb[3].mxu0  ;;  %v454_v23 = vmul.f32 %v429_v18, %v429_v18 }
  0xf2   : > { %436 = vst [vmem:[%s316_s30 + $0x8] sm:$0xff] %v432_v21  ;;  %v444_v24 = vadd.f32 %v432_v21, %v429_v18  ;;  %v455_v25 = vmul.f32 %v432_v21, %v432_v21 }
  0xf4   : > { %v445_v26 = vrot.slane %v444_v24, 4  ;;  %v456_v27 = vadd.f32 %v455_v25, %v454_v23 }
  0xf6   : > { %v446_v28 = vadd.f32 %v445_v26, %v444_v24  ;;  %v457_v29 = vrot.slane %v456_v27, 4 }
  0xf8   : > { %v447_v30 = vrot.slane %v446_v28, 2  ;;  %v458_v31 = vadd.f32 %v457_v29, %v456_v27 }
  0xfa   : > { %v448_v32 = vadd.f32 %v447_v30, %v446_v28  ;;  %v459_v33 = vrot.slane %v458_v31, 2 }
  0xfc   : > { %v449_v34 = vrot.slane %v448_v32, 1  ;;  %v460_v35 = vadd.f32 %v459_v33, %v458_v31 }
  0xfe   : > { %v450_v36 = vadd.f32 %v449_v34, %v448_v32  ;;  %v461_v37 = vrot.slane %v460_v35, 1 }
 0x100   : > { %v462_v38 = vadd.f32 %v461_v37, %v460_v35  ;;  %452 = vst [vmem:[%s322_s11] sm:$0xff] %v450_v36 }
 0x102   : > { %464 = vst [vmem:[%s326_s14] sm:$0xff] %v462_v38 }
 0x103 PF: > { %s18_s26 = sadd.s32 1, %s685_s26   ;;  %s802_s24 = smov %s681_s25 }
 0x104   : > { %p15_p6 = scmp.ge.s32.totalorder %s18_s26, 4   ;;  %s803_s25 = smov %s805_s27 }
 0x106   :  { %17 = sbr.rel (!%p15_p6) target bundleno = 2 (0x2), region = 98 }

// kernel: _lambda_.6
= control target key start
LH: loop header
LB: loop body
LE: loop exit
PB: predicated region body
PF: predicated region fallthrough
CT: control target
= control target key end

     0   :  { %14 = vsyncpa [#allocation3], 0  ;;  %s1780_s27 = smov 0   ;;  %s1782_s28 = smov 0   ;;  %s2207_s0 = inlined_call_operand.vmem [shape: f32[32,128], index: 0, kind: input, shape index: {}]   ;;  %s2208_s1 = inlined_call_operand.vmem [shape: f32[1,128], index: 1, kind: input, shape index: {}]   ;;  %s2209_s2 = inlined_call_operand.vmem [shape: f32[1,128], index: 2, kind: input, shape index: {}]   ;;  %s2210_s3 = inlined_call_operand.vmem [shape: bf16[128,1024], index: 3, kind: input, shape index: {}]   ;;  %s2211_s4 = inlined_call_operand.hbm [shape: f32[1,1024], index: 4, kind: input, shape index: {}]   ;;  %s2212_s5 = inlined_call_operand.vmem [shape: f32[2,8,1024], index: 5, kind: output, shape index: {0}]   ;;  %s2213_s6 = inlined_call_operand.vmem [shape: f32[2,8,1024], index: 6, kind: output, shape index: {1}]   ;;  %s2214_s7 = inlined_call_operand.vmem [shape: f32[2,8,1024], index: 7, kind: output, shape index: {2}]   ;;  %s2215_s8 = inlined_call_operand.vmem [shape: f32[2,8,1024], index: 8, kind: output, shape index: {3}]  }
   0x1   :  { %s1784_s29 = smov 0  }
   0x2 LB: > { %s1549_s30 = sadd.s32 4294967295, %s1731_s29   ;;  %s32_s9 = sadd.s32 1, %s1727_s28  ;;  %s1731_s29 = sphi %s1784_s29, %s20_s29   ;;  %s1727_s28 = sphi %s1782_s28, %s2226_s28   ;;  %s1723_s27 = sphi %s1780_s27, %s2225_s27  }
   0x3   : > { %p34_p0 = scmp.ge.s32.totalorder %s32_s9, 2  ;;  %p1551_p1 = scmp.ge.s32.totalorder %s1731_s29, 1 }
   0x4   : > { %p253_p2 = scmp.lt.s32.totalorder %s1731_s29, 3  ;;  %p1805_p4 = scmp.eq.s32.totalorder %s1549_s30, 0 }
   0x5   : > { %s2228_s9 = smov (%p34_p0, %s32_s9), 0  ;;  %s1733_s12 = smov [#allocation2]  }
   0x6   : > { %p1801_p3 = pnand %p1551_p1, %p253_p2  ;;  %s275_s13 = sshll.u32 %s1733_s12, 4  ;;  %s276_s13 = int_to_ptr.vmem [resolvable:$true] %s275_s13 }
   0x7   : > { %s2220_s11 = scalar_select %p1805_p4, 1, 0 }
   0x8   : > { %s2219_s10 = scalar_select %p1801_p3, 1, 0 }
   0x9   : > { %p1642_p5 = pneg %p1801_p3  ;;  %s1677_s17 = scalar_lea.hbm %s2211_s4, 128 }
   0xa   : > { %p1678_p7 = scmp.ne.s32.totalorder %s2211_s4, %s1677_s17  ;;  %p1684_p11 = scmp.lt.u32.totalorder %s1677_s17, %s2211_s4 }
   0xb   : > { %p1813_p6 = pnand %p1805_p4, %p1642_p5 }
   0xd   : > { %p1679_p8 = pneg %p1813_p6 }
   0xf   : > { %p1680_p9 = pnand %p1679_p8, %p1678_p7 }
  0x11   : > { %p1681_p10 = pneg %p1680_p9 }
  0x13   : > { %p1686_p12 = pnand %p1684_p11, %p1681_p10 }
  0x15   : > { %1689 = shalt.err (!%p1686_p12)
}
  0x16   : > { %s1690_s22 = scalar_lea.vmem %s276_s13, 128  ;;  %p1698_p2 = scmp.lt.s32.totalorder %s276_s13, %s276_s13 }
  0x17   : > { %p1691_p13 = scmp.ne.s32.totalorder %s276_s13, %s1690_s22  ;;  %p1699_p5 = scmp.lt.s32.totalorder %s1690_s22, %s1690_s22 }
  0x19   : > { %p1693_p0 = pnand %p1691_p13, %p1679_p8  ;;  %p1700_p4 = por %p1699_p5, %p1698_p2 }
  0x1b   : > { %p1694_p1 = pneg %p1693_p0 }
  0x1d   : > { %p1701_p3 = pnand %p1700_p4, %p1694_p1 }
  0x1f   : > { %1704 = shalt.err (!%p1701_p3)
}
  0x20   : > { %1645 = dma.hbm_to_vmem [thread:$0]  (!%p1813_p6), %s2211_s4, 128, %s276_s13, [#allocation3]  }
  0x21   : > { %p2222_p7 = scmp.ne.s32.totalorder %s2219_s10, 0 }
  0x22   : > { %p2223_p9 = scmp.ne.s32.totalorder (!%p2222_p7), %s2220_s11, 0 }
  0x23   : > { %299 = sbr.rel (%p2222_p7) target bundleno = 364 (0x16c), region = 40 }
  0x2a   : > { %1718 = dma.done.wait (%p2223_p9), [#allocation3], 128  }
  0x2b   : > { %1720 = vsyncadd (%p2223_p9), [#allocation3], 4294967168  ;;  %v1734_v0 = vmov 0   ;;  %s1556_s25 = sshll.u32 %s1723_s27, 1  ;;  %v401_v1 = vld [vmem:[%s2210_s3] sm:$0xff]  ;;  %v402_v3 = vld [vmem:[%s2210_s3 + $0x8] sm:$0xff] }
  0x2c   : > { %859 = vmatprep.mubr.bf16.mxu0 %v1734_v0  ;;  %902 = vmatprep.mubr.bf16.mxu1 %v1734_v0  ;;  %v405_v2 = vld [vmem:[%s2210_s3 + $0x20] sm:$0xff]  ;;  %v406_v5 = vld [vmem:[%s2210_s3 + $0x28] sm:$0xff]  ;;  %p1871_p3 = scmp.lt.s32.totalorder %s1556_s25, 3  ;;  %p357_p4 = scmp.lt.s32.totalorder %s1723_s27, 1 }
  0x2d   : > { %v1569_v4 = vcombine.high %v401_v1, %v405_v2  ;;  %v1568_v6 = vcombine.low %v401_v1, %v405_v2  ;;  %v409_v7 = vld [vmem:[%s2210_s3 + $0x40] sm:$0xff]  ;;  %v1571_v9 = vcombine.high %v402_v3, %v406_v5  ;;  %v1570_v10 = vcombine.low %v402_v3, %v406_v5  ;;  %v410_v12 = vld [vmem:[%s2210_s3 + $0x48] sm:$0xff] }
  0x2e   : > { %v413_v8 = vld [vmem:[%s2210_s3 + $0x60] sm:$0xff]  ;;  %v414_v13 = vld [vmem:[%s2210_s3 + $0x68] sm:$0xff]  ;;  %s2230_s25 = smov (!%p1871_p3, %s1556_s25), 3  ;;  %s2232_s27 = smov (!%p357_p4, %s1723_s27), 1 }
  0x2f   : > { %v1577_v11 = vcombine.high %v409_v7, %v413_v8  ;;  %v417_v14 = vld [vmem:[%s2210_s3 + $0x80] sm:$0xff]  ;;  %827 = vmatprep.subr.bf16.mxu0 %v1569_v4  ;;  %v1579_v15 = vcombine.high %v410_v12, %v414_v13  ;;  %v418_v17 = vld [vmem:[%s2210_s3 + $0x88] sm:$0xff]  ;;  %870 = vmatprep.subr.bf16.mxu1 %v1571_v9  ;;  %v1576_v19 = vcombine.low %v409_v7, %v413_v8  ;;  %s1557_s12 = sshll.u32 %s2230_s25, 3  ;;  %v403_v8 = vld [vmem:[%s2210_s3 + $0x10] sm:$0xff]  ;;  %s1634_s20 = sshll.u32 %s2232_s27, 6 }
  0x30   : > { %v421_v16 = vld [vmem:[%s2210_s3 + $0xa0] sm:$0xff]  ;;  %v422_v18 = vld [vmem:[%s2210_s3 + $0xa8] sm:$0xff]  ;;  %828 = vmatpush1.bf16.msra.mxu0 %v1568_v6  ;;  %871 = vmatpush1.bf16.msra.mxu1 %v1570_v10  ;;  %v1578_v20 = vcombine.low %v410_v12, %v414_v13  ;;  %s354_s18 = scalar_lea.vmem %s2207_s0, %s1557_s12  ;;  %v407_v9 = vld [vmem:[%s2210_s3 + $0x30] sm:$0xff]  ;;  %s2091_s23 = scalar_lea.vmem %s2212_s5, %s1634_s20 }
  0x31   : > { %829 = vmatprep.subr.bf16.mxu0 %v1577_v11  ;;  %v1585_v21 = vcombine.high %v417_v14, %v421_v16  ;;  %872 = vmatprep.subr.bf16.mxu1 %v1579_v15  ;;  %v1587_v22 = vcombine.high %v418_v17, %v422_v18  ;;  %v425_v23 = vld [vmem:[%s2210_s3 + $0xc0] sm:$0xff]  ;;  %v426_v25 = vld [vmem:[%s2210_s3 + $0xc8] sm:$0xff]  ;;  %v1584_v27 = vcombine.low %v417_v14, %v421_v16  ;;  %v404_v12 = vld [vmem:[%s2210_s3 + $0x18] sm:$0xff]  ;;  %s2096_s26 = scalar_lea.vmem %s2213_s6, %s1634_s20  ;;  %s2101_s12 = scalar_lea.vmem %s2214_s7, %s1634_s20 }
  0x32   : > { %v429_v24 = vld [vmem:[%s2210_s3 + $0xe0] sm:$0xff]  ;;  %v430_v26 = vld [vmem:[%s2210_s3 + $0xe8] sm:$0xff]  ;;  %v1586_v28 = vcombine.low %v418_v17, %v422_v18  ;;  %v408_v13 = vld [vmem:[%s2210_s3 + $0x38] sm:$0xff]  ;;  %v1573_v16 = vcombine.high %v403_v8, %v407_v9  ;;  %s2106_s11 = scalar_lea.vmem %s2215_s8, %s1634_s20 }
  0x33   : > { %v1593_v29 = vcombine.high %v425_v23, %v429_v24  ;;  %v1595_v30 = vcombine.high %v426_v25, %v430_v26  ;;  %v433_v31 = vld [vmem:[%s2210_s3 + $0x100] sm:$0xff]  ;;  %v434_v33 = vld [vmem:[%s2210_s3 + $0x108] sm:$0xff]  ;;  %v1592_v35 = vcombine.low %v425_v23, %v429_v24  ;;  %v1594_v36 = vcombine.low %v426_v25, %v430_v26  ;;  %v411_v18 = vld [vmem:[%s2210_s3 + $0x50] sm:$0xff] }
  0x34   : > { %830 = vmatpush1.bf16.msra.mxu0 %v1576_v19  ;;  %873 = vmatpush1.bf16.msra.mxu1 %v1578_v20  ;;  %v437_v32 = vld [vmem:[%s2210_s3 + $0x120] sm:$0xff]  ;;  %v438_v34 = vld [vmem:[%s2210_s3 + $0x128] sm:$0xff]  ;;  %v1575_v17 = vcombine.high %v404_v12, %v408_v13  ;;  %v415_v19 = vld [vmem:[%s2210_s3 + $0x70] sm:$0xff]  ;;  %v1572_v23 = vcombine.low %v403_v8, %v407_v9  ;;  %v1574_v24 = vcombine.low %v404_v12, %v408_v13  ;;  %v467_v13 = vlaneseq }
  0x35   : > { %831 = vmatprep.subr.bf16.mxu0 %v1585_v21  ;;  %874 = vmatprep.subr.bf16.mxu1 %v1587_v22  ;;  %v1601_v37 = vcombine.high %v433_v31, %v437_v32  ;;  %v1603_v38 = vcombine.high %v434_v33, %v438_v34  ;;  %v441_v39 = vld [vmem:[%s2210_s3 + $0x140] sm:$0xff]  ;;  %v442_v41 = vld [vmem:[%s2210_s3 + $0x148] sm:$0xff]  ;;  %v1600_v43 = vcombine.low %v433_v31, %v437_v32  ;;  %v412_v21 = vld [vmem:[%s2210_s3 + $0x58] sm:$0xff] }
  0x36   : > { %v445_v40 = vld [vmem:[%s2210_s3 + $0x160] sm:$0xff]  ;;  %v446_v42 = vld [vmem:[%s2210_s3 + $0x168] sm:$0xff]  ;;  %v1602_v47 = vcombine.low %v434_v33, %v438_v34  ;;  %v416_v22 = vld [vmem:[%s2210_s3 + $0x78] sm:$0xff]  ;;  %v1581_v25 = vcombine.high %v411_v18, %v415_v19  ;;  %v1580_v31 = vcombine.low %v411_v18, %v415_v19 }
  0x37   : > { %v378_v44 = vld [vmem:[%s354_s18] sm:$0xff]  ;;  %v379_v45 = vld [vmem:[%s354_s18 + $0x8] sm:$0xff]  ;;  %v1609_v48 = vcombine.high %v441_v39, %v445_v40  ;;  %v1611_v49 = vcombine.high %v442_v41, %v446_v42  ;;  %v1608_v56 = vcombine.low %v441_v39, %v445_v40  ;;  %v1610_v58 = vcombine.low %v442_v41, %v446_v42 }
  0x38   : > { %832 = vmatpush1.bf16.msra.mxu0 %v1584_v27  ;;  %875 = vmatpush1.bf16.msra.mxu1 %v1586_v28  ;;  %v1566_v46 = vld [vmem:[%s2208_s1] ss:$0 sm:$0xff]  ;;  %v450_v52 = vld [vmem:[%s2210_s3 + $0x188] sm:$0xff]  ;;  %v1583_v26 = vcombine.high %v412_v21, %v416_v22  ;;  %v419_v27 = vld [vmem:[%s2210_s3 + $0x90] sm:$0xff]  ;;  %v1582_v32 = vcombine.low %v412_v21, %v416_v22 }
  0x39   : > { %833 = vmatprep.subr.bf16.mxu0 %v1593_v29  ;;  %876 = vmatprep.subr.bf16.mxu1 %v1595_v30  ;;  %v449_v50 = vld [vmem:[%s2210_s3 + $0x180] sm:$0xff]  ;;  %v454_v53 = vld [vmem:[%s2210_s3 + $0x1a8] sm:$0xff]  ;;  %v387_v54 = vmul.f32 %v1566_v46, %v378_v44  ;;  %v388_v55 = vmul.f32 %v1566_v46, %v379_v45  ;;  %v423_v28 = vld [vmem:[%s2210_s3 + $0xb0] sm:$0xff] }
  0x3a   : > { %v453_v51 = vld [vmem:[%s2210_s3 + $0x1a0] sm:$0xff]  ;;  %v1619_v60 = vcombine.high %v450_v52, %v454_v53  ;;  %v458_v63 = vld [vmem:[%s2210_s3 + $0x1c8] sm:$0xff]  ;;  %v1618_v5 = vcombine.low %v450_v52, %v454_v53  ;;  %v420_v29 = vld [vmem:[%s2210_s3 + $0x98] sm:$0xff]  ;;  %v1589_v33 = vcombine.high %v419_v27, %v423_v28  ;;  %v1588_v39 = vcombine.low %v419_v27, %v423_v28 }
  0x3b   : > { %v1567_v57 = vld [vmem:[%s2209_s2] ss:$0 sm:$0xff]  ;;  %v1617_v59 = vcombine.high %v449_v50, %v453_v51  ;;  %v462_v1 = vld [vmem:[%s2210_s3 + $0x1e8] sm:$0xff]  ;;  %v1616_v4 = vcombine.low %v449_v50, %v453_v51  ;;  %v424_v30 = vld [vmem:[%s2210_s3 + $0xb8] sm:$0xff] }
  0x3c   : > { %834 = vmatpush1.bf16.msra.mxu0 %v1592_v35  ;;  %877 = vmatpush1.bf16.msra.mxu1 %v1594_v36  ;;  %v457_v61 = vld [vmem:[%s2210_s3 + $0x1c0] sm:$0xff]  ;;  %v396_v2 = vadd.f32 %v1567_v57, %v387_v54  ;;  %v397_v3 = vadd.f32 %v1567_v57, %v388_v55  ;;  %v1627_v7 = vcombine.high %v458_v63, %v462_v1  ;;  %v427_v35 = vld [vmem:[%s2210_s3 + $0xd0] sm:$0xff]  ;;  %v440_v45 = vld [vmem:[%s2210_s3 + $0x138] sm:$0xff] }
  0x3d   : > { %835 = vmatprep.subr.bf16.mxu0 %v1601_v37  ;;  %878 = vmatprep.subr.bf16.mxu1 %v1603_v38  ;;  %v461_v62 = vld [vmem:[%s2210_s3 + $0x1e0] sm:$0xff]  ;;  %v1626_v15 = vcombine.low %v458_v63, %v462_v1  ;;  %v1591_v34 = vcombine.high %v420_v29, %v424_v30  ;;  %v431_v36 = vld [vmem:[%s2210_s3 + $0xf0] sm:$0xff]  ;;  %v428_v37 = vld [vmem:[%s2210_s3 + $0xd8] sm:$0xff]  ;;  %v1590_v40 = vcombine.low %v420_v29, %v424_v30 }
  0x3e   : > { %v1625_v6 = vcombine.high %v457_v61, %v461_v62  ;;  %v398_v10 = vmax.f32 %v396_v2, 0.0  ;;  %v399_v11 = vmax.f32 %v397_v3, 0.0  ;;  %v1624_v14 = vcombine.low %v457_v61, %v461_v62  ;;  %v432_v38 = vld [vmem:[%s2210_s3 + $0xf8] sm:$0xff]  ;;  %v439_v44 = vld [vmem:[%s2210_s3 + $0x130] sm:$0xff] }
  0x3f   : > { %v1597_v41 = vcombine.high %v427_v35, %v431_v36  ;;  %v1599_v42 = vcombine.high %v428_v37, %v432_v38  ;;  %v1596_v46 = vcombine.low %v427_v35, %v431_v36  ;;  %v443_v50 = vld [vmem:[%s2210_s3 + $0x150] sm:$0xff]  ;;  %v444_v52 = vld [vmem:[%s2210_s3 + $0x158] sm:$0xff] }
  0x40   : > { %836 = vmatpush1.bf16.msra.mxu0 %v1600_v43  ;;  %879 = vmatpush1.bf16.msra.mxu1 %v1602_v47  ;;  %v1975_v20 = vpack.c.bf16 %v399_v11, %v398_v10  ;;  %v435_v43 = vld [vmem:[%s2210_s3 + $0x110] sm:$0xff]  ;;  %v1598_v47 = vcombine.low %v428_v37, %v432_v38  ;;  %v448_v53 = vld [vmem:[%s2210_s3 + $0x178] sm:$0xff] }
  0x41   : > { %837 = vmatprep.subr.bf16.mxu0 %v1609_v48  ;;  %880 = vmatprep.subr.bf16.mxu1 %v1611_v49  ;;  %v1605_v48 = vcombine.high %v435_v43, %v439_v44  ;;  %v447_v51 = vld [vmem:[%s2210_s3 + $0x170] sm:$0xff]  ;;  %v1604_v54 = vcombine.low %v435_v43, %v439_v44  ;;  %v1615_v57 = vcombine.high %v444_v52, %v448_v53  ;;  %v456_v61 = vld [vmem:[%s2210_s3 + $0x1b8] sm:$0xff] }
  0x42   : > { %v1612_v62 = vcombine.low %v443_v50, %v447_v51  ;;  %v1614_v63 = vcombine.low %v444_v52, %v448_v53  ;;  %v459_v3 = vld [vmem:[%s2210_s3 + $0x1d0] sm:$0xff] }
  0x44   : > { %838 = vmatpush1.bf16.msra.mxu0 %v1608_v56  ;;  %881 = vmatpush1.bf16.msra.mxu1 %v1610_v58  ;;  %v1613_v56 = vcombine.high %v443_v50, %v447_v51  ;;  %v451_v58 = vld [vmem:[%s2210_s3 + $0x190] sm:$0xff] }
  0x45   : > { %839 = vmatprep.subr.bf16.mxu0 %v1617_v59  ;;  %882 = vmatprep.subr.bf16.mxu1 %v1619_v60  ;;  %v455_v59 = vld [vmem:[%s2210_s3 + $0x1b0] sm:$0xff]  ;;  %v452_v60 = vld [vmem:[%s2210_s3 + $0x198] sm:$0xff] }
  0x46   : > { %v1621_v1 = vcombine.high %v451_v58, %v455_v59  ;;  %v1623_v2 = vcombine.high %v452_v60, %v456_v61  ;;  %v1622_v8 = vcombine.low %v452_v60, %v456_v61 }
  0x48   : > { %840 = vmatpush1.bf16.msra.mxu0 %v1616_v4  ;;  %883 = vmatpush1.bf16.msra.mxu1 %v1618_v5  ;;  %v463_v4 = vld [vmem:[%s2210_s3 + $0x1f0] sm:$0xff]  ;;  %v460_v5 = vld [vmem:[%s2210_s3 + $0x1d8] sm:$0xff] }
  0x49   : > { %841 = vmatprep.subr.bf16.mxu0 %v1625_v6  ;;  %884 = vmatprep.subr.bf16.mxu1 %v1627_v7  ;;  %v464_v6 = vld [vmem:[%s2210_s3 + $0x1f8] sm:$0xff]  ;;  %v1620_v7 = vcombine.low %v451_v58, %v455_v59  ;;  %v1629_v9 = vcombine.high %v459_v3, %v463_v4  ;;  %v1628_v11 = vcombine.low %v459_v3, %v463_v4 }
  0x4a   : > { %v1631_v10 = vcombine.high %v460_v5, %v464_v6  ;;  %v1630_v12 = vcombine.low %v460_v5, %v464_v6 }
  0x4c   : > { %842 = vmatpush1.bf16.msra.mxu0 %v1624_v14  ;;  %885 = vmatpush1.bf16.msra.mxu1 %v1626_v15  ;;  %v468_v14 = vshrl.u32 %v467_v13, 7 }
  0x4d   : > { %913 = vmatprep.subr.bf16.mxu0 %v1573_v16  ;;  %956 = vmatprep.subr.bf16.mxu1 %v1575_v17  ;;  %v465_v16 = vld [vmem:[#allocation2] sm:$0xff] }
  0x4e   : > { %v469_v15 = vsub.s32 0, %v468_v14  ;;  %v477_v17 = vsub.s32 2, %v468_v14  ;;  %v473_v18 = vsub.s32 1, %v468_v14  ;;  %v481_v19 = vsub.s32 3, %v468_v14 }
  0x4f   : > { %860 = vmatmul.mubr.bf16.vlgmr.msra.gmra.mrb[0].mxu0 %v1975_v20  ;;  %903 = vmatmul.mubr.bf16.vlgmr.msra.gmra.mrb[0].mxu1 %v1975_v20  ;;  %v497_v27 = vsub.s32 7, %v468_v14 }
  0x50   : > { %914 = vmatpush1.bf16.msra.mxu0 %v1572_v23  ;;  %957 = vmatpush1.bf16.msra.mxu1 %v1574_v24  ;;  %v470_v21 = vrot.slane %v465_v16, %v469_v15  ;;  %v478_v22 = vrot.slane %v465_v16, %v477_v17  ;;  %v474_v23 = vrot.slane %v465_v16, %v473_v18  ;;  %v485_v24 = vsub.s32 4, %v468_v14 }
  0x51   : > { %915 = vmatprep.subr.bf16.mxu0 %v1581_v25  ;;  %958 = vmatprep.subr.bf16.mxu1 %v1583_v26  ;;  %v493_v25 = vsub.s32 6, %v468_v14  ;;  %v489_v26 = vsub.s32 5, %v468_v14  ;;  %v2061_v29 = vrot.slane %v465_v16, %v481_v19  ;;  %v2071_v43 = vrot.slane %v465_v16, %v497_v27 }
  0x52   : > { %945 = vmatprep.mubr.bf16.mxu0 %v1734_v0  ;;  %988 = vmatprep.mubr.bf16.mxu1 %v1734_v0  ;;  %v436_v0 = vld [vmem:[%s2210_s3 + $0x118] sm:$0xff]  ;;  %v2065_v36 = vrot.slane %v465_v16, %v485_v24 }
  0x53   : > { %v1607_v49 = vcombine.high %v436_v0, %v440_v45  ;;  %v1606_v55 = vcombine.low %v436_v0, %v440_v45  ;;  %v2067_v37 = vrot.slane %v465_v16, %v493_v25 }
  0x54   : > { %916 = vmatpush1.bf16.msra.mxu0 %v1580_v31  ;;  %959 = vmatpush1.bf16.msra.mxu1 %v1582_v32 }
  0x55   : > { %917 = vmatprep.subr.bf16.mxu0 %v1589_v33  ;;  %960 = vmatprep.subr.bf16.mxu1 %v1591_v34 }
  0x58   : > { %918 = vmatpush1.bf16.msra.mxu0 %v1588_v39  ;;  %961 = vmatpush1.bf16.msra.mxu1 %v1590_v40 }
  0x59   : > { %919 = vmatprep.subr.bf16.mxu0 %v1597_v41  ;;  %962 = vmatprep.subr.bf16.mxu1 %v1599_v42  ;;  %v2069_v42 = vrot.slane %v465_v16, %v489_v26 }
  0x5c   : > { %920 = vmatpush1.bf16.msra.mxu0 %v1596_v46  ;;  %963 = vmatpush1.bf16.msra.mxu1 %v1598_v47 }
  0x5d   : > { %921 = vmatprep.subr.bf16.mxu0 %v1605_v48  ;;  %964 = vmatprep.subr.bf16.mxu1 %v1607_v49 }
  0x60   : > { %922 = vmatpush1.bf16.msra.mxu0 %v1604_v54  ;;  %965 = vmatpush1.bf16.msra.mxu1 %v1606_v55 }
  0x61   : > { %923 = vmatprep.subr.bf16.mxu0 %v1613_v56  ;;  %966 = vmatprep.subr.bf16.mxu1 %v1615_v57 }
  0x64   : > { %924 = vmatpush1.bf16.msra.mxu0 %v1612_v62  ;;  %967 = vmatpush1.bf16.msra.mxu1 %v1614_v63 }
  0x65   : > { %925 = vmatprep.subr.bf16.mxu0 %v1621_v1  ;;  %968 = vmatprep.subr.bf16.mxu1 %v1623_v2 }
  0x68   : > { %926 = vmatpush1.bf16.msra.mxu0 %v1620_v7  ;;  %969 = vmatpush1.bf16.msra.mxu1 %v1622_v8 }
  0x69   : > { %927 = vmatprep.subr.bf16.mxu0 %v1629_v9  ;;  %970 = vmatprep.subr.bf16.mxu1 %v1631_v10 }
  0x6c   : > { %928 = vmatpush1.bf16.msra.mxu0 %v1628_v11  ;;  %971 = vmatpush1.bf16.msra.mxu1 %v1630_v12 }
  0x6f   : > { %946 = vmatmul.mubr.bf16.vlgmr.msra.gmra.mrb[4].mxu0 %v1975_v20  ;;  %989 = vmatmul.mubr.bf16.vlgmr.msra.gmra.mrb[4].mxu1 %v1975_v20 }
 0x122   : > { %v861_v28 = vpop.f32.mrb[0].mxu0  ;;  %v904_v31 = vpop.f32.mrb[0].mxu1 }
 0x123   : > { %v862_v30 = vadd.f32 %v861_v28, %v470_v21  ;;  %v863_v20 = vpop.f32.mrb[1].mxu0  ;;  %v905_v32 = vadd.f32 %v904_v31, %v478_v22  ;;  %v906_v34 = vpop.f32.mrb[1].mxu1 }
 0x124   : > { %v2063_v33 = vadd.f32 %v863_v20, %v474_v23  ;;  %v865_v35 = vpop.f32.mrb[2].mxu0  ;;  %v908_v40 = vpop.f32.mrb[2].mxu1  ;;  %v2078_v45 = vadd.f32 %v906_v34, %v2061_v29 }
 0x125   : > { %v1286_v38 = vmul.f32 %v862_v30, %v862_v30  ;;  %v866_v39 = vadd.f32 %v865_v35, %v470_v21  ;;  %v867_v41 = vpop.f32.mrb[3].mxu0  ;;  %v1288_v44 = vmul.f32 %v905_v32, %v905_v32  ;;  %v909_v46 = vadd.f32 %v908_v40, %v478_v22  ;;  %v2080_v47 = vpop.f32.mrb[3].mxu1 }
 0x126   : > { %v2075_v0 = vmul.f32 %v2063_v33, %v2063_v33  ;;  %v2082_v51 = vadd.f32 %v867_v41, %v474_v23 }
 0x127   : > { %v1027_v48 = vmax.f32 %v862_v30, %v866_v39  ;;  %v1107_v49 = vmin.f32 %v862_v30, %v866_v39  ;;  %v1206_v50 = vadd.f32 %v866_v39, %v862_v30  ;;  %v1294_v52 = vmul.f32 %v866_v39, %v866_v39 }
 0x128   : > { %v1041_v53 = vmax.f32 %v905_v32, %v909_v46  ;;  %v1121_v54 = vmin.f32 %v905_v32, %v909_v46  ;;  %v1220_v55 = vadd.f32 %v909_v46, %v905_v32  ;;  %v1296_v59 = vmul.f32 %v909_v46, %v909_v46 }
 0x129   : > { %v1028_v56 = vrot.slane %v1027_v48, 4  ;;  %v1108_v57 = vrot.slane %v1107_v49, 4  ;;  %v1207_v58 = vrot.slane %v1206_v50, 4  ;;  %v1302_v60 = vadd.f32 %v1294_v52, %v1286_v38 }
 0x12a   : > { %v1042_v61 = vrot.slane %v1041_v53, 4  ;;  %v1122_v62 = vrot.slane %v1121_v54, 4  ;;  %v1221_v63 = vrot.slane %v1220_v55, 4  ;;  %v1316_v4 = vadd.f32 %v1296_v59, %v1288_v44 }
 0x12b   : > { %v1029_v1 = vmax.f32 %v1027_v48, %v1028_v56  ;;  %v1109_v2 = vmin.f32 %v1107_v49, %v1108_v57  ;;  %v1208_v3 = vadd.f32 %v1207_v58, %v1206_v50  ;;  %v1303_v5 = vrot.slane %v1302_v60, 4 }
 0x12c   : > { %v1043_v6 = vmax.f32 %v1041_v53, %v1042_v61  ;;  %v1123_v7 = vmin.f32 %v1121_v54, %v1122_v62  ;;  %v1222_v8 = vadd.f32 %v1221_v63, %v1220_v55  ;;  %v1317_v12 = vrot.slane %v1316_v4, 4 }
 0x12d   : > { %v1030_v9 = vrot.slane %v1029_v1, 2  ;;  %v1110_v10 = vrot.slane %v1109_v2, 2  ;;  %v1209_v11 = vrot.slane %v1208_v3, 2  ;;  %v1304_v13 = vadd.f32 %v1303_v5, %v1302_v60 }
 0x12e   : > { %v1044_v14 = vrot.slane %v1043_v6, 2  ;;  %v1124_v15 = vrot.slane %v1123_v7, 2  ;;  %v1223_v16 = vrot.slane %v1222_v8, 2  ;;  %v1318_v21 = vadd.f32 %v1317_v12, %v1316_v4 }
 0x12f   : > { %v1031_v17 = vmax.f32 %v1029_v1, %v1030_v9  ;;  %v1111_v18 = vmin.f32 %v1109_v2, %v1110_v10  ;;  %v1210_v19 = vadd.f32 %v1209_v11, %v1208_v3  ;;  %v1305_v22 = vrot.slane %v1304_v13, 2 }
 0x130   : > { %v1045_v23 = vmax.f32 %v1043_v6, %v1044_v14  ;;  %v1125_v24 = vmin.f32 %v1123_v7, %v1124_v15  ;;  %v1224_v25 = vadd.f32 %v1223_v16, %v1222_v8  ;;  %v1319_v30 = vrot.slane %v1318_v21, 2 }
 0x131   : > { %v1032_v26 = vrot.slane %v1031_v17, 1  ;;  %v1112_v27 = vrot.slane %v1111_v18, 1  ;;  %v1211_v28 = vrot.slane %v1210_v19, 1  ;;  %v1306_v31 = vadd.f32 %v1305_v22, %v1304_v13 }
 0x132   : > { %v1046_v20 = vrot.slane %v1045_v23, 1  ;;  %v1126_v32 = vrot.slane %v1125_v24, 1  ;;  %v1225_v34 = vrot.slane %v1224_v25, 1  ;;  %v1320_v40 = vadd.f32 %v1319_v30, %v1318_v21 }
 0x133   : > { %v1033_v35 = vmax.f32 %v1031_v17, %v1032_v26  ;;  %v1113_v38 = vmin.f32 %v1111_v18, %v1112_v27  ;;  %v1212_v39 = vadd.f32 %v1211_v28, %v1210_v19  ;;  %v1307_v41 = vrot.slane %v1306_v31, 1 }
 0x134   : > { %v1047_v44 = vmax.f32 %v1045_v23, %v1046_v20  ;;  %v1127_v46 = vmin.f32 %v1125_v24, %v1126_v32  ;;  %v1226_v48 = vadd.f32 %v1225_v34, %v1224_v25  ;;  %v1321_v49 = vrot.slane %v1320_v40, 1 }
 0x135   : > { %v1308_v50 = vadd.f32 %v1307_v41, %v1306_v31  ;;  %1091 = vst [vmem:[%s2091_s23] sm:$0xff] %v1033_v35  ;;  %1171 = vst [vmem:[%s2096_s26] sm:$0xff] %v1113_v38  ;;  %v1034_v53 = vmax.f32 %v2063_v33, %v2082_v51  ;;  %v1114_v54 = vmin.f32 %v2063_v33, %v2082_v51 }
 0x136   : > { %1270 = vst [vmem:[%s2101_s12] sm:$0xff] %v1212_v39  ;;  %v1322_v52 = vadd.f32 %v1321_v49, %v1320_v40  ;;  %v1213_v55 = vadd.f32 %v2082_v51, %v2063_v33  ;;  %v1289_v56 = vmul.f32 %v2078_v45, %v2078_v45  ;;  %1093 = vst [vmem:[%s2091_s23 + $0x10] sm:$0xff] %v1047_v44 }
 0x137   : > { %1173 = vst [vmem:[%s2096_s26 + $0x10] sm:$0xff] %v1127_v46  ;;  %1272 = vst [vmem:[%s2101_s12 + $0x10] sm:$0xff] %v1226_v48  ;;  %v1295_v57 = vmul.f32 %v2082_v51, %v2082_v51  ;;  %v911_v58 = vadd.f32 %v2080_v47, %v2061_v29  ;;  %v1035_v59 = vrot.slane %v1034_v53, 4  ;;  %v1115_v60 = vrot.slane %v1114_v54, 4 }
 0x138   : > { %v1214_v61 = vrot.slane %v1213_v55, 4  ;;  %1366 = vst [vmem:[%s2106_s11] sm:$0xff] %v1308_v50  ;;  %1368 = vst [vmem:[%s2106_s11 + $0x10] sm:$0xff] %v1322_v52 }
 0x139   : > { %v1309_v62 = vadd.f32 %v1295_v57, %v2075_v0  ;;  %v1048_v33 = vmax.f32 %v2078_v45, %v911_v58  ;;  %v1128_v63 = vmin.f32 %v2078_v45, %v911_v58  ;;  %v1227_v1 = vadd.f32 %v911_v58, %v2078_v45 }
 0x13a   : > { %v1036_v2 = vmax.f32 %v1034_v53, %v1035_v59  ;;  %v1116_v3 = vmin.f32 %v1114_v54, %v1115_v60  ;;  %v1215_v4 = vadd.f32 %v1214_v61, %v1213_v55  ;;  %v1297_v51 = vmul.f32 %v911_v58, %v911_v58 }
 0x13b   : > { %v1310_v5 = vrot.slane %v1309_v62, 4  ;;  %v1049_v6 = vrot.slane %v1048_v33, 4  ;;  %v1129_v29 = vrot.slane %v1128_v63, 4  ;;  %v1228_v47 = vrot.slane %v1227_v1, 4 }
 0x13c   : > { %v1037_v7 = vrot.slane %v1036_v2, 2  ;;  %v1117_v8 = vrot.slane %v1116_v3, 2  ;;  %v1216_v9 = vrot.slane %v1215_v4, 2  ;;  %v1323_v10 = vadd.f32 %v1297_v51, %v1289_v56 }
 0x13d   : > { %v1311_v0 = vadd.f32 %v1310_v5, %v1309_v62  ;;  %v1050_v11 = vmax.f32 %v1048_v33, %v1049_v6  ;;  %v1130_v12 = vmin.f32 %v1128_v63, %v1129_v29  ;;  %v1229_v13 = vadd.f32 %v1228_v47, %v1227_v1 }
 0x13e   : > { %v1038_v14 = vmax.f32 %v1036_v2, %v1037_v7  ;;  %v1118_v15 = vmin.f32 %v1116_v3, %v1117_v8  ;;  %v1217_v45 = vadd.f32 %v1216_v9, %v1215_v4  ;;  %v1324_v16 = vrot.slane %v1323_v10, 4 }
 0x13f   : > { %v1312_v17 = vrot.slane %v1311_v0, 2  ;;  %v1051_v18 = vrot.slane %v1050_v11, 2  ;;  %v1131_v19 = vrot.slane %v1130_v12, 2  ;;  %v1230_v21 = vrot.slane %v1229_v13, 2 }
 0x140   : > { %v1039_v22 = vrot.slane %v1038_v14, 1  ;;  %v1119_v23 = vrot.slane %v1118_v15, 1  ;;  %v1218_v24 = vrot.slane %v1217_v45, 1  ;;  %v1325_v25 = vadd.f32 %v1324_v16, %v1323_v10 }
 0x141   : > { %v1313_v26 = vadd.f32 %v1312_v17, %v1311_v0  ;;  %v1052_v27 = vmax.f32 %v1050_v11, %v1051_v18  ;;  %v1132_v28 = vmin.f32 %v1130_v12, %v1131_v19  ;;  %v1231_v30 = vadd.f32 %v1230_v21, %v1229_v13 }
 0x142   : > { %v947_v31 = vpop.f32.mrb[4].mxu0  ;;  %v1040_v20 = vmax.f32 %v1038_v14, %v1039_v22  ;;  %v1120_v32 = vmin.f32 %v1118_v15, %v1119_v23  ;;  %v1219_v34 = vadd.f32 %v1218_v24, %v1217_v45  ;;  %v1326_v35 = vrot.slane %v1325_v25, 2  ;;  %v990_v38 = vpop.f32.mrb[4].mxu1 }
 0x143   : > { %v949_v39 = vpop.f32.mrb[5].mxu0  ;;  %v1314_v40 = vrot.slane %v1313_v26, 1  ;;  %v1053_v41 = vrot.slane %v1052_v27, 1  ;;  %v1133_v44 = vrot.slane %v1132_v28, 1  ;;  %v1232_v46 = vrot.slane %v1231_v30, 1  ;;  %v992_v48 = vpop.f32.mrb[5].mxu1 }
 0x144   : > { %v951_v49 = vpop.f32.mrb[6].mxu0  ;;  %v1327_v50 = vadd.f32 %v1326_v35, %v1325_v25  ;;  %v994_v52 = vpop.f32.mrb[6].mxu1  ;;  %1092 = vst [vmem:[%s2091_s23 + $0x8] sm:$0xff] %v1040_v20  ;;  %1172 = vst [vmem:[%s2096_s26 + $0x8] sm:$0xff] %v1120_v32  ;;  %v948_v60 = vadd.f32 %v947_v31, %v2065_v36  ;;  %v991_v61 = vadd.f32 %v990_v38, %v2067_v37 }
 0x145   : > { %v953_v53 = vpop.f32.mrb[7].mxu0  ;;  %v1315_v54 = vadd.f32 %v1314_v40, %v1313_v26  ;;  %v1054_v55 = vmax.f32 %v1052_v27, %v1053_v41  ;;  %v1134_v56 = vmin.f32 %v1132_v28, %v1133_v44  ;;  %v1233_v57 = vadd.f32 %v1232_v46, %v1231_v30  ;;  %v996_v58 = vpop.f32.mrb[7].mxu1  ;;  %1271 = vst [vmem:[%s2101_s12 + $0x8] sm:$0xff] %v1219_v34 }
 0x146   : > { %v1328_v59 = vrot.slane %v1327_v50, 1  ;;  %v2138_v62 = vadd.f32 %v949_v39, %v2069_v42  ;;  %v1290_v63 = vmul.f32 %v948_v60, %v948_v60  ;;  %v1292_v1 = vmul.f32 %v991_v61, %v991_v61 }
 0x147   : > { %1367 = vst [vmem:[%s2106_s11 + $0x8] sm:$0xff] %v1315_v54  ;;  %1094 = vst [vmem:[%s2091_s23 + $0x18] sm:$0xff] %v1054_v55  ;;  %v2145_v2 = vadd.f32 %v992_v48, %v2071_v43  ;;  %v952_v3 = vadd.f32 %v951_v49, %v2065_v36  ;;  %v995_v4 = vadd.f32 %v994_v52, %v2067_v37 }
 0x148   : > { %v1329_v33 = vadd.f32 %v1328_v59, %v1327_v50  ;;  %1174 = vst [vmem:[%s2096_s26 + $0x18] sm:$0xff] %v1134_v56  ;;  %1273 = vst [vmem:[%s2101_s12 + $0x18] sm:$0xff] %v1233_v57  ;;  %v2151_v51 = vmul.f32 %v2138_v62, %v2138_v62  ;;  %v2154_v5 = vadd.f32 %v953_v53, %v2069_v42 }
 0x149   : > { %v2157_v6 = vadd.f32 %v996_v58, %v2071_v43  ;;  %v2161_v29 = vmul.f32 %v2145_v2, %v2145_v2  ;;  %v1055_v47 = vmax.f32 %v948_v60, %v952_v3  ;;  %v1135_v7 = vmin.f32 %v948_v60, %v952_v3 }
 0x14a   : > { %v1234_v8 = vadd.f32 %v952_v3, %v948_v60  ;;  %1369 = vst [vmem:[%s2106_s11 + $0x18] sm:$0xff] %v1329_v33  ;;  %v1298_v36 = vmul.f32 %v952_v3, %v952_v3  ;;  %v1069_v37 = vmax.f32 %v991_v61, %v995_v4  ;;  %v1149_v9 = vmin.f32 %v991_v61, %v995_v4 }
 0x14b   : > { %v1248_v10 = vadd.f32 %v995_v4, %v991_v61  ;;  %v1056_v0 = vrot.slane %v1055_v47, 4  ;;  %v1136_v11 = vrot.slane %v1135_v7, 4  ;;  %v1300_v42 = vmul.f32 %v995_v4, %v995_v4 }
 0x14c   : > { %v1235_v12 = vrot.slane %v1234_v8, 4  ;;  %v1330_v13 = vadd.f32 %v1298_v36, %v1290_v63  ;;  %v1070_v14 = vrot.slane %v1069_v37, 4  ;;  %v1150_v43 = vrot.slane %v1149_v9, 4 }
 0x14d   : > { %v1249_v15 = vrot.slane %v1248_v10, 4  ;;  %v1057_v45 = vmax.f32 %v1055_v47, %v1056_v0  ;;  %v1137_v16 = vmin.f32 %v1135_v7, %v1136_v11  ;;  %v1344_v18 = vadd.f32 %v1300_v42, %v1292_v1 }
 0x14e   : > { %v1236_v17 = vadd.f32 %v1235_v12, %v1234_v8  ;;  %v1331_v19 = vrot.slane %v1330_v13, 4  ;;  %v1071_v21 = vmax.f32 %v1069_v37, %v1070_v14  ;;  %v1151_v22 = vmin.f32 %v1149_v9, %v1150_v43 }
 0x14f   : > { %v1250_v23 = vadd.f32 %v1249_v15, %v1248_v10  ;;  %v1058_v24 = vrot.slane %v1057_v45, 2  ;;  %v1138_v25 = vrot.slane %v1137_v16, 2  ;;  %v1345_v27 = vrot.slane %v1344_v18, 4 }
 0x150   : > { %v1237_v26 = vrot.slane %v1236_v17, 2  ;;  %v1332_v28 = vadd.f32 %v1331_v19, %v1330_v13  ;;  %v1072_v30 = vrot.slane %v1071_v21, 2  ;;  %v1152_v31 = vrot.slane %v1151_v22, 2 }
 0x151   : > { %v1251_v20 = vrot.slane %v1250_v23, 2  ;;  %v1059_v32 = vmax.f32 %v1057_v45, %v1058_v24  ;;  %v1139_v34 = vmin.f32 %v1137_v16, %v1138_v25  ;;  %v1346_v38 = vadd.f32 %v1345_v27, %v1344_v18 }
 0x152   : > { %v1238_v35 = vadd.f32 %v1237_v26, %v1236_v17  ;;  %v1333_v39 = vrot.slane %v1332_v28, 2  ;;  %v1073_v40 = vmax.f32 %v1071_v21, %v1072_v30  ;;  %v1153_v41 = vmin.f32 %v1151_v22, %v1152_v31 }
 0x153   : > { %v1252_v44 = vadd.f32 %v1251_v20, %v1250_v23  ;;  %v1060_v46 = vrot.slane %v1059_v32, 1  ;;  %v1140_v48 = vrot.slane %v1139_v34, 1  ;;  %v1347_v50 = vrot.slane %v1346_v38, 2 }
 0x154   : > { %v1239_v49 = vrot.slane %v1238_v35, 1  ;;  %v1334_v52 = vadd.f32 %v1333_v39, %v1332_v28  ;;  %v1074_v53 = vrot.slane %v1073_v40, 1  ;;  %v1154_v54 = vrot.slane %v1153_v41, 1 }
 0x155   : > { %v1253_v55 = vrot.slane %v1252_v44, 1  ;;  %v1061_v56 = vmax.f32 %v1059_v32, %v1060_v46  ;;  %v1141_v57 = vmin.f32 %v1139_v34, %v1140_v48  ;;  %v1348_v59 = vadd.f32 %v1347_v50, %v1346_v38 }
 0x156   : > { %v1240_v58 = vadd.f32 %v1239_v49, %v1238_v35  ;;  %v1335_v60 = vrot.slane %v1334_v52, 1  ;;  %v1075_v61 = vmax.f32 %v1073_v40, %v1074_v53  ;;  %v1155_v33 = vmin.f32 %v1153_v41, %v1154_v54 }
 0x157   : > { %v1254_v63 = vadd.f32 %v1253_v55, %v1252_v44  ;;  %v1349_v1 = vrot.slane %v1348_v59, 1  ;;  %1095 = vst [vmem:[%s2091_s23 + $0x20] sm:$0xff] %v1061_v56  ;;  %1175 = vst [vmem:[%s2096_s26 + $0x20] sm:$0xff] %v1141_v57  ;;  %v1062_v47 = vmax.f32 %v2138_v62, %v2154_v5  ;;  %v1142_v7 = vmin.f32 %v2138_v62, %v2154_v5 }
 0x158   : > { %v1336_v3 = vadd.f32 %v1335_v60, %v1334_v52  ;;  %1274 = vst [vmem:[%s2101_s12 + $0x20] sm:$0xff] %v1240_v58  ;;  %v1241_v8 = vadd.f32 %v2154_v5, %v2138_v62  ;;  %1097 = vst [vmem:[%s2091_s23 + $0x30] sm:$0xff] %v1075_v61  ;;  %v1299_v36 = vmul.f32 %v2154_v5, %v2154_v5 }
 0x159   : > { %v1350_v4 = vadd.f32 %v1349_v1, %v1348_v59  ;;  %1177 = vst [vmem:[%s2096_s26 + $0x30] sm:$0xff] %v1155_v33  ;;  %1276 = vst [vmem:[%s2101_s12 + $0x30] sm:$0xff] %v1254_v63  ;;  %v1076_v37 = vmax.f32 %v2145_v2, %v2157_v6  ;;  %v1156_v9 = vmin.f32 %v2145_v2, %v2157_v6  ;;  %v1063_v10 = vrot.slane %v1062_v47, 4 }
 0x15a   : > { %v1143_v0 = vrot.slane %v1142_v7, 4  ;;  %v1242_v11 = vrot.slane %v1241_v8, 4  ;;  %1370 = vst [vmem:[%s2106_s11 + $0x20] sm:$0xff] %v1336_v3  ;;  %v1337_v12 = vadd.f32 %v1299_v36, %v2151_v51  ;;  %v1255_v13 = vadd.f32 %v2157_v6, %v2145_v2 }
 0x15b   : > { %v1077_v42 = vrot.slane %v1076_v37, 4  ;;  %v1157_v62 = vrot.slane %v1156_v9, 4  ;;  %1372 = vst [vmem:[%s2106_s11 + $0x30] sm:$0xff] %v1350_v4  ;;  %v1064_v14 = vmax.f32 %v1062_v47, %v1063_v10  ;;  %v1301_v15 = vmul.f32 %v2157_v6, %v2157_v6 }
 0x15c   : > { %v1144_v5 = vmin.f32 %v1142_v7, %v1143_v0  ;;  %v1243_v43 = vadd.f32 %v1242_v11, %v1241_v8  ;;  %v1338_v45 = vrot.slane %v1337_v12, 4  ;;  %v1256_v18 = vrot.slane %v1255_v13, 4 }
 0x15d   : > { %v1078_v16 = vmax.f32 %v1076_v37, %v1077_v42  ;;  %v1158_v17 = vmin.f32 %v1156_v9, %v1157_v62  ;;  %v1065_v19 = vrot.slane %v1064_v14, 2  ;;  %v1351_v51 = vadd.f32 %v1301_v15, %v2161_v29 }
 0x15e   : > { %v1145_v21 = vrot.slane %v1144_v5, 2  ;;  %v1244_v22 = vrot.slane %v1243_v43, 2  ;;  %v1339_v23 = vadd.f32 %v1338_v45, %v1337_v12  ;;  %v1257_v2 = vadd.f32 %v1256_v18, %v1255_v13 }
 0x15f   : > { %v1079_v24 = vrot.slane %v1078_v16, 2  ;;  %v1159_v25 = vrot.slane %v1158_v17, 2  ;;  %v1066_v26 = vmax.f32 %v1064_v14, %v1065_v19  ;;  %v1352_v30 = vrot.slane %v1351_v51, 4 }
 0x160   : > { %v1146_v27 = vmin.f32 %v1144_v5, %v1145_v21  ;;  %v1245_v28 = vadd.f32 %v1244_v22, %v1243_v43  ;;  %v1340_v31 = vrot.slane %v1339_v23, 2  ;;  %v1258_v32 = vrot.slane %v1257_v2, 2 }
 0x161   : > { %v1080_v20 = vmax.f32 %v1078_v16, %v1079_v24  ;;  %v1160_v6 = vmin.f32 %v1158_v17, %v1159_v25  ;;  %v1067_v34 = vrot.slane %v1066_v26, 1  ;;  %v1353_v39 = vadd.f32 %v1352_v30, %v1351_v51 }
 0x162   : > { %v1147_v35 = vrot.slane %v1146_v27, 1  ;;  %v1246_v38 = vrot.slane %v1245_v28, 1  ;;  %v1341_v40 = vadd.f32 %v1340_v31, %v1339_v23  ;;  %v1259_v44 = vadd.f32 %v1258_v32, %v1257_v2 }
 0x163   : > { %v1081_v29 = vrot.slane %v1080_v20, 1  ;;  %v1161_v41 = vrot.slane %v1160_v6, 1  ;;  %v1068_v46 = vmax.f32 %v1066_v26, %v1067_v34  ;;  %v1354_v50 = vrot.slane %v1353_v39, 2 }
 0x164   : > { %v1148_v48 = vmin.f32 %v1146_v27, %v1147_v35  ;;  %v1247_v49 = vadd.f32 %v1246_v38, %v1245_v28  ;;  %v1342_v52 = vrot.slane %v1341_v40, 1  ;;  %v1260_v55 = vrot.slane %v1259_v44, 1 }
 0x165   : > { %v1082_v53 = vmax.f32 %v1080_v20, %v1081_v29  ;;  %v1162_v54 = vmin.f32 %v1160_v6, %v1161_v41  ;;  %v1355_v56 = vadd.f32 %v1354_v50, %v1353_v39  ;;  %1096 = vst [vmem:[%s2091_s23 + $0x28] sm:$0xff] %v1068_v46 }
 0x166   : > { %v1343_v57 = vadd.f32 %v1342_v52, %v1341_v40  ;;  %v1261_v58 = vadd.f32 %v1260_v55, %v1259_v44  ;;  %1176 = vst [vmem:[%s2096_s26 + $0x28] sm:$0xff] %v1148_v48  ;;  %1275 = vst [vmem:[%s2101_s12 + $0x28] sm:$0xff] %v1247_v49 }
 0x167   : > { %v1356_v59 = vrot.slane %v1355_v56, 1  ;;  %1098 = vst [vmem:[%s2091_s23 + $0x38] sm:$0xff] %v1082_v53  ;;  %1178 = vst [vmem:[%s2096_s26 + $0x38] sm:$0xff] %v1162_v54 }
 0x168   : > { %1371 = vst [vmem:[%s2106_s11 + $0x28] sm:$0xff] %v1343_v57  ;;  %1277 = vst [vmem:[%s2101_s12 + $0x38] sm:$0xff] %v1261_v58 }
 0x169   : > { %v1357_v60 = vadd.f32 %v1356_v59, %v1355_v56 }
 0x16b   : > { %1373 = vst [vmem:[%s2106_s11 + $0x38] sm:$0xff] %v1357_v60 }
 0x16c PF: > { %s20_s29 = sadd.s32 1, %s1731_s29   ;;  %s2225_s27 = smov %s1727_s28 }
 0x16d   : > { %p17_p6 = scmp.ge.s32.totalorder %s20_s29, 4   ;;  %s2226_s28 = smov %s2228_s9 }
 0x16f   :  { %19 = sbr.rel (!%p17_p6) target bundleno = 2 (0x2), region = 119 }
 0x176   :  { %1443 = vsyncpa [#allocation3], 1 }
 0x177   :  { %1445 = vsyncpa [#allocation3 + $0x1], 1 }

// kernel: _lambda_.7
= control target key start
LH: loop header
LB: loop body
LE: loop exit
PB: predicated region body
PF: predicated region fallthrough
CT: control target
= control target key end

     0   :  { %v56_v34 = vlaneseq  ;;  %v4062_v40 = vmov 1983009808   ;;  %vm2220_vm9 = vcmask 1041408   ;;  %vm3140_vm10 = vcmask 66560   ;;  %s5508_s4 = inlined_call_operand.vmem [shape: bf16[1024,512], index: 4, kind: input, shape index: {}]   ;;  %s5509_s2 = inlined_call_operand.vmem [shape: f32[1,1024], index: 2, kind: input, shape index: {}]   ;;  %s5510_s3 = inlined_call_operand.vmem [shape: f32[1,1024], index: 3, kind: input, shape index: {}]   ;;  %s5511_s0 = inlined_call_operand.vmem [shape: f32[2,1024], index: 0, kind: input, shape index: {}]   ;;  %s5512_s1 = inlined_call_operand.vmem [shape: f32[2,1024], index: 1, kind: input, shape index: {}]   ;;  %s5513_s5 = inlined_call_operand.vmem [shape: f32[1,512], index: 5, kind: input, shape index: {}]   ;;  %s5514_s8 = inlined_call_operand.vmem [shape: bf16[512,256], index: 8, kind: input, shape index: {}]   ;;  %s5515_s6 = inlined_call_operand.vmem [shape: f32[1,512], index: 6, kind: input, shape index: {}]   ;;  %s5516_s7 = inlined_call_operand.vmem [shape: f32[1,512], index: 7, kind: input, shape index: {}]   ;;  %s5517_s12 = inlined_call_operand.vmem [shape: f32[256,9], index: 12, kind: input, shape index: {}]   ;;  %s5518_s9 = inlined_call_operand.vmem [shape: f32[1,256], index: 9, kind: input, shape index: {}]   ;;  %s5519_s10 = inlined_call_operand.vmem [shape: f32[1,256], index: 10, kind: input, shape index: {}]   ;;  %s5520_s11 = inlined_call_operand.vmem [shape: f32[1,256], index: 11, kind: input, shape index: {}]   ;;  %s5521_s13 = inlined_call_operand.vmem [shape: f32[1,9], index: 13, kind: input, shape index: {}]   ;;  %s5522_s14 = inlined_call_operand.vmem [shape: f32[1,9], index: 14, kind: input, shape index: {}]   ;;  %s5523_s15 = inlined_call_operand.vmem [shape: f32[2,9], index: 15, kind: output, shape index: {}]  }
   0x1   :  { %v3570_v0 = vld [vmem:[%s5508_s4 + $0x4] ss:$16 sps:$4 sm:$0xff]   ;;  %v3574_v2 = vld [vmem:[%s5508_s4] ss:$16 sps:$4 sm:$0xff]   ;;  %v91_v41 = vunpack.c.l.s4 %v4062_v40 }
   0x2   :  { %v3572_v1 = vld [vmem:[%s5508_s4 + $0x204] ss:$16 sps:$4 sm:$0xff]   ;;  %1890 = vmatprep.subr.bf16.mxu1 %v3570_v0  ;;  %v3575_v3 = vld [vmem:[%s5508_s4 + $0x200] ss:$16 sps:$4 sm:$0xff]   ;;  %v4259_v39 = vshrl.u32 %v56_v34, 7 }
   0x3   :  { %1931 = vmatprep.subr.bf16.mxu0 %v3572_v1  ;;  %v3576_v4 = vld [vmem:[%s5508_s4 + $0x24] ss:$16 sps:$4 sm:$0xff]   ;;  %1891 = vmatpush1.bf16.msra.mxu1 %v3574_v2  ;;  %v3580_v6 = vld [vmem:[%s5508_s4 + $0x20] ss:$16 sps:$4 sm:$0xff]   ;;  %v92_v47 = vunpack.c.0.s8 %v91_v41  ;;  %v4063_v2 = vmov 0  }
   0x4   :  { %1932 = vmatpush1.bf16.msra.mxu0 %v3575_v3  ;;  %v3578_v5 = vld [vmem:[%s5508_s4 + $0x224] ss:$16 sps:$4 sm:$0xff]   ;;  %1892 = vmatprep.subr.bf16.mxu1 %v3576_v4  ;;  %v3581_v7 = vld [vmem:[%s5508_s4 + $0x220] ss:$16 sps:$4 sm:$0xff]   ;;  %v4274_v46 = vsub.s32 0, %v4259_v39  ;;  %v4283_v50 = vsub.s32 1, %v4259_v39 }
   0x5   :  { %1933 = vmatprep.subr.bf16.mxu0 %v3578_v5  ;;  %v3582_v8 = vld [vmem:[%s5508_s4 + $0x44] ss:$16 sps:$4 sm:$0xff]   ;;  %v3586_v10 = vld [vmem:[%s5508_s4 + $0x40] ss:$16 sps:$4 sm:$0xff]   ;;  %v4286_v51 = vsub.s32 2, %v4259_v39  ;;  %v4292_v53 = vsub.s32 3, %v4259_v39  ;;  %v4301_v56 = vsub.s32 %v92_v47, %v4259_v39 }
   0x6   :  { %v3584_v9 = vld [vmem:[%s5508_s4 + $0x244] ss:$16 sps:$4 sm:$0xff]   ;;  %v3587_v11 = vld [vmem:[%s5508_s4 + $0x240] ss:$16 sps:$4 sm:$0xff]   ;;  %v4304_v57 = vsub.s32 4, %v4259_v39  ;;  %v4307_v58 = vsub.s32 5, %v4259_v39 }
   0x7   :  { %1893 = vmatpush1.bf16.msra.mxu1 %v3580_v6  ;;  %v3588_v12 = vld [vmem:[%s5508_s4 + $0x64] ss:$16 sps:$4 sm:$0xff]   ;;  %v3592_v14 = vld [vmem:[%s5508_s4 + $0x60] ss:$16 sps:$4 sm:$0xff]   ;;  %v4327_v4 = vsub.s32 6, %v4259_v39 }
   0x8   :  { %1934 = vmatpush1.bf16.msra.mxu0 %v3581_v7  ;;  %1894 = vmatprep.subr.bf16.mxu1 %v3582_v8  ;;  %v3590_v13 = vld [vmem:[%s5508_s4 + $0x264] ss:$16 sps:$4 sm:$0xff]   ;;  %v3593_v15 = vld [vmem:[%s5508_s4 + $0x260] ss:$16 sps:$4 sm:$0xff]   ;;  %v4336_v8 = vsub.s32 7, %v4259_v39 }
   0x9   :  { %1935 = vmatprep.subr.bf16.mxu0 %v3584_v9  ;;  %v3594_v16 = vld [vmem:[%s5508_s4 + $0x84] ss:$16 sps:$4 sm:$0xff]   ;;  %v3598_v18 = vld [vmem:[%s5508_s4 + $0x80] ss:$16 sps:$4 sm:$0xff]  }
   0xa   :  { %v3596_v17 = vld [vmem:[%s5508_s4 + $0x284] ss:$16 sps:$4 sm:$0xff]   ;;  %v3599_v19 = vld [vmem:[%s5508_s4 + $0x280] ss:$16 sps:$4 sm:$0xff]  }
   0xb   :  { %1895 = vmatpush1.bf16.msra.mxu1 %v3586_v10  ;;  %v3600_v20 = vld [vmem:[%s5508_s4 + $0xa4] ss:$16 sps:$4 sm:$0xff]   ;;  %v3604_v22 = vld [vmem:[%s5508_s4 + $0xa0] ss:$16 sps:$4 sm:$0xff]  }
   0xc   :  { %1936 = vmatpush1.bf16.msra.mxu0 %v3587_v11  ;;  %1896 = vmatprep.subr.bf16.mxu1 %v3588_v12  ;;  %v3602_v21 = vld [vmem:[%s5508_s4 + $0x2a4] ss:$16 sps:$4 sm:$0xff]   ;;  %v3605_v23 = vld [vmem:[%s5508_s4 + $0x2a0] ss:$16 sps:$4 sm:$0xff]  }
   0xd   :  { %1937 = vmatprep.subr.bf16.mxu0 %v3590_v13  ;;  %v3606_v24 = vld [vmem:[%s5508_s4 + $0xc4] ss:$16 sps:$4 sm:$0xff]   ;;  %v3610_v26 = vld [vmem:[%s5508_s4 + $0xc0] ss:$16 sps:$4 sm:$0xff]  }
   0xe   :  { %v3608_v25 = vld [vmem:[%s5508_s4 + $0x2c4] ss:$16 sps:$4 sm:$0xff]   ;;  %v3611_v27 = vld [vmem:[%s5508_s4 + $0x2c0] ss:$16 sps:$4 sm:$0xff]  }
   0xf   :  { %1897 = vmatpush1.bf16.msra.mxu1 %v3592_v14  ;;  %v3612_v28 = vld [vmem:[%s5508_s4 + $0xe4] ss:$16 sps:$4 sm:$0xff]   ;;  %v3616_v30 = vld [vmem:[%s5508_s4 + $0xe0] ss:$16 sps:$4 sm:$0xff]  }
  0x10   :  { %1938 = vmatpush1.bf16.msra.mxu0 %v3593_v15  ;;  %1898 = vmatprep.subr.bf16.mxu1 %v3594_v16  ;;  %v3614_v29 = vld [vmem:[%s5508_s4 + $0x2e4] ss:$16 sps:$4 sm:$0xff]   ;;  %v3617_v31 = vld [vmem:[%s5508_s4 + $0x2e0] ss:$16 sps:$4 sm:$0xff]  }
  0x11   :  { %1939 = vmatprep.subr.bf16.mxu0 %v3596_v17  ;;  %v3618_v32 = vld [vmem:[%s5508_s4 + $0x104] ss:$16 sps:$4 sm:$0xff]   ;;  %v3622_v35 = vld [vmem:[%s5508_s4 + $0x100] ss:$16 sps:$4 sm:$0xff]  }
  0x12   :  { %v3620_v33 = vld [vmem:[%s5508_s4 + $0x304] ss:$16 sps:$4 sm:$0xff]   ;;  %v3623_v36 = vld [vmem:[%s5508_s4 + $0x300] ss:$16 sps:$4 sm:$0xff]  }
  0x13   :  { %1899 = vmatpush1.bf16.msra.mxu1 %v3598_v18  ;;  %v3624_v37 = vld [vmem:[%s5508_s4 + $0x124] ss:$16 sps:$4 sm:$0xff]   ;;  %v3628_v42 = vld [vmem:[%s5508_s4 + $0x120] ss:$16 sps:$4 sm:$0xff]  }
  0x14   :  { %1940 = vmatpush1.bf16.msra.mxu0 %v3599_v19  ;;  %1900 = vmatprep.subr.bf16.mxu1 %v3600_v20  ;;  %v3626_v38 = vld [vmem:[%s5508_s4 + $0x324] ss:$16 sps:$4 sm:$0xff]   ;;  %v3629_v43 = vld [vmem:[%s5508_s4 + $0x320] ss:$16 sps:$4 sm:$0xff]  }
  0x15   :  { %1941 = vmatprep.subr.bf16.mxu0 %v3602_v21  ;;  %v3630_v44 = vld [vmem:[%s5508_s4 + $0x144] ss:$16 sps:$4 sm:$0xff]   ;;  %v3634_v48 = vld [vmem:[%s5508_s4 + $0x140] ss:$16 sps:$4 sm:$0xff]  }
  0x16   :  { %v3632_v45 = vld [vmem:[%s5508_s4 + $0x344] ss:$16 sps:$4 sm:$0xff]   ;;  %v3635_v49 = vld [vmem:[%s5508_s4 + $0x340] ss:$16 sps:$4 sm:$0xff]  }
  0x17   :  { %1901 = vmatpush1.bf16.msra.mxu1 %v3604_v22  ;;  %v3636_v52 = vld [vmem:[%s5508_s4 + $0x164] ss:$16 sps:$4 sm:$0xff]   ;;  %v3640_v59 = vld [vmem:[%s5508_s4 + $0x160] ss:$16 sps:$4 sm:$0xff]  }
  0x18   :  { %1942 = vmatpush1.bf16.msra.mxu0 %v3605_v23  ;;  %1902 = vmatprep.subr.bf16.mxu1 %v3606_v24  ;;  %v3638_v54 = vld [vmem:[%s5508_s4 + $0x364] ss:$16 sps:$4 sm:$0xff]   ;;  %v3641_v63 = vld [vmem:[%s5508_s4 + $0x360] ss:$16 sps:$4 sm:$0xff]  }
  0x19   :  { %1943 = vmatprep.subr.bf16.mxu0 %v3608_v25  ;;  %v50_v55 = vld [vmem:[%s5509_s2] sm:$0xff] }
  0x1a   :  { %vm52_vm0 = vcmp.ge.f32.partialorder %v50_v55, 0.0  ;;  %v59_v60 = vrot.slane %v50_v55, %v4274_v46  ;;  %v63_v61 = vrot.slane %v50_v55, %v4283_v50  ;;  %v67_v62 = vrot.slane %v50_v55, %v4286_v51  ;;  %v4321_v0 = vld [vmem:[%s5510_s3] sm:$0xff] }
  0x1b   :  { %1903 = vmatpush1.bf16.msra.mxu1 %v3610_v26  ;;  %v71_v1 = vrot.slane %v50_v55, %v4292_v53  ;;  %v4324_v3 = vsel %vm52_vm0, 1, %v4063_v2  ;;  %v3642_v5 = vld [vmem:[%s5508_s4 + $0x184] ss:$16 sps:$4 sm:$0xff]   ;;  %v3646_v9 = vld [vmem:[%s5508_s4 + $0x180] ss:$16 sps:$4 sm:$0xff]   ;;  %v275_v14 = vrot.slane %v4321_v0, %v4283_v50  ;;  %v75_v20 = vrot.slane %v50_v55, %v4304_v57 }
  0x1c   :  { %1944 = vmatpush1.bf16.msra.mxu0 %v3611_v27  ;;  %1904 = vmatprep.subr.bf16.mxu1 %v3612_v28  ;;  %v3644_v6 = vld [vmem:[%s5508_s4 + $0x384] ss:$16 sps:$4 sm:$0xff]   ;;  %v88_v7 = vcombine.low %v59_v60, %v63_v61  ;;  %v3647_v11 = vld [vmem:[%s5508_s4 + $0x380] ss:$16 sps:$4 sm:$0xff]   ;;  %v138_v13 = vrot.slane %v4324_v3, %v4283_v50  ;;  %v134_v19 = vrot.slane %v4324_v3, %v4274_v46 }
  0x1d   :  { %1945 = vmatprep.subr.bf16.mxu0 %v3614_v29  ;;  %v89_v10 = vcombine.low %v67_v62, %v71_v1  ;;  %v3648_v15 = vld [vmem:[%s5508_s4 + $0x1a4] ss:$16 sps:$4 sm:$0xff]   ;;  %v79_v22 = vrot.slane %v50_v55, %v4307_v58  ;;  %v83_v23 = vrot.slane %v50_v55, %v4327_v4  ;;  %v87_v24 = vrot.slane %v50_v55, %v4336_v8  ;;  %v3652_v29 = vld [vmem:[%s5508_s4 + $0x1a0] ss:$16 sps:$4 sm:$0xff]   ;;  %v54_v55 = vld [vmem:[%s5511_s0 + $0x8] sm:$0xff] }
  0x1e   :  { %v96_v12 = vrot.slane %v88_v7, %v4301_v56  ;;  %v3650_v16 = vld [vmem:[%s5508_s4 + $0x3a4] ss:$16 sps:$4 sm:$0xff]   ;;  %v271_v26 = vrot.slane %v4321_v0, %v4274_v46  ;;  %v146_v27 = vrot.slane %v4324_v3, %v4292_v53  ;;  %v150_v28 = vrot.slane %v4324_v3, %v4304_v57  ;;  %v3653_v34 = vld [vmem:[%s5508_s4 + $0x3a0] ss:$16 sps:$4 sm:$0xff]  }
  0x1f   :  { %1905 = vmatpush1.bf16.msra.mxu1 %v3616_v30  ;;  %v53_v17 = vld [vmem:[%s5511_s0] sm:$0xff]  ;;  %v103_v18 = vrot.slane %v89_v10, %v4301_v56  ;;  %v283_v30 = vrot.slane %v4321_v0, %v4292_v53  ;;  %vm4387_vm1 = vcmp.eq.s32.totalorder %v138_v13, 1  ;;  %v142_v40 = vrot.slane %v4324_v3, %v4286_v51 }
  0x20   :  { %1946 = vmatpush1.bf16.msra.mxu0 %v3617_v31  ;;  %1906 = vmatprep.subr.bf16.mxu1 %v3618_v32  ;;  %v126_v21 = vld [vmem:[%s5512_s1] sm:$0xff]  ;;  %v105_v31 = vcombine.low %v75_v20, %v79_v22  ;;  %v106_v32 = vcombine.low %v83_v23, %v87_v24  ;;  %vm4396_vm2 = vcmp.eq.s32.totalorder %v134_v19, 1  ;;  %vm4415_vm3 = vcmp.eq.s32.totalorder %v146_v27, 1 }
  0x21   :  { %1947 = vmatprep.subr.bf16.mxu0 %v3620_v33  ;;  %v104_v25 = vcombine.low %v96_v12, %v103_v18  ;;  %v287_v33 = vrot.slane %v4321_v0, %v4304_v57  ;;  %v3656_v41 = vld [vmem:[%s5508_s4 + $0x3c4] ss:$16 sps:$4 sm:$0xff]   ;;  %v3658_v47 = vld [vmem:[%s5508_s4 + $0x1c0] ss:$16 sps:$4 sm:$0xff]   ;;  %v154_v62 = vrot.slane %v4324_v3, %v4307_v58  ;;  %vm4431_vm4 = vcmp.eq.s32.totalorder %v142_v40, 1 }
  0x22   :  { %v3659_v1 = vld [vmem:[%s5508_s4 + $0x3c0] ss:$16 sps:$4 sm:$0xff]   ;;  %v3660_v2 = vld [vmem:[%s5508_s4 + $0x1e4] ss:$16 sps:$4 sm:$0xff]   ;;  %vm4440_vm5 = vcmp.eq.s32.totalorder %v150_v28, 1  ;;  %v162_v18 = vrot.slane %v4324_v3, %v4336_v8  ;;  %v158_v60 = vrot.slane %v4324_v3, %v4327_v4 }
  0x23   :  { %1907 = vmatpush1.bf16.msra.mxu1 %v3622_v35  ;;  %v3654_v35 = vld [vmem:[%s5508_s4 + $0x1c4] ss:$16 sps:$4 sm:$0xff]   ;;  %v3664_v23 = vld [vmem:[%s5508_s4 + $0x1e0] ss:$16 sps:$4 sm:$0xff]   ;;  %vm4459_vm6 = vcmp.eq.s32.totalorder %v154_v62, 1 }
  0x24   :  { %1948 = vmatpush1.bf16.msra.mxu0 %v3623_v36  ;;  %1908 = vmatprep.subr.bf16.mxu1 %v3624_v37  ;;  %v124_v36 = vmul.f32 %v104_v25, %v53_v17  ;;  %v128_v37 = vmul.f32 %v126_v21, %v104_v25  ;;  %v3665_v24 = vld [vmem:[%s5508_s4 + $0x3e0] ss:$16 sps:$4 sm:$0xff]   ;;  %v3674_v62 = vld [vmem:[%s5508_s4 + $0x424] ss:$16 sps:$4 sm:$0xff]   ;;  %vm170_vm7 = vcmp.eq.s32.totalorder %v162_v18, 1  ;;  %vm169_vm8 = vcmp.eq.s32.totalorder %v158_v60, 1 }
  0x25   :  { %1949 = vmatprep.subr.bf16.mxu0 %v3626_v38  ;;  %v3686_v13 = vld [vmem:[%s5508_s4 + $0x464] ss:$16 sps:$4 sm:$0xff]   ;;  %v3741_v60 = vld [vmem:[%s5508_s4 + $0x188] ss:$16 sps:$4 sm:$0xff]  }
  0x26   :  { %v3692_v18 = vld [vmem:[%s5508_s4 + $0x484] ss:$16 sps:$4 sm:$0xff]  }
  0x27   :  { %1909 = vmatpush1.bf16.msra.mxu1 %v3628_v42 }
  0x28   :  { %1950 = vmatpush1.bf16.msra.mxu0 %v3629_v43  ;;  %1910 = vmatprep.subr.bf16.mxu1 %v3630_v44  ;;  %v279_v43 = vrot.slane %v4321_v0, %v4286_v51  ;;  %v113_v44 = vrot.slane %v105_v31, %v4301_v56 }
  0x29   :  { %1951 = vmatprep.subr.bf16.mxu0 %v3632_v45  ;;  %v120_v45 = vrot.slane %v106_v32, %v4301_v56  ;;  %v3668_v32 = vld [vmem:[%s5508_s4 + $0x404] ss:$16 sps:$4 sm:$0xff]  }
  0x2b   :  { %1911 = vmatpush1.bf16.msra.mxu1 %v3634_v48  ;;  %v180_v48 = vrot.slane %v124_v36, %v4301_v56  ;;  %v121_v61 = vcombine.low %v113_v44, %v120_v45  ;;  %v3669_v45 = vld [vmem:[%s5508_s4 + $0x8] ss:$16 sps:$4 sm:$0xff]  }
  0x2c   :  { %1952 = vmatpush1.bf16.msra.mxu0 %v3635_v49  ;;  %1912 = vmatprep.subr.bf16.mxu1 %v3636_v52  ;;  %v224_v49 = vrot.slane %v128_v37, %v4301_v56  ;;  %v173_v52 = vcombine.high %v124_v36, %v124_v36  ;;  %v3671_v36 = vld [vmem:[%s5508_s4 + $0xc] ss:$16 sps:$4 sm:$0xff]  }
  0x2d   :  { %1953 = vmatprep.subr.bf16.mxu0 %v3638_v54  ;;  %v217_v54 = vcombine.high %v128_v37, %v128_v37 }
  0x2e   :  { %v259_v7 = vsel %vm4396_vm2, %v180_v48, %v224_v49 }
  0x2f   :  { %1913 = vmatpush1.bf16.msra.mxu1 %v3640_v59  ;;  %v127_v59 = vld [vmem:[%s5512_s1 + $0x8] sm:$0xff]  ;;  %v308_v10 = vadd.f32 %v271_v26, %v259_v7  ;;  %v231_v12 = vrot.slane %v217_v54, %v4301_v56  ;;  %v3704_v26 = vld [vmem:[%s5508_s4 + $0x4c4] ss:$16 sps:$4 sm:$0xff]  }
  0x30   :  { %1954 = vmatpush1.bf16.msra.mxu0 %v3641_v63  ;;  %1914 = vmatprep.subr.bf16.mxu1 %v3642_v5  ;;  %v291_v63 = vrot.slane %v4321_v0, %v4307_v58  ;;  %v188_v5 = vcombine.high %v180_v48, %v180_v48  ;;  %v3662_v58 = vld [vmem:[%s5508_s4 + $0x3e4] ss:$16 sps:$4 sm:$0xff]   ;;  %v129_v17 = vmul.f32 %v127_v59, %v121_v61  ;;  %v3666_v59 = vld [vmem:[%s5508_s4 + $0x400] ss:$16 sps:$4 sm:$0xff]  }
  0x31   :  { %1955 = vmatprep.subr.bf16.mxu0 %v3644_v6  ;;  %v232_v6 = vcombine.high %v224_v49, %v224_v49  ;;  %v316_v20 = vmax.f32 %v308_v10, 0.0  ;;  %v233_v22 = vcombine.high %v231_v12, %v231_v12  ;;  %v299_v49 = vrot.slane %v4321_v0, %v4336_v8  ;;  %v3681_v10 = vld [vmem:[%s5508_s4 + $0x48] ss:$16 sps:$4 sm:$0xff]  }
  0x32   :  { %v241_v27 = vrot.slane %v129_v17, %v4301_v56  ;;  %v234_v48 = vcombine.high %v129_v17, %v129_v17  ;;  %v3684_v17 = vld [vmem:[%s5508_s4 + $0x460] ss:$16 sps:$4 sm:$0xff]  }
  0x33   :  { %1915 = vmatpush1.bf16.msra.mxu1 %v3646_v9  ;;  %v3680_v9 = vld [vmem:[%s5508_s4 + $0x444] ss:$16 sps:$4 sm:$0xff]  }
  0x34   :  { %1956 = vmatpush1.bf16.msra.mxu0 %v3647_v11  ;;  %1916 = vmatprep.subr.bf16.mxu1 %v3648_v15  ;;  %v187_v11 = vrot.slane %v173_v52, %v4301_v56  ;;  %v260_v15 = vsel %vm4387_vm1, %v188_v5, %v232_v6  ;;  %v249_v38 = vcombine.high %v241_v27, %v241_v27  ;;  %v3672_v5 = vld [vmem:[%s5508_s4 + $0x420] ss:$16 sps:$4 sm:$0xff]  }
  0x35   :  { %1957 = vmatprep.subr.bf16.mxu0 %v3650_v16  ;;  %v125_v16 = vmul.f32 %v121_v61, %v54_v55  ;;  %v309_v19 = vadd.f32 %v275_v14, %v260_v15  ;;  %v248_v8 = vrot.slane %v234_v48, %v4301_v56  ;;  %v295_v61 = vrot.slane %v4321_v0, %v4327_v4  ;;  %v3683_v0 = vld [vmem:[%s5508_s4 + $0x4c] ss:$16 sps:$4 sm:$0xff]   ;;  %v3687_v15 = vld [vmem:[%s5508_s4 + $0x68] ss:$16 sps:$4 sm:$0xff]  }
  0x36   :  { %v189_v21 = vcombine.high %v187_v11, %v187_v11  ;;  %v261_v25 = vsel %vm4431_vm4, %v187_v11, %v231_v12  ;;  %v3689_v11 = vld [vmem:[%s5508_s4 + $0x6c] ss:$16 sps:$4 sm:$0xff]   ;;  %v3678_v12 = vld [vmem:[%s5508_s4 + $0x440] ss:$16 sps:$4 sm:$0xff]  }
  0x37   :  { %1917 = vmatpush1.bf16.msra.mxu1 %v3652_v29  ;;  %v197_v14 = vrot.slane %v125_v16, %v4301_v56  ;;  %v317_v28 = vmax.f32 %v309_v19, 0.0  ;;  %v4465_v29 = vpack.c.bf16 %v316_v20, %v316_v20  ;;  %v250_v3 = vcombine.high %v248_v8, %v248_v8  ;;  %v3693_v19 = vld [vmem:[%s5508_s4 + $0x88] ss:$16 sps:$4 sm:$0xff]   ;;  %v3701_v20 = vld [vmem:[%s5508_s4 + $0xac] ss:$16 sps:$4 sm:$0xff]  }
  0x38   :  { %1958 = vmatpush1.bf16.msra.mxu0 %v3653_v34  ;;  %1918 = vmatprep.subr.bf16.mxu1 %v3654_v35  ;;  %v262_v31 = vsel %vm4415_vm3, %v189_v21, %v233_v22  ;;  %v310_v34 = vadd.f32 %v279_v43, %v261_v25  ;;  %v190_v43 = vcombine.high %v125_v16, %v125_v16  ;;  %v3695_v16 = vld [vmem:[%s5508_s4 + $0x8c] ss:$16 sps:$4 sm:$0xff]   ;;  %v3690_v21 = vld [vmem:[%s5508_s4 + $0x480] ss:$16 sps:$4 sm:$0xff]   ;;  %v3698_v22 = vld [vmem:[%s5508_s4 + $0x4a4] ss:$16 sps:$4 sm:$0xff]  }
  0x39   :  { %1959 = vmatprep.subr.bf16.mxu0 %v3656_v41  ;;  %v311_v35 = vadd.f32 %v283_v30, %v262_v31  ;;  %v205_v37 = vcombine.high %v197_v14, %v197_v14  ;;  %v263_v40 = vsel %vm4440_vm5, %v197_v14, %v241_v27  ;;  %v325_v41 = vpack.c.bf16 %v317_v28, %v317_v28  ;;  %v3696_v25 = vld [vmem:[%s5508_s4 + $0x4a0] ss:$16 sps:$4 sm:$0xff]   ;;  %v3705_v14 = vld [vmem:[%s5508_s4 + $0xc8] ss:$16 sps:$4 sm:$0xff]   ;;  %v3713_v27 = vld [vmem:[%s5508_s4 + $0xec] ss:$16 sps:$4 sm:$0xff]  }
  0x3a   :  { %v318_v42 = vmax.f32 %v310_v34, 0.0  ;;  %v4483_v44 = vadd.f32 %v287_v33, %v263_v40  ;;  %v3677_v33 = vld [vmem:[%s5508_s4 + $0x2c] ss:$16 sps:$4 sm:$0xff]   ;;  %v204_v54 = vrot.slane %v190_v43, %v4301_v56  ;;  %v3675_v56 = vld [vmem:[%s5508_s4 + $0x28] ss:$16 sps:$4 sm:$0xff]  }
  0x3b   :  { %1919 = vmatpush1.bf16.msra.mxu1 %v3658_v47  ;;  %v319_v30 = vmax.f32 %v311_v35, 0.0  ;;  %v264_v47 = vsel %vm4459_vm6, %v205_v37, %v249_v38  ;;  %1922 = vmatprep.mubr.bf16.mxu1 %v325_v41  ;;  %v3702_v28 = vld [vmem:[%s5508_s4 + $0x4c0] ss:$16 sps:$4 sm:$0xff]   ;;  %v3710_v31 = vld [vmem:[%s5508_s4 + $0x4e4] ss:$16 sps:$4 sm:$0xff]  }
  0x3c   :  { %1960 = vmatpush1.bf16.msra.mxu0 %v3659_v1  ;;  %1920 = vmatprep.subr.bf16.mxu1 %v3660_v2  ;;  %v4492_v57 = vpack.c.bf16 %v318_v42, %v318_v42  ;;  %v313_v52 = vadd.f32 %v291_v63, %v264_v47  ;;  %v206_v1 = vcombine.high %v204_v54, %v204_v54  ;;  %v3719_v34 = vld [vmem:[%s5508_s4 + $0x10c] ss:$16 sps:$4 sm:$0xff]   ;;  %v3708_v35 = vld [vmem:[%s5508_s4 + $0x4e0] ss:$16 sps:$4 sm:$0xff]   ;;  %v3717_v37 = vld [vmem:[%s5508_s4 + $0x108] ss:$16 sps:$4 sm:$0xff]  }
  0x3d   :  { %1961 = vmatprep.subr.bf16.mxu0 %v3662_v58  ;;  %v4498_v55 = vpack.c.bf16 %v319_v30, %v319_v30  ;;  %v265_v2 = vsel %vm169_vm8, %v204_v54, %v248_v8  ;;  %v3725_v38 = vld [vmem:[%s5508_s4 + $0x12c] ss:$16 sps:$4 sm:$0xff]   ;;  %v3714_v40 = vld [vmem:[%s5508_s4 + $0x500] ss:$16 sps:$4 sm:$0xff]   ;;  %v3723_v42 = vld [vmem:[%s5508_s4 + $0x128] ss:$16 sps:$4 sm:$0xff]  }
  0x3e   :  { %v321_v63 = vmax.f32 %v313_v52, 0.0  ;;  %v266_v6 = vsel %vm170_vm7, %v206_v1, %v250_v3  ;;  %v4525_v7 = vadd.f32 %v295_v61, %v265_v2  ;;  %v3731_v43 = vld [vmem:[%s5508_s4 + $0x14c] ss:$16 sps:$4 sm:$0xff]   ;;  %v3720_v30 = vld [vmem:[%s5508_s4 + $0x520] ss:$16 sps:$4 sm:$0xff]  }
  0x3f   :  { %1921 = vmatpush1.bf16.msra.mxu1 %v3664_v23  ;;  %1963 = vmatprep.mubr.bf16.mxu0 %v4498_v55  ;;  %v4531_v58 = vadd.f32 %v299_v49, %v266_v6  ;;  %v3699_v23 = vld [vmem:[%s5508_s4 + $0xa8] ss:$16 sps:$4 sm:$0xff]   ;;  %v3737_v48 = vld [vmem:[%s5508_s4 + $0x16c] ss:$16 sps:$4 sm:$0xff]   ;;  %v3726_v49 = vld [vmem:[%s5508_s4 + $0x540] ss:$16 sps:$4 sm:$0xff]  }
  0x40   :  { %1962 = vmatpush1.bf16.msra.mxu0 %v3665_v24  ;;  %2054 = vmatprep.subr.bf16.mxu1 %v3671_v36  ;;  %v4520_v4 = vpack.c.bf16 %v321_v63, %v321_v63  ;;  %v3707_v24 = vld [vmem:[%s5508_s4 + $0xcc] ss:$16 sps:$4 sm:$0xff]   ;;  %v3716_v36 = vld [vmem:[%s5508_s4 + $0x504] ss:$16 sps:$4 sm:$0xff]   ;;  %v3729_v47 = vld [vmem:[%s5508_s4 + $0x148] ss:$16 sps:$4 sm:$0xff]  }
  0x41   :  { %1972 = vmatprep.subr.bf16.mxu0 %v3668_v32  ;;  %v3711_v32 = vld [vmem:[%s5508_s4 + $0xe8] ss:$16 sps:$4 sm:$0xff]   ;;  %v3743_v54 = vld [vmem:[%s5508_s4 + $0x18c] ss:$16 sps:$4 sm:$0xff]   ;;  %v3740_v8 = vld [vmem:[%s5508_s4 + $0x584] ss:$16 sps:$4 sm:$0xff]  }
  0x42   :  { %1923 = vmatmul.mubr.bf16.vlgmr.msra.gmra.mrb[0].mxu1 %v4465_v29  ;;  %v3735_v52 = vld [vmem:[%s5508_s4 + $0x168] ss:$16 sps:$4 sm:$0xff]   ;;  %v3749_v61 = vld [vmem:[%s5508_s4 + $0x1ac] ss:$16 sps:$4 sm:$0xff]   ;;  %v3746_v63 = vld [vmem:[%s5508_s4 + $0x5a4] ss:$16 sps:$4 sm:$0xff]  }
  0x43   :  { %2055 = vmatpush1.bf16.msra.mxu1 %v3669_v45  ;;  %1964 = vmatmul.mubr.bf16.vlgmr.msra.gmra.mrb[0].mxu0 %v4492_v57  ;;  %v3728_v45 = vld [vmem:[%s5508_s4 + $0x544] ss:$16 sps:$4 sm:$0xff]   ;;  %v3747_v1 = vld [vmem:[%s5508_s4 + $0x1a8] ss:$16 sps:$4 sm:$0xff]   ;;  %v3744_v3 = vld [vmem:[%s5508_s4 + $0x5a0] ss:$16 sps:$4 sm:$0xff]  }
  0x44   :  { %2056 = vmatprep.subr.bf16.mxu1 %v3677_v33  ;;  %1973 = vmatpush1.bf16.msra.mxu0 %v3666_v59  ;;  %v3734_v33 = vld [vmem:[%s5508_s4 + $0x564] ss:$16 sps:$4 sm:$0xff]   ;;  %v3732_v59 = vld [vmem:[%s5508_s4 + $0x560] ss:$16 sps:$4 sm:$0xff]   ;;  %v3753_v2 = vld [vmem:[%s5508_s4 + $0x1c8] ss:$16 sps:$4 sm:$0xff]  }
  0x45   :  { %2086 = vmatprep.mubr.bf16.mxu1 %v325_v41  ;;  %1974 = vmatprep.subr.bf16.mxu0 %v3674_v62  ;;  %v3722_v41 = vld [vmem:[%s5508_s4 + $0x524] ss:$16 sps:$4 sm:$0xff]   ;;  %v3738_v62 = vld [vmem:[%s5508_s4 + $0x580] ss:$16 sps:$4 sm:$0xff]  }
  0x46   :  { %2004 = vmatprep.mubr.bf16.mxu0 %v4520_v4  ;;  %v3750_v6 = vld [vmem:[%s5508_s4 + $0x5c0] ss:$16 sps:$4 sm:$0xff]  }
  0x47   :  { %2057 = vmatpush1.bf16.msra.mxu1 %v3675_v56  ;;  %v3755_v56 = vld [vmem:[%s5508_s4 + $0x1cc] ss:$16 sps:$4 sm:$0xff]  }
  0x48   :  { %2058 = vmatprep.subr.bf16.mxu1 %v3683_v0  ;;  %1975 = vmatpush1.bf16.msra.mxu0 %v3672_v5  ;;  %v3752_v0 = vld [vmem:[%s5508_s4 + $0x5c4] ss:$16 sps:$4 sm:$0xff]   ;;  %v3761_v5 = vld [vmem:[%s5508_s4 + $0x1ec] ss:$16 sps:$4 sm:$0xff]  }
  0x49   :  { %1976 = vmatprep.subr.bf16.mxu0 %v3680_v9  ;;  %v3758_v9 = vld [vmem:[%s5508_s4 + $0x5e4] ss:$16 sps:$4 sm:$0xff]  }
  0x4b   :  { %2059 = vmatpush1.bf16.msra.mxu1 %v3681_v10  ;;  %v3759_v10 = vld [vmem:[%s5508_s4 + $0x1e8] ss:$16 sps:$4 sm:$0xff]  }
  0x4c   :  { %2060 = vmatprep.subr.bf16.mxu1 %v3689_v11  ;;  %1977 = vmatpush1.bf16.msra.mxu0 %v3678_v12  ;;  %v3767_v11 = vld [vmem:[%s5508_s4 + $0x20c] ss:$16 sps:$4 sm:$0xff]   ;;  %v320_v12 = vmax.f32 %v4483_v44, 0.0 }
  0x4d   :  { %1978 = vmatprep.subr.bf16.mxu0 %v3686_v13  ;;  %v3756_v13 = vld [vmem:[%s5508_s4 + $0x5e0] ss:$16 sps:$4 sm:$0xff]   ;;  %v3773_v44 = vld [vmem:[%s5508_s4 + $0x22c] ss:$16 sps:$4 sm:$0xff]  }
  0x4f   :  { %2061 = vmatpush1.bf16.msra.mxu1 %v3687_v15  ;;  %v323_v15 = vmax.f32 %v4531_v58, 0.0  ;;  %v3762_v58 = vld [vmem:[%s5508_s4 + $0x600] ss:$16 sps:$4 sm:$0xff]  }
  0x50   :  { %2062 = vmatprep.subr.bf16.mxu1 %v3695_v16  ;;  %1979 = vmatpush1.bf16.msra.mxu0 %v3684_v17  ;;  %v3764_v16 = vld [vmem:[%s5508_s4 + $0x604] ss:$16 sps:$4 sm:$0xff]   ;;  %v3765_v17 = vld [vmem:[%s5508_s4 + $0x208] ss:$16 sps:$4 sm:$0xff]  }
  0x51   :  { %1980 = vmatprep.subr.bf16.mxu0 %v3692_v18  ;;  %v4706_v18 = vpack.c.bf16 %v320_v12, %v320_v12  ;;  %v3834_v12 = vld [vmem:[%s5508_s4 + $0x780] ss:$16 sps:$4 sm:$0xff]  }
  0x53   :  { %2063 = vmatpush1.bf16.msra.mxu1 %v3693_v19  ;;  %v4714_v19 = vpack.c.bf16 %v323_v15, %v323_v15  ;;  %v3843_v15 = vld [vmem:[%s5508_s4 + $0x3a8] ss:$16 sps:$4 sm:$0xff]  }
  0x54   :  { %2064 = vmatprep.subr.bf16.mxu1 %v3701_v20  ;;  %1981 = vmatpush1.bf16.msra.mxu0 %v3690_v21  ;;  %v3770_v20 = vld [vmem:[%s5508_s4 + $0x624] ss:$16 sps:$4 sm:$0xff]   ;;  %v3771_v21 = vld [vmem:[%s5508_s4 + $0x228] ss:$16 sps:$4 sm:$0xff]  }
  0x55   :  { %1982 = vmatprep.subr.bf16.mxu0 %v3698_v22  ;;  %v3779_v22 = vld [vmem:[%s5508_s4 + $0x24c] ss:$16 sps:$4 sm:$0xff]  }
  0x57   :  { %2065 = vmatpush1.bf16.msra.mxu1 %v3699_v23  ;;  %v3776_v23 = vld [vmem:[%s5508_s4 + $0x644] ss:$16 sps:$4 sm:$0xff]  }
  0x58   :  { %2066 = vmatprep.subr.bf16.mxu1 %v3707_v24  ;;  %1983 = vmatpush1.bf16.msra.mxu0 %v3696_v25  ;;  %v3785_v24 = vld [vmem:[%s5508_s4 + $0x26c] ss:$16 sps:$4 sm:$0xff]   ;;  %v3774_v25 = vld [vmem:[%s5508_s4 + $0x640] ss:$16 sps:$4 sm:$0xff]  }
  0x59   :  { %1984 = vmatprep.subr.bf16.mxu0 %v3704_v26  ;;  %v3782_v26 = vld [vmem:[%s5508_s4 + $0x664] ss:$16 sps:$4 sm:$0xff]  }
  0x5b   :  { %2067 = vmatpush1.bf16.msra.mxu1 %v3705_v14  ;;  %v3783_v14 = vld [vmem:[%s5508_s4 + $0x268] ss:$16 sps:$4 sm:$0xff]  }
  0x5c   :  { %2068 = vmatprep.subr.bf16.mxu1 %v3713_v27  ;;  %1985 = vmatpush1.bf16.msra.mxu0 %v3702_v28  ;;  %v3791_v27 = vld [vmem:[%s5508_s4 + $0x28c] ss:$16 sps:$4 sm:$0xff]   ;;  %v3780_v28 = vld [vmem:[%s5508_s4 + $0x660] ss:$16 sps:$4 sm:$0xff]  }
  0x5d   :  { %1986 = vmatprep.subr.bf16.mxu0 %v3710_v31  ;;  %v3788_v31 = vld [vmem:[%s5508_s4 + $0x684] ss:$16 sps:$4 sm:$0xff]  }
  0x5f   :  { %2069 = vmatpush1.bf16.msra.mxu1 %v3711_v32  ;;  %v3789_v32 = vld [vmem:[%s5508_s4 + $0x288] ss:$16 sps:$4 sm:$0xff]  }
  0x60   :  { %2070 = vmatprep.subr.bf16.mxu1 %v3719_v34  ;;  %1987 = vmatpush1.bf16.msra.mxu0 %v3708_v35  ;;  %v3797_v34 = vld [vmem:[%s5508_s4 + $0x2ac] ss:$16 sps:$4 sm:$0xff]   ;;  %v3786_v35 = vld [vmem:[%s5508_s4 + $0x680] ss:$16 sps:$4 sm:$0xff]  }
  0x61   :  { %1988 = vmatprep.subr.bf16.mxu0 %v3716_v36  ;;  %v3794_v36 = vld [vmem:[%s5508_s4 + $0x6a4] ss:$16 sps:$4 sm:$0xff]  }
  0x63   :  { %2071 = vmatpush1.bf16.msra.mxu1 %v3717_v37  ;;  %v3795_v37 = vld [vmem:[%s5508_s4 + $0x2a8] ss:$16 sps:$4 sm:$0xff]  }
  0x64   :  { %2072 = vmatprep.subr.bf16.mxu1 %v3725_v38  ;;  %1989 = vmatpush1.bf16.msra.mxu0 %v3714_v40  ;;  %v3803_v38 = vld [vmem:[%s5508_s4 + $0x2cc] ss:$16 sps:$4 sm:$0xff]   ;;  %v3792_v40 = vld [vmem:[%s5508_s4 + $0x6a0] ss:$16 sps:$4 sm:$0xff]  }
  0x65   :  { %1990 = vmatprep.subr.bf16.mxu0 %v3722_v41  ;;  %v3800_v41 = vld [vmem:[%s5508_s4 + $0x6c4] ss:$16 sps:$4 sm:$0xff]  }
  0x67   :  { %2073 = vmatpush1.bf16.msra.mxu1 %v3723_v42  ;;  %v3801_v42 = vld [vmem:[%s5508_s4 + $0x2c8] ss:$16 sps:$4 sm:$0xff]  }
  0x68   :  { %2074 = vmatprep.subr.bf16.mxu1 %v3731_v43  ;;  %1991 = vmatpush1.bf16.msra.mxu0 %v3720_v30  ;;  %v3809_v43 = vld [vmem:[%s5508_s4 + $0x2ec] ss:$16 sps:$4 sm:$0xff]   ;;  %v3798_v30 = vld [vmem:[%s5508_s4 + $0x6c0] ss:$16 sps:$4 sm:$0xff]  }
  0x69   :  { %1992 = vmatprep.subr.bf16.mxu0 %v3728_v45  ;;  %v3806_v45 = vld [vmem:[%s5508_s4 + $0x6e4] ss:$16 sps:$4 sm:$0xff]  }
  0x6b   :  { %2075 = vmatpush1.bf16.msra.mxu1 %v3729_v47  ;;  %v3807_v47 = vld [vmem:[%s5508_s4 + $0x2e8] ss:$16 sps:$4 sm:$0xff]  }
  0x6c   :  { %2076 = vmatprep.subr.bf16.mxu1 %v3737_v48  ;;  %1993 = vmatpush1.bf16.msra.mxu0 %v3726_v49  ;;  %v3815_v48 = vld [vmem:[%s5508_s4 + $0x30c] ss:$16 sps:$4 sm:$0xff]   ;;  %v3804_v49 = vld [vmem:[%s5508_s4 + $0x6e0] ss:$16 sps:$4 sm:$0xff]  }
  0x6d   :  { %1994 = vmatprep.subr.bf16.mxu0 %v3734_v33  ;;  %v3812_v33 = vld [vmem:[%s5508_s4 + $0x704] ss:$16 sps:$4 sm:$0xff]  }
  0x6f   :  { %2077 = vmatpush1.bf16.msra.mxu1 %v3735_v52  ;;  %v3813_v52 = vld [vmem:[%s5508_s4 + $0x308] ss:$16 sps:$4 sm:$0xff]  }
  0x70   :  { %2078 = vmatprep.subr.bf16.mxu1 %v3743_v54  ;;  %1995 = vmatpush1.bf16.msra.mxu0 %v3732_v59  ;;  %v3821_v54 = vld [vmem:[%s5508_s4 + $0x32c] ss:$16 sps:$4 sm:$0xff]   ;;  %v3810_v59 = vld [vmem:[%s5508_s4 + $0x700] ss:$16 sps:$4 sm:$0xff]  }
  0x71   :  { %1996 = vmatprep.subr.bf16.mxu0 %v3740_v8  ;;  %v3818_v8 = vld [vmem:[%s5508_s4 + $0x724] ss:$16 sps:$4 sm:$0xff]  }
  0x73   :  { %2079 = vmatpush1.bf16.msra.mxu1 %v3741_v60  ;;  %v3816_v60 = vld [vmem:[%s5508_s4 + $0x720] ss:$16 sps:$4 sm:$0xff]  }
  0x74   :  { %2080 = vmatprep.subr.bf16.mxu1 %v3749_v61  ;;  %1997 = vmatpush1.bf16.msra.mxu0 %v3738_v62  ;;  %v3819_v61 = vld [vmem:[%s5508_s4 + $0x328] ss:$16 sps:$4 sm:$0xff]   ;;  %v3824_v62 = vld [vmem:[%s5508_s4 + $0x744] ss:$16 sps:$4 sm:$0xff]  }
  0x75   :  { %1998 = vmatprep.subr.bf16.mxu0 %v3746_v63  ;;  %v3827_v63 = vld [vmem:[%s5508_s4 + $0x34c] ss:$16 sps:$4 sm:$0xff]  }
  0x77   :  { %2081 = vmatpush1.bf16.msra.mxu1 %v3747_v1  ;;  %v3825_v1 = vld [vmem:[%s5508_s4 + $0x348] ss:$16 sps:$4 sm:$0xff]  }
  0x78   :  { %2082 = vmatprep.subr.bf16.mxu1 %v3755_v56  ;;  %1999 = vmatpush1.bf16.msra.mxu0 %v3744_v3  ;;  %v3833_v56 = vld [vmem:[%s5508_s4 + $0x36c] ss:$16 sps:$4 sm:$0xff]   ;;  %v3822_v3 = vld [vmem:[%s5508_s4 + $0x740] ss:$16 sps:$4 sm:$0xff]  }
  0x79   :  { %2000 = vmatprep.subr.bf16.mxu0 %v3752_v0  ;;  %v3830_v0 = vld [vmem:[%s5508_s4 + $0x764] ss:$16 sps:$4 sm:$0xff]  }
  0x7b   :  { %2083 = vmatpush1.bf16.msra.mxu1 %v3753_v2  ;;  %v3831_v2 = vld [vmem:[%s5508_s4 + $0x368] ss:$16 sps:$4 sm:$0xff]  }
  0x7c   :  { %2084 = vmatprep.subr.bf16.mxu1 %v3761_v5  ;;  %2001 = vmatpush1.bf16.msra.mxu0 %v3750_v6  ;;  %v3839_v5 = vld [vmem:[%s5508_s4 + $0x38c] ss:$16 sps:$4 sm:$0xff]   ;;  %v3828_v6 = vld [vmem:[%s5508_s4 + $0x760] ss:$16 sps:$4 sm:$0xff]  }
  0x7d   :  { %2002 = vmatprep.subr.bf16.mxu0 %v3758_v9  ;;  %v3836_v9 = vld [vmem:[%s5508_s4 + $0x784] ss:$16 sps:$4 sm:$0xff]  }
  0x7f   :  { %2085 = vmatpush1.bf16.msra.mxu1 %v3759_v10  ;;  %v3837_v10 = vld [vmem:[%s5508_s4 + $0x388] ss:$16 sps:$4 sm:$0xff]  }
  0x80   :  { %2095 = vmatprep.subr.bf16.mxu1 %v3767_v11  ;;  %2003 = vmatpush1.bf16.msra.mxu0 %v3756_v13  ;;  %v3845_v11 = vld [vmem:[%s5508_s4 + $0x3ac] ss:$16 sps:$4 sm:$0xff]   ;;  %v3842_v13 = vld [vmem:[%s5508_s4 + $0x7a4] ss:$16 sps:$4 sm:$0xff]  }
  0x81   :  { %2013 = vmatprep.subr.bf16.mxu0 %v3764_v16  ;;  %v3851_v16 = vld [vmem:[%s5508_s4 + $0x3cc] ss:$16 sps:$4 sm:$0xff]  }
  0x82   :  { %2087 = vmatmul.mubr.bf16.vlgmr.msra.gmra.mrb[4].mxu1 %v4465_v29  ;;  %v3768_v29 = vld [vmem:[%s5508_s4 + $0x620] ss:$16 sps:$4 sm:$0xff]  }
  0x83   :  { %2096 = vmatpush1.bf16.msra.mxu1 %v3765_v17  ;;  %2127 = vmatprep.mubr.bf16.mxu1 %v4498_v55  ;;  %v3777_v55 = vld [vmem:[%s5508_s4 + $0x248] ss:$16 sps:$4 sm:$0xff]   ;;  %v3840_v17 = vld [vmem:[%s5508_s4 + $0x7a0] ss:$16 sps:$4 sm:$0xff]  }
  0x84   :  { %2005 = vmatmul.mubr.bf16.vlgmr.msra.gmra.mrb[0].mxu0 %v4706_v18  ;;  %2097 = vmatprep.subr.bf16.mxu1 %v3773_v44  ;;  %v3848_v44 = vld [vmem:[%s5508_s4 + $0x7c4] ss:$16 sps:$4 sm:$0xff]  }
  0x85   :  { %2014 = vmatpush1.bf16.msra.mxu0 %v3762_v58  ;;  %2045 = vmatprep.mubr.bf16.mxu0 %v4714_v19  ;;  %v3849_v58 = vld [vmem:[%s5508_s4 + $0x3c8] ss:$16 sps:$4 sm:$0xff]  }
  0x86   :  { %2015 = vmatprep.subr.bf16.mxu0 %v3770_v20  ;;  %v3857_v20 = vld [vmem:[%s5508_s4 + $0x3ec] ss:$16 sps:$4 sm:$0xff]  }
  0x87   :  { %2098 = vmatpush1.bf16.msra.mxu1 %v3771_v21  ;;  %v3846_v21 = vld [vmem:[%s5508_s4 + $0x7c0] ss:$16 sps:$4 sm:$0xff]  }
  0x88   :  { %2099 = vmatprep.subr.bf16.mxu1 %v3779_v22  ;;  %v3854_v22 = vld [vmem:[%s5508_s4 + $0x7e4] ss:$16 sps:$4 sm:$0xff]  }
  0x89   :  { %2016 = vmatpush1.bf16.msra.mxu0 %v3768_v29  ;;  %v3855_v29 = vld [vmem:[%s5508_s4 + $0x3e8] ss:$16 sps:$4 sm:$0xff]  }
  0x8a   :  { %2017 = vmatprep.subr.bf16.mxu0 %v3776_v23  ;;  %v322_v23 = vmax.f32 %v4525_v7, 0.0  ;;  %v3863_v7 = vld [vmem:[%s5508_s4 + $0x42c] ss:$16 sps:$4 sm:$0xff]  }
  0x8b   :  { %2100 = vmatpush1.bf16.msra.mxu1 %v3777_v55  ;;  %v3860_v55 = vld [vmem:[%s5508_s4 + $0x40c] ss:$16 sps:$4 sm:$0xff]  }
  0x8c   :  { %2101 = vmatprep.subr.bf16.mxu1 %v3785_v24  ;;  %v3852_v24 = vld [vmem:[%s5508_s4 + $0x7e0] ss:$16 sps:$4 sm:$0xff]  }
  0x8d   :  { %2018 = vmatpush1.bf16.msra.mxu0 %v3774_v25  ;;  %v3858_v25 = vld [vmem:[%s5508_s4 + $0x408] ss:$16 sps:$4 sm:$0xff]  }
  0x8e   :  { %2019 = vmatprep.subr.bf16.mxu0 %v3782_v26  ;;  %v4904_v26 = vpack.c.bf16 %v322_v23, %v322_v23  ;;  %v3938_v23 = vld [vmem:[%s5508_s4 + $0x74c] ss:$16 sps:$4 sm:$0xff]  }
  0x8f   :  { %2102 = vmatpush1.bf16.msra.mxu1 %v3783_v14  ;;  %v3861_v14 = vld [vmem:[%s5508_s4 + $0x428] ss:$16 sps:$4 sm:$0xff]  }
  0x90   :  { %2103 = vmatprep.subr.bf16.mxu1 %v3791_v27  ;;  %v3866_v27 = vld [vmem:[%s5508_s4 + $0x44c] ss:$16 sps:$4 sm:$0xff]  }
  0x91   :  { %2020 = vmatpush1.bf16.msra.mxu0 %v3780_v28  ;;  %v3864_v28 = vld [vmem:[%s5508_s4 + $0x448] ss:$16 sps:$4 sm:$0xff]  }
  0x92   :  { %2021 = vmatprep.subr.bf16.mxu0 %v3788_v31  ;;  %v3872_v31 = vld [vmem:[%s5508_s4 + $0x48c] ss:$16 sps:$4 sm:$0xff]  }
  0x93   :  { %2104 = vmatpush1.bf16.msra.mxu1 %v3789_v32  ;;  %v3870_v32 = vld [vmem:[%s5508_s4 + $0x488] ss:$16 sps:$4 sm:$0xff]  }
  0x94   :  { %2105 = vmatprep.subr.bf16.mxu1 %v3797_v34  ;;  %v3875_v34 = vld [vmem:[%s5508_s4 + $0x4ac] ss:$16 sps:$4 sm:$0xff]  }
  0x95   :  { %2022 = vmatpush1.bf16.msra.mxu0 %v3786_v35  ;;  %v3873_v35 = vld [vmem:[%s5508_s4 + $0x4a8] ss:$16 sps:$4 sm:$0xff]  }
  0x96   :  { %2023 = vmatprep.subr.bf16.mxu0 %v3794_v36  ;;  %v3878_v36 = vld [vmem:[%s5508_s4 + $0x4cc] ss:$16 sps:$4 sm:$0xff]  }
  0x97   :  { %2106 = vmatpush1.bf16.msra.mxu1 %v3795_v37  ;;  %v3876_v37 = vld [vmem:[%s5508_s4 + $0x4c8] ss:$16 sps:$4 sm:$0xff]  }
  0x98   :  { %2107 = vmatprep.subr.bf16.mxu1 %v3803_v38  ;;  %v3881_v38 = vld [vmem:[%s5508_s4 + $0x4ec] ss:$16 sps:$4 sm:$0xff]  }
  0x99   :  { %2024 = vmatpush1.bf16.msra.mxu0 %v3792_v40  ;;  %v3879_v40 = vld [vmem:[%s5508_s4 + $0x4e8] ss:$16 sps:$4 sm:$0xff]  }
  0x9a   :  { %2025 = vmatprep.subr.bf16.mxu0 %v3800_v41  ;;  %v3884_v41 = vld [vmem:[%s5508_s4 + $0x50c] ss:$16 sps:$4 sm:$0xff]  }
  0x9b   :  { %2108 = vmatpush1.bf16.msra.mxu1 %v3801_v42  ;;  %v3882_v42 = vld [vmem:[%s5508_s4 + $0x508] ss:$16 sps:$4 sm:$0xff]  }
  0x9c   :  { %2109 = vmatprep.subr.bf16.mxu1 %v3809_v43  ;;  %v3887_v43 = vld [vmem:[%s5508_s4 + $0x52c] ss:$16 sps:$4 sm:$0xff]  }
  0x9d   :  { %2026 = vmatpush1.bf16.msra.mxu0 %v3798_v30  ;;  %v3885_v30 = vld [vmem:[%s5508_s4 + $0x528] ss:$16 sps:$4 sm:$0xff]  }
  0x9e   :  { %2027 = vmatprep.subr.bf16.mxu0 %v3806_v45  ;;  %v3890_v45 = vld [vmem:[%s5508_s4 + $0x54c] ss:$16 sps:$4 sm:$0xff]  }
  0x9f   :  { %2110 = vmatpush1.bf16.msra.mxu1 %v3807_v47  ;;  %v3888_v47 = vld [vmem:[%s5508_s4 + $0x548] ss:$16 sps:$4 sm:$0xff]  }
  0xa0   :  { %2111 = vmatprep.subr.bf16.mxu1 %v3815_v48  ;;  %v3893_v48 = vld [vmem:[%s5508_s4 + $0x56c] ss:$16 sps:$4 sm:$0xff]  }
  0xa1   :  { %2028 = vmatpush1.bf16.msra.mxu0 %v3804_v49  ;;  %v3891_v49 = vld [vmem:[%s5508_s4 + $0x568] ss:$16 sps:$4 sm:$0xff]  }
  0xa2   :  { %2029 = vmatprep.subr.bf16.mxu0 %v3812_v33  ;;  %v3896_v33 = vld [vmem:[%s5508_s4 + $0x58c] ss:$16 sps:$4 sm:$0xff]  }
  0xa3   :  { %2112 = vmatpush1.bf16.msra.mxu1 %v3813_v52  ;;  %v3894_v52 = vld [vmem:[%s5508_s4 + $0x588] ss:$16 sps:$4 sm:$0xff]  }
  0xa4   :  { %2113 = vmatprep.subr.bf16.mxu1 %v3821_v54  ;;  %v3899_v54 = vld [vmem:[%s5508_s4 + $0x5ac] ss:$16 sps:$4 sm:$0xff]  }
  0xa5   :  { %2030 = vmatpush1.bf16.msra.mxu0 %v3810_v59  ;;  %v3897_v59 = vld [vmem:[%s5508_s4 + $0x5a8] ss:$16 sps:$4 sm:$0xff]  }
  0xa6   :  { %2031 = vmatprep.subr.bf16.mxu0 %v3818_v8  ;;  %v3902_v8 = vld [vmem:[%s5508_s4 + $0x5cc] ss:$16 sps:$4 sm:$0xff]  }
  0xa7   :  { %2114 = vmatpush1.bf16.msra.mxu1 %v3819_v61  ;;  %v3905_v61 = vld [vmem:[%s5508_s4 + $0x5ec] ss:$16 sps:$4 sm:$0xff]  }
  0xa8   :  { %2115 = vmatprep.subr.bf16.mxu1 %v3827_v63  ;;  %v3908_v63 = vld [vmem:[%s5508_s4 + $0x60c] ss:$16 sps:$4 sm:$0xff]  }
  0xa9   :  { %2032 = vmatpush1.bf16.msra.mxu0 %v3816_v60  ;;  %v3900_v60 = vld [vmem:[%s5508_s4 + $0x5c8] ss:$16 sps:$4 sm:$0xff]  }
  0xaa   :  { %2033 = vmatprep.subr.bf16.mxu0 %v3824_v62  ;;  %v3903_v62 = vld [vmem:[%s5508_s4 + $0x5e8] ss:$16 sps:$4 sm:$0xff]  }
  0xab   :  { %2116 = vmatpush1.bf16.msra.mxu1 %v3825_v1  ;;  %v3906_v1 = vld [vmem:[%s5508_s4 + $0x608] ss:$16 sps:$4 sm:$0xff]  }
  0xac   :  { %2117 = vmatprep.subr.bf16.mxu1 %v3833_v56  ;;  %v3911_v56 = vld [vmem:[%s5508_s4 + $0x62c] ss:$16 sps:$4 sm:$0xff]  }
  0xad   :  { %2034 = vmatpush1.bf16.msra.mxu0 %v3822_v3  ;;  %v3909_v3 = vld [vmem:[%s5508_s4 + $0x628] ss:$16 sps:$4 sm:$0xff]  }
  0xae   :  { %2035 = vmatprep.subr.bf16.mxu0 %v3830_v0  ;;  %v3914_v0 = vld [vmem:[%s5508_s4 + $0x64c] ss:$16 sps:$4 sm:$0xff]  }
  0xaf   :  { %2118 = vmatpush1.bf16.msra.mxu1 %v3831_v2  ;;  %v3912_v2 = vld [vmem:[%s5508_s4 + $0x648] ss:$16 sps:$4 sm:$0xff]  }
  0xb0   :  { %2119 = vmatprep.subr.bf16.mxu1 %v3839_v5  ;;  %v3920_v5 = vld [vmem:[%s5508_s4 + $0x68c] ss:$16 sps:$4 sm:$0xff]  }
  0xb1   :  { %2036 = vmatpush1.bf16.msra.mxu0 %v3828_v6  ;;  %v3918_v6 = vld [vmem:[%s5508_s4 + $0x688] ss:$16 sps:$4 sm:$0xff]  }
  0xb2   :  { %2037 = vmatprep.subr.bf16.mxu0 %v3836_v9  ;;  %v3923_v9 = vld [vmem:[%s5508_s4 + $0x6ac] ss:$16 sps:$4 sm:$0xff]  }
  0xb3   :  { %2120 = vmatpush1.bf16.msra.mxu1 %v3837_v10  ;;  %v3921_v10 = vld [vmem:[%s5508_s4 + $0x6a8] ss:$16 sps:$4 sm:$0xff]  }
  0xb4   :  { %2121 = vmatprep.subr.bf16.mxu1 %v3845_v11  ;;  %v3926_v11 = vld [vmem:[%s5508_s4 + $0x6cc] ss:$16 sps:$4 sm:$0xff]  }
  0xb5   :  { %2038 = vmatpush1.bf16.msra.mxu0 %v3834_v12 }
  0xb6   :  { %2039 = vmatprep.subr.bf16.mxu0 %v3842_v13 }
  0xb7   :  { %2122 = vmatpush1.bf16.msra.mxu1 %v3843_v15 }
  0xb8   :  { %2123 = vmatprep.subr.bf16.mxu1 %v3851_v16  ;;  %v3924_v16 = vld [vmem:[%s5508_s4 + $0x6c8] ss:$16 sps:$4 sm:$0xff]  }
  0xb9   :  { %2040 = vmatpush1.bf16.msra.mxu0 %v3840_v17 }
  0xba   :  { %2041 = vmatprep.subr.bf16.mxu0 %v3848_v44  ;;  %v3929_v44 = vld [vmem:[%s5508_s4 + $0x6ec] ss:$16 sps:$4 sm:$0xff]  }
  0xbb   :  { %2124 = vmatpush1.bf16.msra.mxu1 %v3849_v58  ;;  %v3927_v58 = vld [vmem:[%s5508_s4 + $0x6e8] ss:$16 sps:$4 sm:$0xff]  }
  0xbc   :  { %2125 = vmatprep.subr.bf16.mxu1 %v3857_v20  ;;  %v3932_v20 = vld [vmem:[%s5508_s4 + $0x70c] ss:$16 sps:$4 sm:$0xff]  }
  0xbd   :  { %2042 = vmatpush1.bf16.msra.mxu0 %v3846_v21  ;;  %v3930_v21 = vld [vmem:[%s5508_s4 + $0x708] ss:$16 sps:$4 sm:$0xff]  }
  0xbe   :  { %2043 = vmatprep.subr.bf16.mxu0 %v3854_v22  ;;  %v3935_v22 = vld [vmem:[%s5508_s4 + $0x72c] ss:$16 sps:$4 sm:$0xff]  }
  0xbf   :  { %2126 = vmatpush1.bf16.msra.mxu1 %v3855_v29  ;;  %v3933_v29 = vld [vmem:[%s5508_s4 + $0x728] ss:$16 sps:$4 sm:$0xff]  }
  0xc0   :  { %2136 = vmatprep.subr.bf16.mxu1 %v3860_v55  ;;  %v3936_v55 = vld [vmem:[%s5508_s4 + $0x748] ss:$16 sps:$4 sm:$0xff]  }
  0xc1   :  { %2044 = vmatpush1.bf16.msra.mxu0 %v3852_v24  ;;  %v3941_v24 = vld [vmem:[%s5508_s4 + $0x76c] ss:$16 sps:$4 sm:$0xff]  }
  0xc2   :  { %2128 = vmatmul.mubr.bf16.vlgmr.msra.gmra.mrb[4].mxu1 %v4492_v57  ;;  %v3869_v57 = vld [vmem:[%s5508_s4 + $0x46c] ss:$16 sps:$4 sm:$0xff]  }
  0xc3   :  { %2137 = vmatpush1.bf16.msra.mxu1 %v3858_v25  ;;  %2168 = vmatprep.mubr.bf16.mxu1 %v4520_v4  ;;  %v3867_v4 = vld [vmem:[%s5508_s4 + $0x468] ss:$16 sps:$4 sm:$0xff]  }
  0xc4   :  { %2046 = vmatmul.mubr.bf16.vlgmr.msra.gmra.mrb[0].mxu0 %v4904_v26  ;;  %2138 = vmatprep.subr.bf16.mxu1 %v3863_v7  ;;  %v3939_v25 = vld [vmem:[%s5508_s4 + $0x768] ss:$16 sps:$4 sm:$0xff]   ;;  %v3944_v7 = vld [vmem:[%s5508_s4 + $0x78c] ss:$16 sps:$4 sm:$0xff]  }
  0xc7   :  { %2139 = vmatpush1.bf16.msra.mxu1 %v3861_v14  ;;  %v3942_v14 = vld [vmem:[%s5508_s4 + $0x788] ss:$16 sps:$4 sm:$0xff]  }
  0xc8   :  { %2140 = vmatprep.subr.bf16.mxu1 %v3866_v27  ;;  %v3947_v27 = vld [vmem:[%s5508_s4 + $0x7ac] ss:$16 sps:$4 sm:$0xff]  }
  0xcb   :  { %2141 = vmatpush1.bf16.msra.mxu1 %v3864_v28  ;;  %v3945_v28 = vld [vmem:[%s5508_s4 + $0x7a8] ss:$16 sps:$4 sm:$0xff]  }
  0xcc   :  { %2142 = vmatprep.subr.bf16.mxu1 %v3869_v57  ;;  %v3950_v57 = vld [vmem:[%s5508_s4 + $0x7cc] ss:$16 sps:$4 sm:$0xff]  }
  0xcf   :  { %2143 = vmatpush1.bf16.msra.mxu1 %v3867_v4  ;;  %v3948_v4 = vld [vmem:[%s5508_s4 + $0x7c8] ss:$16 sps:$4 sm:$0xff]  }
  0xd0   :  { %2144 = vmatprep.subr.bf16.mxu1 %v3872_v31  ;;  %v3953_v31 = vld [vmem:[%s5508_s4 + $0x7ec] ss:$16 sps:$4 sm:$0xff]  }
  0xd3   :  { %2145 = vmatpush1.bf16.msra.mxu1 %v3870_v32  ;;  %v3951_v32 = vld [vmem:[%s5508_s4 + $0x7e8] ss:$16 sps:$4 sm:$0xff]  }
  0xd4   :  { %2146 = vmatprep.subr.bf16.mxu1 %v3875_v34  ;;  %v5101_v34 = vld [vmem:[%s5513_s5] sm:$0xf] }
  0xd7   :  { %2147 = vmatpush1.bf16.msra.mxu1 %v3873_v35  ;;  %v593_v35 = vrot.slane %v5101_v34, %v4274_v46 }
  0xd8   :  { %2148 = vmatprep.subr.bf16.mxu1 %v3878_v36  ;;  %v597_v36 = vrot.slane %v5101_v34, %v4283_v50 }
  0xdb   :  { %2149 = vmatpush1.bf16.msra.mxu1 %v3876_v37 }
  0xdc   :  { %2150 = vmatprep.subr.bf16.mxu1 %v3881_v38 }
  0xdf   :  { %2151 = vmatpush1.bf16.msra.mxu1 %v3879_v40 }
  0xe0   :  { %2152 = vmatprep.subr.bf16.mxu1 %v3884_v41 }
  0xe3   :  { %2153 = vmatpush1.bf16.msra.mxu1 %v3882_v42 }
  0xe4   :  { %2154 = vmatprep.subr.bf16.mxu1 %v3887_v43 }
  0xe7   :  { %2155 = vmatpush1.bf16.msra.mxu1 %v3885_v30 }
  0xe8   :  { %2156 = vmatprep.subr.bf16.mxu1 %v3890_v45 }
  0xeb   :  { %2157 = vmatpush1.bf16.msra.mxu1 %v3888_v47 }
  0xec   :  { %2158 = vmatprep.subr.bf16.mxu1 %v3893_v48 }
  0xef   :  { %2159 = vmatpush1.bf16.msra.mxu1 %v3891_v49 }
  0xf0   :  { %2160 = vmatprep.subr.bf16.mxu1 %v3896_v33 }
  0xf3   :  { %2161 = vmatpush1.bf16.msra.mxu1 %v3894_v52  ;;  %v3956_v52 = vld [vmem:[%s5514_s8 + $0x4] ss:$8 sps:$4 sm:$0xff]  }
  0xf4   :  { %2162 = vmatprep.subr.bf16.mxu1 %v3899_v54  ;;  %2827 = vmatprep.subr.bf16.mxu0 %v3956_v52  ;;  %v3978_v52 = vld [vmem:[%s5514_s8 + $0x80] ss:$8 sps:$4 sm:$0xff]  }
  0xf7   :  { %2163 = vmatpush1.bf16.msra.mxu1 %v3897_v59 }
  0xf8   :  { %2164 = vmatprep.subr.bf16.mxu1 %v3902_v8  ;;  %v3954_v8 = vld [vmem:[%s5514_s8] ss:$8 sps:$4 sm:$0xff]  }
  0xf9   :  { %2828 = vmatpush1.bf16.msra.mxu0 %v3954_v8  ;;  %v3981_v8 = vld [vmem:[%s5514_s8 + $0x90] ss:$8 sps:$4 sm:$0xff]  }
  0xfb   :  { %2165 = vmatpush1.bf16.msra.mxu1 %v3900_v60 }
  0xfc   :  { %2166 = vmatprep.subr.bf16.mxu1 %v3905_v61 }
  0xff   :  { %2167 = vmatpush1.bf16.msra.mxu1 %v3903_v62 }
 0x100   :  { %2177 = vmatprep.subr.bf16.mxu1 %v3908_v63 }
 0x102   :  { %2169 = vmatmul.mubr.bf16.vlgmr.msra.gmra.mrb[4].mxu1 %v4706_v18  ;;  %v3917_v18 = vld [vmem:[%s5508_s4 + $0x66c] ss:$16 sps:$4 sm:$0xff]  }
 0x103   :  { %2178 = vmatpush1.bf16.msra.mxu1 %v3906_v1  ;;  %2209 = vmatprep.mubr.bf16.mxu1 %v4714_v19  ;;  %v3915_v19 = vld [vmem:[%s5508_s4 + $0x668] ss:$16 sps:$4 sm:$0xff]  }
 0x104   :  { %2179 = vmatprep.subr.bf16.mxu1 %v3911_v56 }
 0x107   :  { %2180 = vmatpush1.bf16.msra.mxu1 %v3909_v3 }
 0x108   :  { %2181 = vmatprep.subr.bf16.mxu1 %v3914_v0  ;;  %v3959_v0 = vld [vmem:[%s5514_s8 + $0x14] ss:$8 sps:$4 sm:$0xff]  }
 0x109   :  { %2829 = vmatprep.subr.bf16.mxu0 %v3959_v0  ;;  %v3993_v0 = vld [vmem:[%s5514_s8 + $0xd0] ss:$8 sps:$4 sm:$0xff]  }
 0x10b   :  { %2182 = vmatpush1.bf16.msra.mxu1 %v3912_v2 }
 0x10c   :  { %2183 = vmatprep.subr.bf16.mxu1 %v3917_v18 }
 0x10f   :  { %2184 = vmatpush1.bf16.msra.mxu1 %v3915_v19  ;;  %v3957_v19 = vld [vmem:[%s5514_s8 + $0x10] ss:$8 sps:$4 sm:$0xff]  }
 0x110   :  { %2185 = vmatprep.subr.bf16.mxu1 %v3920_v5  ;;  %2830 = vmatpush1.bf16.msra.mxu0 %v3957_v19  ;;  %v4001_v19 = vld [vmem:[%s5514_s8 + $0xf4] ss:$8 sps:$4 sm:$0xff]  }
 0x113   :  { %2186 = vmatpush1.bf16.msra.mxu1 %v3918_v6 }
 0x114   :  { %2187 = vmatprep.subr.bf16.mxu1 %v3923_v9 }
 0x115   :  { %v1924_v12 = vpop.f32.mrb[0].mxu1 }
 0x116   :  { %v1926_v13 = vpop.f32.mrb[1].mxu1  ;;  %v1925_v37 = vadd.f32 %v1924_v12, %v593_v35 }
 0x117   :  { %v1928_v15 = vpop.f32.mrb[2].mxu1  ;;  %2188 = vmatpush1.bf16.msra.mxu1 %v3921_v10  ;;  %v1927_v38 = vadd.f32 %v1926_v13, %v597_v36  ;;  %v3962_v13 = vld [vmem:[%s5514_s8 + $0x24] ss:$8 sps:$4 sm:$0xff]  }
 0x118   :  { %v1929_v17 = vpop.f32.mrb[3].mxu1  ;;  %2189 = vmatprep.subr.bf16.mxu1 %v3926_v11  ;;  %2831 = vmatprep.subr.bf16.mxu0 %v3962_v13 }
 0x119   :  { %v3960_v17 = vld [vmem:[%s5514_s8 + $0x20] ss:$8 sps:$4 sm:$0xff]  }
 0x11a   :  { %2832 = vmatpush1.bf16.msra.mxu0 %v3960_v17 }
 0x11b   :  { %2190 = vmatpush1.bf16.msra.mxu1 %v3924_v16 }
 0x11c   :  { %2191 = vmatprep.subr.bf16.mxu1 %v3929_v44 }
 0x11f   :  { %2192 = vmatpush1.bf16.msra.mxu1 %v3927_v58 }
 0x120   :  { %2193 = vmatprep.subr.bf16.mxu1 %v3932_v20 }
 0x123   :  { %2194 = vmatpush1.bf16.msra.mxu1 %v3930_v21 }
 0x124   :  { %2195 = vmatprep.subr.bf16.mxu1 %v3935_v22 }
 0x127   :  { %2196 = vmatpush1.bf16.msra.mxu1 %v3933_v29 }
 0x128   :  { %2197 = vmatprep.subr.bf16.mxu1 %v3938_v23  ;;  %v3965_v23 = vld [vmem:[%s5514_s8 + $0x34] ss:$8 sps:$4 sm:$0xff]  }
 0x129   :  { %2833 = vmatprep.subr.bf16.mxu0 %v3965_v23 }
 0x12b   :  { %2198 = vmatpush1.bf16.msra.mxu1 %v3936_v55 }
 0x12c   :  { %2199 = vmatprep.subr.bf16.mxu1 %v3941_v24 }
 0x12f   :  { %2200 = vmatpush1.bf16.msra.mxu1 %v3939_v25  ;;  %v3963_v25 = vld [vmem:[%s5514_s8 + $0x30] ss:$8 sps:$4 sm:$0xff]  }
 0x130   :  { %2201 = vmatprep.subr.bf16.mxu1 %v3944_v7  ;;  %2834 = vmatpush1.bf16.msra.mxu0 %v3963_v25 }
 0x133   :  { %2202 = vmatpush1.bf16.msra.mxu1 %v3942_v14 }
 0x134   :  { %2203 = vmatprep.subr.bf16.mxu1 %v3947_v27 }
 0x137   :  { %2204 = vmatpush1.bf16.msra.mxu1 %v3945_v28 }
 0x138   :  { %2205 = vmatprep.subr.bf16.mxu1 %v3950_v57 }
 0x13b   :  { %2206 = vmatpush1.bf16.msra.mxu1 %v3948_v4  ;;  %v3968_v4 = vld [vmem:[%s5514_s8 + $0x44] ss:$8 sps:$4 sm:$0xff]  }
 0x13c   :  { %2207 = vmatprep.subr.bf16.mxu1 %v3953_v31  ;;  %2835 = vmatprep.subr.bf16.mxu0 %v3968_v4 }
 0x13f   :  { %2208 = vmatpush1.bf16.msra.mxu1 %v3951_v32  ;;  %v3966_v32 = vld [vmem:[%s5514_s8 + $0x40] ss:$8 sps:$4 sm:$0xff]  }
 0x140   :  { %2836 = vmatpush1.bf16.msra.mxu0 %v3966_v32 }
 0x142   :  { %2210 = vmatmul.mubr.bf16.vlgmr.msra.gmra.mrb[4].mxu1 %v4904_v26 }
 0x197   :  { %v2047_v40 = vpop.f32.mrb[0].mxu0 }
 0x198   :  { %v5107_v41 = vadd.f32 %v2047_v40, %v1925_v37  ;;  %v2049_v42 = vpop.f32.mrb[1].mxu0 }
 0x199   :  { %v5109_v43 = vadd.f32 %v2049_v42, %v1927_v38  ;;  %v2051_v26 = vpop.f32.mrb[2].mxu0  ;;  %v3971_v38 = vld [vmem:[%s5514_s8 + $0x54] ss:$8 sps:$4 sm:$0xff]   ;;  %v3969_v42 = vld [vmem:[%s5514_s8 + $0x50] ss:$8 sps:$4 sm:$0xff]  }
 0x19a   :  { %v2221_v30 = vsel %vm2220_vm9, %v5107_v41, 0.0  ;;  %v2253_v45 = vmul.f32 %v5107_v41, %v5107_v41  ;;  %v2052_v47 = vpop.f32.mrb[3].mxu0  ;;  %2837 = vmatprep.subr.bf16.mxu0 %v3971_v38  ;;  %v3974_v26 = vld [vmem:[%s5514_s8 + $0x64] ss:$8 sps:$4 sm:$0xff]  }
 0x19b   :  { %v2222_v48 = vrot.slane %v2221_v30, 4  ;;  %v2228_v49 = vsel %vm2220_vm9, %v5109_v43, 0.0  ;;  %v2254_v33 = vmul.f32 %v5109_v43, %v5109_v43  ;;  %2838 = vmatpush1.bf16.msra.mxu0 %v3969_v42  ;;  %v3975_v47 = vld [vmem:[%s5514_s8 + $0x70] ss:$8 sps:$4 sm:$0xff]  }
 0x19c   :  { %v2257_v54 = vsel %vm2220_vm9, %v2253_v45, 0.0  ;;  %v2229_v59 = vrot.slane %v2228_v49, 4  ;;  %2839 = vmatprep.subr.bf16.mxu0 %v3974_v26  ;;  %v3977_v45 = vld [vmem:[%s5514_s8 + $0x74] ss:$8 sps:$4 sm:$0xff]  }
 0x19d   :  { %v2223_v60 = vadd.f32 %v2222_v48, %v2221_v30  ;;  %v2258_v61 = vrot.slane %v2257_v54, 4  ;;  %v2264_v62 = vsel %vm2220_vm9, %v2254_v33, 0.0  ;;  %v3972_v30 = vld [vmem:[%s5514_s8 + $0x60] ss:$8 sps:$4 sm:$0xff]  }
 0x19e   :  { %v2230_v63 = vadd.f32 %v2229_v59, %v2228_v49  ;;  %v2265_v1 = vrot.slane %v2264_v62, 4  ;;  %v3980_v49 = vld [vmem:[%s5514_s8 + $0x84] ss:$8 sps:$4 sm:$0xff]   ;;  %v3983_v59 = vld [vmem:[%s5514_s8 + $0x94] ss:$8 sps:$4 sm:$0xff]  }
 0x19f   :  { %v2224_v56 = vrot.slane %v2223_v60, 2  ;;  %v2259_v3 = vadd.f32 %v2258_v61, %v2257_v54  ;;  %2840 = vmatpush1.bf16.msra.mxu0 %v3972_v30  ;;  %v3984_v61 = vld [vmem:[%s5514_s8 + $0xa0] ss:$8 sps:$4 sm:$0xff]  }
 0x1a0   :  { %v2231_v2 = vrot.slane %v2230_v63, 2  ;;  %v2266_v18 = vadd.f32 %v2265_v1, %v2264_v62  ;;  %2841 = vmatprep.subr.bf16.mxu0 %v3977_v45  ;;  %v3989_v62 = vld [vmem:[%s5514_s8 + $0xb4] ss:$8 sps:$4 sm:$0xff]   ;;  %v3990_v1 = vld [vmem:[%s5514_s8 + $0xc0] ss:$8 sps:$4 sm:$0xff]  }
 0x1a1   :  { %v2225_v5 = vadd.f32 %v2224_v56, %v2223_v60  ;;  %v2260_v6 = vrot.slane %v2259_v3, 2  ;;  %v3986_v60 = vld [vmem:[%s5514_s8 + $0xa4] ss:$8 sps:$4 sm:$0xff]  }
 0x1a2   :  { %v2232_v9 = vadd.f32 %v2231_v2, %v2230_v63  ;;  %v2267_v10 = vrot.slane %v2266_v18, 2  ;;  %v3987_v63 = vld [vmem:[%s5514_s8 + $0xb0] ss:$8 sps:$4 sm:$0xff]   ;;  %v3992_v56 = vld [vmem:[%s5514_s8 + $0xc4] ss:$8 sps:$4 sm:$0xff]  }
 0x1a3   :  { %v2226_v11 = vrot.slane %v2225_v5, 1  ;;  %v2261_v12 = vadd.f32 %v2260_v6, %v2259_v3  ;;  %2842 = vmatpush1.bf16.msra.mxu0 %v3975_v47  ;;  %v3995_v3 = vld [vmem:[%s5514_s8 + $0xd4] ss:$8 sps:$4 sm:$0xff]   ;;  %v3998_v2 = vld [vmem:[%s5514_s8 + $0xe4] ss:$8 sps:$4 sm:$0xff]  }
 0x1a4   :  { %v2233_v15 = vrot.slane %v2232_v9, 1  ;;  %v2268_v16 = vadd.f32 %v2267_v10, %v2266_v18  ;;  %2843 = vmatprep.subr.bf16.mxu0 %v3980_v49  ;;  %v3996_v18 = vld [vmem:[%s5514_s8 + $0xe0] ss:$8 sps:$4 sm:$0xff]   ;;  %v4004_v6 = vld [vmem:[%s5514_s8 + $0x104] ss:$8 sps:$4 sm:$0xff]   ;;  %v605_v10 = vrot.slane %v5101_v34, %v4292_v53 }
 0x1a5   :  { %v2227_v44 = vadd.f32 %v2226_v11, %v2225_v5  ;;  %v2262_v58 = vrot.slane %v2261_v12, 1  ;;  %v3999_v5 = vld [vmem:[%s5514_s8 + $0xf0] ss:$8 sps:$4 sm:$0xff]  }
 0x1a6   :  { %v2234_v20 = vadd.f32 %v2233_v15, %v2232_v9  ;;  %v2269_v21 = vrot.slane %v2268_v16, 1  ;;  %v601_v9 = vrot.slane %v5101_v34, %v4286_v51 }
 0x1a7   :  { %v5139_v22 = vmul.f32 0.5, %v2227_v44  ;;  %v2263_v29 = vadd.f32 %v2262_v58, %v2261_v12  ;;  %2844 = vmatpush1.bf16.msra.mxu0 %v3978_v52 }
 0x1a8   :  { %v5144_v55 = vmul.f32 0.5, %v2234_v20  ;;  %v2270_v24 = vadd.f32 %v2269_v21, %v2268_v16  ;;  %2845 = vmatprep.subr.bf16.mxu0 %v3983_v59 }
 0x1a9   :  { %v2285_v7 = vmul.f32 0.5, %v2263_v29  ;;  %v2289_v14 = vmul.f32 %v5139_v22, %v5139_v22 }
 0x1aa   :  { %v2286_v27 = vmul.f32 0.5, %v2270_v24  ;;  %v2290_v28 = vmul.f32 %v5144_v55, %v5144_v55 }
 0x1ab   :  { %v2293_v57 = vsub.f32 %v2285_v7, %v2289_v14  ;;  %2846 = vmatpush1.bf16.msra.mxu0 %v3981_v8 }
 0x1ac   :  { %v2294_v31 = vsub.f32 %v2286_v27, %v2290_v28  ;;  %2847 = vmatprep.subr.bf16.mxu0 %v3986_v60 }
 0x1ad   :  { %v2297_v35 = vmax.f32 %v2293_v57, 0.0 }
 0x1ae   :  { %v2298_v36 = vmax.f32 %v2294_v31, 0.0 }
 0x1af   :  { %v2301_v37 = vadd.f32 1e-05, %v2297_v35  ;;  %2848 = vmatpush1.bf16.msra.mxu0 %v3984_v61 }
 0x1b0   :  { %v2302_v40 = vadd.f32 1e-05, %v2298_v36  ;;  %2849 = vmatprep.subr.bf16.mxu0 %v3989_v62 }
 0x1b1   :  { %4050 = vrsqrt.f32 %v2301_v37 }
 0x1b2   :  { %4052 = vrsqrt.f32 %v2302_v40 }
 0x1b3   :  { %2850 = vmatpush1.bf16.msra.mxu0 %v3987_v63 }
 0x1b4   :  { %2851 = vmatprep.subr.bf16.mxu0 %v3992_v56 }
 0x1b7   :  { %2852 = vmatpush1.bf16.msra.mxu0 %v3990_v1 }
 0x1b8   :  { %2853 = vmatprep.subr.bf16.mxu0 %v3995_v3 }
 0x1bb   :  { %v5177_v48 = vpop.eup %4050  ;;  %2854 = vmatpush1.bf16.msra.mxu0 %v3993_v0 }
 0x1bc   :  { %v5182_v33 = vpop.eup %4052  ;;  %2855 = vmatprep.subr.bf16.mxu0 %v3998_v2 }
 0x1bd   :  { %v2313_v54 = vcombine.low %v5177_v48, %v5182_v33 }
 0x1bf   :  { %2856 = vmatpush1.bf16.msra.mxu0 %v3996_v18 }
 0x1c0   :  { %2857 = vmatprep.subr.bf16.mxu0 %v4001_v19 }
 0x1c3   :  { %2858 = vmatpush1.bf16.msra.mxu0 %v3999_v5  ;;  %v4064_v5 = vmov 1966171168  }
 0x1c4   :  { %2868 = vmatprep.subr.bf16.mxu0 %v4004_v6  ;;  %v2316_v6 = vunpack.c.l.s4 %v4064_v5  ;;  %v4028_v5 = vld [vmem:[%s5514_s8 + $0x184] ss:$8 sps:$4 sm:$0xff]  }
 0x215   :  { %v2211_v11 = vpop.f32.mrb[4].mxu1 }
 0x216   :  { %v5238_v12 = vadd.f32 %v2211_v11, %v601_v9  ;;  %v2213_v13 = vpop.f32.mrb[5].mxu1  ;;  %v2317_v9 = vunpack.c.0.s8 %v2316_v6  ;;  %v4026_v6 = vld [vmem:[%s5514_s8 + $0x180] ss:$8 sps:$4 sm:$0xff]  }
 0x217   :  { %v5240_v15 = vadd.f32 %v2213_v13, %v605_v10  ;;  %v2215_v16 = vpop.f32.mrb[6].mxu1 }
 0x218   :  { %v2235_v17 = vsel %vm2220_vm9, %v5238_v12, 0.0  ;;  %v2255_v44 = vmul.f32 %v5238_v12, %v5238_v12  ;;  %v2216_v58 = vpop.f32.mrb[7].mxu1  ;;  %v5253_v11 = vsub.s32 %v2317_v9, %v4259_v39  ;;  %v4031_v9 = vld [vmem:[%s5514_s8 + $0x194] ss:$8 sps:$4 sm:$0xff]  }
 0x219   :  { %v2236_v20 = vrot.slane %v2235_v17, 4  ;;  %v2242_v21 = vsel %vm2220_vm9, %v5240_v15, 0.0  ;;  %v2256_v34 = vmul.f32 %v5240_v15, %v5240_v15 }
 0x21a   :  { %v2271_v29 = vsel %vm2220_vm9, %v2255_v44, 0.0  ;;  %v2243_v23 = vrot.slane %v2242_v21, 4 }
 0x21b   :  { %v2237_v24 = vadd.f32 %v2236_v20, %v2235_v17  ;;  %v2272_v25 = vrot.slane %v2271_v29, 4  ;;  %v2278_v7 = vsel %vm2220_vm9, %v2256_v34, 0.0  ;;  %v2321_v17 = vrot.slane %v2313_v54, %v5253_v11  ;;  %v2218_v20 = vld [vmem:[%s5515_s6] sm:$0xf] }
 0x21c   :  { %v2244_v14 = vadd.f32 %v2243_v23, %v2242_v21  ;;  %v2279_v27 = vrot.slane %v2278_v7, 4 }
 0x21d   :  { %v2238_v28 = vrot.slane %v2237_v24, 2  ;;  %v2273_v57 = vadd.f32 %v2272_v25, %v2271_v29 }
 0x21e   :  { %v2245_v4 = vrot.slane %v2244_v14, 2  ;;  %v2280_v31 = vadd.f32 %v2279_v27, %v2278_v7 }
 0x21f   :  { %v2239_v32 = vadd.f32 %v2238_v28, %v2237_v24  ;;  %v2274_v35 = vrot.slane %v2273_v57, 2 }
 0x220   :  { %v2246_v36 = vadd.f32 %v2245_v4, %v2244_v14  ;;  %v2281_v37 = vrot.slane %v2280_v31, 2 }
 0x221   :  { %v2240_v38 = vrot.slane %v2239_v32, 1  ;;  %v2275_v40 = vadd.f32 %v2274_v35, %v2273_v57 }
 0x222   :  { %v2247_v42 = vrot.slane %v2246_v36, 1  ;;  %v2282_v26 = vadd.f32 %v2281_v37, %v2280_v31 }
 0x223   :  { %v2241_v30 = vadd.f32 %v2240_v38, %v2239_v32  ;;  %v2276_v45 = vrot.slane %v2275_v40, 1 }
 0x224   :  { %v2248_v47 = vadd.f32 %v2247_v42, %v2246_v36  ;;  %v2283_v49 = vrot.slane %v2282_v26, 1 }
 0x225   :  { %v2251_v52 = vmul.f32 0.5, %v2241_v30  ;;  %v2277_v59 = vadd.f32 %v2276_v45, %v2275_v40 }
 0x226   :  { %v2252_v8 = vmul.f32 0.5, %v2248_v47  ;;  %v2284_v60 = vadd.f32 %v2283_v49, %v2282_v26  ;;  %v4002_v49 = vld [vmem:[%s5514_s8 + $0x100] ss:$8 sps:$4 sm:$0xff]  }
 0x227   :  { %v2287_v61 = vmul.f32 0.5, %v2277_v59  ;;  %v2291_v62 = vmul.f32 %v2251_v52, %v2251_v52  ;;  %v4005_v59 = vld [vmem:[%s5514_s8 + $0x110] ss:$8 sps:$4 sm:$0xff]  }
 0x228   :  { %v2288_v63 = vmul.f32 0.5, %v2284_v60  ;;  %v2292_v1 = vmul.f32 %v2252_v8, %v2252_v8  ;;  %v4008_v60 = vld [vmem:[%s5514_s8 + $0x120] ss:$8 sps:$4 sm:$0xff]  }
 0x229   :  { %v2295_v56 = vsub.f32 %v2287_v61, %v2291_v62  ;;  %v4013_v61 = vld [vmem:[%s5514_s8 + $0x134] ss:$8 sps:$4 sm:$0xff]   ;;  %v4011_v62 = vld [vmem:[%s5514_s8 + $0x130] ss:$8 sps:$4 sm:$0xff]  }
 0x22a   :  { %v2296_v3 = vsub.f32 %v2288_v63, %v2292_v1  ;;  %v4016_v63 = vld [vmem:[%s5514_s8 + $0x144] ss:$8 sps:$4 sm:$0xff]   ;;  %v4014_v1 = vld [vmem:[%s5514_s8 + $0x140] ss:$8 sps:$4 sm:$0xff]  }
 0x22b   :  { %v2299_v0 = vmax.f32 %v2295_v56, 0.0  ;;  %v4019_v56 = vld [vmem:[%s5514_s8 + $0x154] ss:$8 sps:$4 sm:$0xff]  }
 0x22c   :  { %v2300_v2 = vmax.f32 %v2296_v3, 0.0  ;;  %v4017_v3 = vld [vmem:[%s5514_s8 + $0x150] ss:$8 sps:$4 sm:$0xff]  }
 0x22d   :  { %v2303_v18 = vadd.f32 1e-05, %v2299_v0  ;;  %v4022_v0 = vld [vmem:[%s5514_s8 + $0x164] ss:$8 sps:$4 sm:$0xff]  }
 0x22e   :  { %v2304_v19 = vadd.f32 1e-05, %v2300_v2  ;;  %v4020_v2 = vld [vmem:[%s5514_s8 + $0x160] ss:$8 sps:$4 sm:$0xff]  }
 0x22f   :  { %4054 = vrsqrt.f32 %v2303_v18  ;;  %v4025_v18 = vld [vmem:[%s5514_s8 + $0x174] ss:$8 sps:$4 sm:$0xff]  }
 0x230   :  { %4056 = vrsqrt.f32 %v2304_v19  ;;  %v4023_v19 = vld [vmem:[%s5514_s8 + $0x170] ss:$8 sps:$4 sm:$0xff]  }
 0x239   :  { %v4055_v10 = vpop.eup %4054 }
 0x23a   :  { %v4057_v13 = vpop.eup %4056 }
 0x23b   :  { %v2314_v16 = vcombine.low %v4055_v10, %v4057_v13  ;;  %v4029_v10 = vld [vmem:[%s5514_s8 + $0x190] ss:$8 sps:$4 sm:$0xff]   ;;  %v4034_v13 = vld [vmem:[%s5514_s8 + $0x1a4] ss:$8 sps:$4 sm:$0xff]  }
 0x23d   :  { %v2328_v44 = vrot.slane %v2314_v16, %v5253_v11  ;;  %v4032_v16 = vld [vmem:[%s5514_s8 + $0x1a0] ss:$8 sps:$4 sm:$0xff]  }
 0x23f   :  { %v2329_v58 = vcombine.low %v2321_v17, %v2328_v44  ;;  %v4037_v17 = vld [vmem:[%s5514_s8 + $0x1b4] ss:$8 sps:$4 sm:$0xff]   ;;  %v4035_v44 = vld [vmem:[%s5514_s8 + $0x1b0] ss:$8 sps:$4 sm:$0xff]  }
 0x241   :  { %v2336_v21 = vrot.slane %v2329_v58, %v5253_v11  ;;  %v4040_v58 = vld [vmem:[%s5514_s8 + $0x1c4] ss:$8 sps:$4 sm:$0xff]  }
 0x243   :  { %v2338_v34 = vmul.f32 %v2336_v21, %v2218_v20  ;;  %v4038_v20 = vld [vmem:[%s5514_s8 + $0x1c0] ss:$8 sps:$4 sm:$0xff]   ;;  %v4043_v21 = vld [vmem:[%s5514_s8 + $0x1d4] ss:$8 sps:$4 sm:$0xff]  }
 0x245   :  { %v2351_v39 = vrot.slane %v2338_v34, %v4286_v51  ;;  %v2355_v29 = vrot.slane %v2338_v34, %v4292_v53  ;;  %v2343_v23 = vrot.slane %v2338_v34, %v4274_v46  ;;  %v2347_v24 = vrot.slane %v2338_v34, %v4283_v50  ;;  %v4041_v34 = vld [vmem:[%s5514_s8 + $0x1d0] ss:$8 sps:$4 sm:$0xff]  }
 0x247   :  { %v2362_v48 = vmul.f32 %v2351_v39, %v2251_v52  ;;  %v2363_v33 = vmul.f32 %v2355_v29, %v2252_v8  ;;  %v2397_v54 = vmul.f32 %v5240_v15, %v2355_v29  ;;  %v2360_v25 = vmul.f32 %v2343_v23, %v5139_v22  ;;  %v2219_v15 = vld [vmem:[%s5516_s7] sm:$0xf]  ;;  %v4010_v8 = vld [vmem:[%s5514_s8 + $0x124] ss:$8 sps:$4 sm:$0xff]  }
 0x248   :  { %v2361_v7 = vmul.f32 %v2347_v24, %v5144_v55  ;;  %v2395_v14 = vmul.f32 %v5109_v43, %v2347_v24  ;;  %v2394_v27 = vmul.f32 %v5107_v41, %v2343_v23  ;;  %v2396_v28 = vmul.f32 %v5238_v12, %v2351_v39  ;;  %v4046_v39 = vld [vmem:[%s5514_s8 + $0x1e4] ss:$8 sps:$4 sm:$0xff]   ;;  %v4044_v29 = vld [vmem:[%s5514_s8 + $0x1e0] ss:$8 sps:$4 sm:$0xff]   ;;  %v4049_v23 = vld [vmem:[%s5514_s8 + $0x1f4] ss:$8 sps:$4 sm:$0xff]  }
 0x249   :  { %v2369_v57 = vcombine.low %v2362_v48, %v2363_v33  ;;  %v4047_v24 = vld [vmem:[%s5514_s8 + $0x1f0] ss:$8 sps:$4 sm:$0xff]  }
 0x24a   :  { %v2368_v4 = vcombine.low %v2360_v25, %v2361_v7  ;;  %v3040_v25 = vld [vmem:[%s5517_s12 + $0x88] sm:$0xff] }
 0x24b   :  { %v2383_v31 = vrot.slane %v2369_v57, %v5253_v11  ;;  %v3041_v57 = vld [vmem:[%s5517_s12 + $0x90] sm:$0xff] }
 0x24c   :  { %v2376_v32 = vrot.slane %v2368_v4, %v5253_v11  ;;  %v3042_v4 = vld [vmem:[%s5517_s12 + $0x98] sm:$0xff] }
 0x24e   :  { %v2384_v35 = vcombine.low %v2376_v32, %v2383_v31  ;;  %v3507_v31 = vpack.c.bf16 %v3042_v4, %v3041_v57  ;;  %v3025_v32 = vld [vmem:[%s5517_s12 + $0x10] sm:$0xff] }
 0x250   :  { %v2391_v22 = vrot.slane %v2384_v35, %v5253_v11  ;;  %v3026_v35 = vld [vmem:[%s5517_s12 + $0x18] sm:$0xff] }
 0x252   :  { %v2393_v55 = vsub.f32 %v2219_v15, %v2391_v22  ;;  %v3509_v15 = vpack.c.bf16 %v3026_v35, %v3025_v32  ;;  %v3043_v22 = vld [vmem:[%s5517_s12 + $0xa0] sm:$0xff] }
 0x254   :  { %v2406_v43 = vrot.slane %v2393_v55, %v4283_v50  ;;  %v2402_v41 = vrot.slane %v2393_v55, %v4274_v46  ;;  %v2414_v12 = vrot.slane %v2393_v55, %v4292_v53  ;;  %v2410_v36 = vrot.slane %v2393_v55, %v4286_v51  ;;  %v4007_v53 = vld [vmem:[%s5514_s8 + $0x114] ss:$8 sps:$4 sm:$0xff]   ;;  %v3044_v55 = vld [vmem:[%s5517_s12 + $0xa8] sm:$0xff] }
 0x256   :  { %v2420_v37 = vadd.f32 %v2406_v43, %v2395_v14  ;;  %v2419_v38 = vadd.f32 %v2402_v41, %v2394_v27  ;;  %v2422_v40 = vadd.f32 %v2414_v12, %v2397_v54  ;;  %v5284_v42 = vadd.f32 %v2410_v36, %v2396_v28  ;;  %v3039_v54 = vld [vmem:[%s5517_s12 + $0x80] sm:$0xff]  ;;  %v3024_v27 = vld [vmem:[%s5517_s12 + $0x8] sm:$0xff] }
 0x257   :  { %v3503_v7 = vpack.c.bf16 %v3040_v25, %v3039_v54  ;;  %v3023_v14 = vld [vmem:[%s5517_s12] sm:$0xff]  ;;  %v3511_v43 = vpack.c.bf16 %v3044_v55, %v3043_v22  ;;  %v3028_v12 = vld [vmem:[%s5517_s12 + $0x28] sm:$0xff] }
 0x258   :  { %v2424_v26 = vmax.f32 %v2420_v37, 0.0  ;;  %v2423_v30 = vmax.f32 %v2419_v38, 0.0  ;;  %v2426_v45 = vmax.f32 %v2422_v40, 0.0  ;;  %v2425_v48 = vmax.f32 %v5284_v42, 0.0  ;;  %v3027_v41 = vld [vmem:[%s5517_s12 + $0x20] sm:$0xff]  ;;  %v3045_v37 = vld [vmem:[%s5517_s12 + $0xb0] sm:$0xff] }
 0x259   :  { %v3505_v28 = vpack.c.bf16 %v3024_v27, %v3023_v14  ;;  %3504 = vmatprep.subr.bf16.mxu1 %v3503_v7  ;;  %v3513_v36 = vpack.c.bf16 %v3028_v12, %v3027_v41  ;;  %v3046_v38 = vld [vmem:[%s5517_s12 + $0xb8] sm:$0xff]  ;;  %v3029_v42 = vld [vmem:[%s5517_s12 + $0x30] sm:$0xff] }
 0x25a   :  { %v2428_v47 = vpack.c.bf16 %v2424_v26, %v2424_v26  ;;  %v2427_v52 = vpack.c.bf16 %v2423_v30, %v2423_v30  ;;  %v2430_v51 = vpack.c.bf16 %v2426_v45, %v2426_v45  ;;  %v2429_v33 = vpack.c.bf16 %v2425_v48, %v2425_v48  ;;  %v3030_v26 = vld [vmem:[%s5517_s12 + $0x38] sm:$0xff]  ;;  %v3047_v45 = vld [vmem:[%s5517_s12 + $0xc0] sm:$0xff] }
 0x25b   :  { %3506 = vmatpush3.bf16.msra.mxu1 %v3505_v28  ;;  %v3515_v40 = vpack.c.bf16 %v3046_v38, %v3045_v37  ;;  %v3517_v30 = vpack.c.bf16 %v3030_v26, %v3029_v42 }
 0x25c   :  { %2859 = vmatprep.mubr.bf16.mxu0 %v2428_v47  ;;  %3508 = vmatprep.subr.bf16.mxu1 %v3507_v31  ;;  %v3048_v47 = vld [vmem:[%s5517_s12 + $0xc8] sm:$0xff] }
 0x25d   :  { %2860 = vmatmul.mubr.bf16.vlgmr.msra.gmra.mrb[4].mxu0 %v2427_v52  ;;  %v3031_v52 = vld [vmem:[%s5517_s12 + $0x40] sm:$0xff] }
 0x25e   :  { %2869 = vmatpush1.bf16.msra.mxu0 %v4002_v49  ;;  %2900 = vmatprep.mubr.bf16.mxu0 %v2430_v51  ;;  %v3519_v49 = vpack.c.bf16 %v3048_v47, %v3047_v45 }
 0x25f   :  { %2870 = vmatprep.subr.bf16.mxu0 %v4007_v53  ;;  %3510 = vmatpush3.bf16.msra.mxu1 %v3509_v15  ;;  %v3032_v53 = vld [vmem:[%s5517_s12 + $0x48] sm:$0xff] }
 0x260   :  { %3512 = vmatprep.subr.bf16.mxu1 %v3511_v43  ;;  %v3521_v51 = vpack.c.bf16 %v3032_v53, %v3031_v52 }
 0x262   :  { %2871 = vmatpush1.bf16.msra.mxu0 %v4005_v59  ;;  %v3049_v59 = vld [vmem:[%s5517_s12 + $0xd0] sm:$0xff] }
 0x263   :  { %2872 = vmatprep.subr.bf16.mxu0 %v4010_v8  ;;  %3514 = vmatpush3.bf16.msra.mxu1 %v3513_v36  ;;  %v3050_v8 = vld [vmem:[%s5517_s12 + $0xd8] sm:$0xff] }
 0x264   :  { %3516 = vmatprep.subr.bf16.mxu1 %v3515_v40 }
 0x266   :  { %2873 = vmatpush1.bf16.msra.mxu0 %v4008_v60  ;;  %v3033_v60 = vld [vmem:[%s5517_s12 + $0x50] sm:$0xff] }
 0x267   :  { %2874 = vmatprep.subr.bf16.mxu0 %v4013_v61  ;;  %3518 = vmatpush3.bf16.msra.mxu1 %v3517_v30  ;;  %v3523_v61 = vpack.c.bf16 %v3050_v8, %v3049_v59 }
 0x268   :  { %3520 = vmatprep.subr.bf16.mxu1 %v3519_v49 }
 0x26a   :  { %2875 = vmatpush1.bf16.msra.mxu0 %v4011_v62  ;;  %v3034_v62 = vld [vmem:[%s5517_s12 + $0x58] sm:$0xff] }
 0x26b   :  { %2876 = vmatprep.subr.bf16.mxu0 %v4016_v63  ;;  %3522 = vmatpush3.bf16.msra.mxu1 %v3521_v51  ;;  %v3051_v63 = vld [vmem:[%s5517_s12 + $0xe0] sm:$0xff] }
 0x26c   :  { %3524 = vmatprep.subr.bf16.mxu1 %v3523_v61 }
 0x26e   :  { %2877 = vmatpush1.bf16.msra.mxu0 %v4014_v1  ;;  %v3052_v1 = vld [vmem:[%s5517_s12 + $0xe8] sm:$0xff] }
 0x26f   :  { %2878 = vmatprep.subr.bf16.mxu0 %v4019_v56  ;;  %v3525_v56 = vpack.c.bf16 %v3034_v62, %v3033_v60 }
 0x271   :  { %3526 = vmatpush3.bf16.msra.mxu1 %v3525_v56 }
 0x272   :  { %2879 = vmatpush1.bf16.msra.mxu0 %v4017_v3  ;;  %v3527_v3 = vpack.c.bf16 %v3052_v1, %v3051_v63 }
 0x273   :  { %2880 = vmatprep.subr.bf16.mxu0 %v4022_v0  ;;  %v3035_v0 = vld [vmem:[%s5517_s12 + $0x60] sm:$0xff] }
 0x274   :  { %3528 = vmatprep.subr.bf16.mxu1 %v3527_v3 }
 0x276   :  { %2881 = vmatpush1.bf16.msra.mxu0 %v4020_v2  ;;  %v3036_v2 = vld [vmem:[%s5517_s12 + $0x68] sm:$0xff] }
 0x277   :  { %2882 = vmatprep.subr.bf16.mxu0 %v4025_v18  ;;  %v3053_v18 = vld [vmem:[%s5517_s12 + $0xf0] sm:$0xff] }
 0x27a   :  { %2883 = vmatpush1.bf16.msra.mxu0 %v4023_v19  ;;  %v3054_v19 = vld [vmem:[%s5517_s12 + $0xf8] sm:$0xff] }
 0x27b   :  { %2884 = vmatprep.subr.bf16.mxu0 %v4028_v5  ;;  %v3529_v5 = vpack.c.bf16 %v3036_v2, %v3035_v0 }
 0x27d   :  { %3530 = vmatpush3.bf16.msra.mxu1 %v3529_v5 }
 0x27e   :  { %2885 = vmatpush1.bf16.msra.mxu0 %v4026_v6  ;;  %v3531_v6 = vpack.c.bf16 %v3054_v19, %v3053_v18  ;;  %v2909_v19 = vld [vmem:[%s5519_s10] sm:$0x3] }
 0x27f   :  { %2886 = vmatprep.subr.bf16.mxu0 %v4031_v9  ;;  %v3037_v9 = vld [vmem:[%s5517_s12 + $0x70] sm:$0xff] }
 0x280   :  { %3532 = vmatprep.subr.bf16.mxu1 %v3531_v6 }
 0x282   :  { %2887 = vmatpush1.bf16.msra.mxu0 %v4029_v10  ;;  %v3038_v10 = vld [vmem:[%s5517_s12 + $0x78] sm:$0xff] }
 0x283   :  { %2888 = vmatprep.subr.bf16.mxu0 %v4034_v13  ;;  %v3533_v13 = vpack.c.bf16 %v3038_v10, %v3037_v9 }
 0x285   :  { %3534 = vmatpush3.bf16.msra.mxu1 %v3533_v13 }
 0x286   :  { %2889 = vmatpush1.bf16.msra.mxu0 %v4032_v16  ;;  %v2495_v16 = vld [vmem:[%s5518_s9] sm:$0x3] }
 0x287   :  { %2890 = vmatprep.subr.bf16.mxu0 %v4037_v17  ;;  %v2500_v17 = vrot.slane %v2495_v16, %v4274_v46 }
 0x28a   :  { %2891 = vmatpush1.bf16.msra.mxu0 %v4035_v44  ;;  %v2504_v44 = vrot.slane %v2495_v16, %v4283_v50 }
 0x28b   :  { %2892 = vmatprep.subr.bf16.mxu0 %v4040_v58 }
 0x28e   :  { %2893 = vmatpush1.bf16.msra.mxu0 %v4038_v20 }
 0x28f   :  { %2894 = vmatprep.subr.bf16.mxu0 %v4043_v21 }
 0x292   :  { %2895 = vmatpush1.bf16.msra.mxu0 %v4041_v34 }
 0x293   :  { %2896 = vmatprep.subr.bf16.mxu0 %v4046_v39 }
 0x296   :  { %2897 = vmatpush1.bf16.msra.mxu0 %v4044_v29 }
 0x297   :  { %2898 = vmatprep.subr.bf16.mxu0 %v4049_v23 }
 0x29a   :  { %2899 = vmatpush1.bf16.msra.mxu0 %v4047_v24 }
 0x29d   :  { %2901 = vmatmul.mubr.bf16.vlgmr.msra.gmra.mrb[4].mxu0 %v2429_v33 }
 0x370   :  { %v2902_v58 = vpop.f32.mrb[4].mxu0 }
 0x371   :  { %v3541_v20 = vadd.f32 %v2902_v58, %v2500_v17  ;;  %v2904_v21 = vpop.f32.mrb[5].mxu0 }
 0x372   :  { %v3542_v34 = vadd.f32 %v2904_v21, %v2504_v44  ;;  %v2906_v39 = vpop.f32.mrb[6].mxu0 }
 0x373   :  { %v2911_v29 = vsel %vm2220_vm9, %v3541_v20, 0.0  ;;  %v2927_v23 = vmul.f32 %v3541_v20, %v3541_v20  ;;  %v2907_v24 = vpop.f32.mrb[7].mxu0  ;;  %v2910_v39 = vld [vmem:[%s5520_s11] sm:$0x3] }
 0x374   :  { %v2912_v48 = vrot.slane %v2911_v29, 4  ;;  %v2918_v33 = vsel %vm2220_vm9, %v3542_v34, 0.0  ;;  %v2928_v54 = vmul.f32 %v3542_v34, %v3542_v34 }
 0x375   :  { %v2929_v25 = vsel %vm2220_vm9, %v2927_v23, 0.0  ;;  %v2919_v7 = vrot.slane %v2918_v33, 4 }
 0x376   :  { %v2913_v14 = vadd.f32 %v2912_v48, %v2911_v29  ;;  %v2930_v27 = vrot.slane %v2929_v25, 4  ;;  %v2936_v28 = vsel %vm2220_vm9, %v2928_v54, 0.0 }
 0x377   :  { %v2920_v57 = vadd.f32 %v2919_v7, %v2918_v33  ;;  %v2937_v4 = vrot.slane %v2936_v28, 4 }
 0x378   :  { %v2914_v31 = vrot.slane %v2913_v14, 2  ;;  %v2931_v32 = vadd.f32 %v2930_v27, %v2929_v25 }
 0x379   :  { %v2921_v35 = vrot.slane %v2920_v57, 2  ;;  %v2938_v15 = vadd.f32 %v2937_v4, %v2936_v28 }
 0x37a   :  { %v2915_v22 = vadd.f32 %v2914_v31, %v2913_v14  ;;  %v2932_v55 = vrot.slane %v2931_v32, 2 }
 0x37b   :  { %v2922_v43 = vadd.f32 %v2921_v35, %v2920_v57  ;;  %v2939_v41 = vrot.slane %v2938_v15, 2 }
 0x37c   :  { %v2916_v12 = vrot.slane %v2915_v22, 1  ;;  %v2933_v36 = vadd.f32 %v2932_v55, %v2931_v32 }
 0x37d   :  { %v2923_v37 = vrot.slane %v2922_v43, 1  ;;  %v2940_v38 = vadd.f32 %v2939_v41, %v2938_v15 }
 0x37e   :  { %v2917_v40 = vadd.f32 %v2916_v12, %v2915_v22  ;;  %v2934_v42 = vrot.slane %v2933_v36, 1 }
 0x37f   :  { %v2924_v26 = vadd.f32 %v2923_v37, %v2922_v43  ;;  %v2941_v30 = vrot.slane %v2940_v38, 1 }
 0x380   :  { %v2925_v45 = vmul.f32 0.5, %v2917_v40  ;;  %v2935_v47 = vadd.f32 %v2934_v42, %v2933_v36 }
 0x381   :  { %v2926_v49 = vmul.f32 0.5, %v2924_v26  ;;  %v2942_v52 = vadd.f32 %v2941_v30, %v2940_v38 }
 0x382   :  { %v2943_v53 = vmul.f32 0.5, %v2935_v47  ;;  %v2945_v51 = vmul.f32 %v2925_v45, %v2925_v45 }
 0x383   :  { %v2944_v59 = vmul.f32 0.5, %v2942_v52  ;;  %v2946_v8 = vmul.f32 %v2926_v49, %v2926_v49 }
 0x384   :  { %v2947_v60 = vsub.f32 %v2943_v53, %v2945_v51 }
 0x385   :  { %v2948_v61 = vsub.f32 %v2944_v59, %v2946_v8 }
 0x386   :  { %v2949_v62 = vmax.f32 %v2947_v60, 0.0 }
 0x387   :  { %v2950_v63 = vmax.f32 %v2948_v61, 0.0 }
 0x388   :  { %v2951_v1 = vadd.f32 1e-05, %v2949_v62 }
 0x389   :  { %v2952_v56 = vadd.f32 1e-05, %v2950_v63 }
 0x38a   :  { %4058 = vrsqrt.f32 %v2951_v1 }
 0x38b   :  { %4060 = vrsqrt.f32 %v2952_v56 }
 0x394   :  { %v4059_v3 = vpop.eup %4058 }
 0x395   :  { %v4061_v0 = vpop.eup %4060 }
 0x396   :  { %v2957_v2 = vcombine.low %v4059_v3, %v4061_v0 }
 0x398   :  { %v2964_v18 = vrot.slane %v2957_v2, %v5253_v11 }
 0x39a   :  { %v2971_v5 = vrot.slane %v2964_v18, %v5253_v11 }
 0x39c   :  { %v2973_v6 = vmul.f32 %v2971_v5, %v2909_v19 }
 0x39e   :  { %v2978_v9 = vrot.slane %v2973_v6, %v4274_v46  ;;  %v2982_v10 = vrot.slane %v2973_v6, %v4283_v50 }
 0x3a0   :  { %v2985_v13 = vmul.f32 %v2978_v9, %v2925_v45  ;;  %v2986_v16 = vmul.f32 %v2982_v10, %v2926_v49  ;;  %v3007_v17 = vmul.f32 %v3542_v34, %v2982_v10  ;;  %v3006_v44 = vmul.f32 %v3541_v20, %v2978_v9  ;;  %v3466_v34 = vld [vmem:[%s5521_s13] ss:$0 sm:$0xff] }
 0x3a2   :  { %v2989_v58 = vcombine.low %v2985_v13, %v2986_v16 }
 0x3a4   :  { %v2996_v21 = vrot.slane %v2989_v58, %v5253_v11 }
 0x3a6   :  { %v3003_v29 = vrot.slane %v2996_v21, %v5253_v11  ;;  %v3467_v11 = vld [vmem:[%s5522_s14] ss:$0 sm:$0xff] }
 0x3a8   :  { %v3005_v23 = vsub.f32 %v2910_v39, %v3003_v29 }
 0x3aa   :  { %v3016_v24 = vrot.slane %v3005_v23, %v4283_v50  ;;  %v3012_v48 = vrot.slane %v3005_v23, %v4274_v46 }
 0x3ac   :  { %v3020_v33 = vadd.f32 %v3016_v24, %v3007_v17  ;;  %v3019_v54 = vadd.f32 %v3012_v48, %v3006_v44 }
 0x3ae   :  { %v3022_v25 = vmax.f32 %v3020_v33, 0.0  ;;  %v3021_v7 = vmax.f32 %v3019_v54, 0.0 }
 0x3b0   :  { %3126 = vmatprep.mubr.f32.mxu1 %v3022_v25 }
 0x3b1   :  { %3127 = vmatmul.mubr.f32.vlgmr.msra.gmra.mrb[8].mxu1 %v3021_v7 }
 0x484   :  { %v3500_v20 = vpop.f32.mrb[8].mxu1 }
 0x485   :  { %v3501_v14 = vpop.f32.mrb[9].mxu1 }
 0x486   :  { %v3502_v27 = vadd.f32 %v3501_v14, %v3500_v20 }
 0x488   :  { %v3129_v50 = vadd.f32 %v3502_v27, %v3466_v34 }
 0x48a   :  { %v3139_v46 = vadd.f32 %v3467_v11, %v3129_v50 }
 0x48c   :  { %3141 = vst.msk [vmem:[%s5523_s15] sm:$0x3] %vm3140_vm10, %v3139_v46 }

</bundles_post_ra>
